<compile_context>
chip_gen: v7x
topology: tpu7x:2x2x1
jax: 0.10.0
libtpu: 0.0.40
codegen_flags: <defaults>
</compile_context>

<pallas_src>
import jax
import jax.numpy as jnp
from jax.experimental import pallas as pl
from jax.experimental.pallas import tpu as pltpu


def _cdiv(a, b):
    return -(-a // b)


def _vmem_capacity_bytes():
    try:
        info = pltpu.get_tpu_info()
        cap = getattr(info, "vmem_capacity_bytes", None)
        if cap:
            return int(cap)
    except Exception:
        pass
    return 64 << 20  # conservative default (v7x per-TensorCore VMEM)


def _make_attention_kernel(G, C, Cq, N, strip_rows, with_attn, attn_dtype):
    Cf = C + 2 * Cq
    n_strips = N // strip_rows
    use_vpu_energy = Cq <= 8
    bf16 = jnp.bfloat16
    qm_rows = Cq + 1
    qm_pad = (-qm_rows) % 8          # pad the small transpose source to a full sublane tile

    def kernel(x_ref, w_ref, b_ref, out_ref, *maybe_attn):
        attn_ref = maybe_attn[0] if with_attn else None

        # Per-grid-step invariants, hoisted out of the per-block loop
        # (JAX does not CSE broadcast_in_dim inside the loop body).
        wf = w_ref[...].astype(bf16)                       # (Cf, C) bf16 MXU operand
        bfb = jnp.broadcast_to(b_ref[...], (Cf, N))        # (Cf, N) bias, broadcast once
        zero_pad = (jnp.zeros((qm_pad, N), jnp.float32) if qm_pad else None)

        @pl.loop(0, G)
        def _(g):
            x = x_ref[g]                                   # (C, N) f32

            # Fused 1x1 convs [Wv; Wq; Wk]: ONE bf16 matmul, f32 accumulate + bias.
            proj = jnp.dot(wf, x.astype(bf16),
                           preferred_element_type=jnp.float32) + bfb   # (Cf, N)
            v = proj[:C]                                   # (C,  N)
            q = proj[C:C + Cq]                             # (Cq, N)
            k = proj[C + Cq:]                              # (Cq, N)

            vT = v.T.astype(bf16)                          # (N, C), one small transpose per block

            # Zero-padding mask.  A genuinely all-zero spatial position is
            # treated as padding (matches the PyTorch module's trick).
            # The query-side mask needs column orientation, so absum rides
            # along with q in a single small padded transpose.
            absum = jnp.sum(jnp.abs(x), axis=0, keepdims=True)          # (1, N)
            key_ok = absum > 0.0                                         # (1, N)
            parts = [q, absum] + ([zero_pad] if qm_pad else [])
            qmT = jnp.concatenate(parts, axis=0).T         # (N, Cq+1+pad)

            # Strip-mine softmax + output matmul over query rows so the live
            # f32 (strip, N) tiles stay at ~half the register file.
            for s in range(n_strips):
                s0, s1 = s * strip_rows, (s + 1) * strip_rows
                qs = qmT[s0:s1, :Cq]                       # (S, Cq)
                query_ok = qmT[s0:s1, Cq:Cq + 1] > 0.0     # (S, 1)

                if use_vpu_energy:
                    # K = Cq is tiny: Cq VPU broadcast-FMA outer products
                    # (runs in otherwise-idle VALU slots, frees the MXU).
                    energy = qs[:, 0:1] * k[0:1, :]
                    for cq in range(1, Cq):
                        energy = energy + qs[:, cq:cq + 1] * k[cq:cq + 1, :]
                else:
                    energy = jnp.dot(qs.astype(bf16), k.astype(bf16),
                                     preferred_element_type=jnp.float32)

                # Single select == the two masked_fill(-1e9) passes.
                energy = jnp.where(jnp.logical_and(query_ok, key_ok),
                                   energy, -1e9)

                # Numerically-stable softmax; divide on the EUP reciprocal
                # (approx recip error ~1e-3 relative, below bf16 quantization).
                m = jnp.max(energy, axis=-1, keepdims=True)
                e = jnp.exp(energy - m)
                denom = jnp.sum(e, axis=-1, keepdims=True)
                attn = e * pl.reciprocal(denom, approx=True)             # (S, N) f32

                if with_attn:
                    attn_ref[g, s0:s1, :] = attn.astype(attn_dtype)

                # out[:, s0:s1] = (attn_strip @ v.T).T -- only the narrow (S,C)
                # result is transposed, never a 256x256 attention tile.
                out_nc = jnp.dot(attn.astype(bf16), vT,
                                 preferred_element_type=jnp.float32)     # (S, C)
                out_ref[g, :, s0:s1] = out_nc.T.astype(out_ref.dtype)

    return kernel


def self_attention_forward(x, params, block_size=16, blocks_per_step=None,
                           attn_dtype=jnp.bfloat16, return_attention=True):
    """x: (B, C, W, H) float32.  Returns (out, attention) like the PyTorch module.

    attention is returned in `attn_dtype` (bfloat16 by default: it is ~90% of
    the kernel's HBM writeback).  Pass jnp.float32 for exact interface
    fidelity, or return_attention=False to skip it entirely.
    """
    wq, bq, wk, bk, wv, bv, gamma = params
    B, C, W, H = x.shape
    blk = block_size
    pad_w = (-W) % blk
    pad_h = (-H) % blk
    xp = jnp.pad(x, ((0, 0), (0, 0), (0, pad_w), (0, pad_h)))
    Wp, Hp = W + pad_w, H + pad_h
    nW, nH = Wp // blk, Hp // blk
    N = blk * blk
    NB = B * nW * nH
    Cq = wq.shape[0]
    Cf = C + 2 * Cq

    # Fused 1x1-conv weights/biases: rows ordered [Wv; Wq; Wk] so the big V
    # slice starts at a sublane-tile-aligned offset.
    w_fused = jnp.concatenate([wv, wq, wk], axis=0)   # (Cf, C)
    b_fused = jnp.concatenate([bv, bq, bk], axis=0)   # (Cf, 1)

    # (B, C, Wp, Hp) -> (NB, C, N): one row per block, channels x flat-spatial.
    xb = (xp.reshape(B, C, nW, blk, nH, blk)
            .transpose(0, 2, 4, 1, 3, 5)
            .reshape(NB, C, N))

    attn_itemsize = jnp.dtype(attn_dtype).itemsize if return_attention else 0
    per_block_bytes = 2 * C * N * 4 + N * N * attn_itemsize

    vmem_cap = _vmem_capacity_bytes()
    # Scoped-VMEM ceiling: ~48 MiB on 64-MiB parts (v7x), ~100 MiB on 128-MiB parts.
    vmem_ceiling = min(vmem_cap - (16 << 20), 100 << 20)

    if blocks_per_step is None:
        blocks_per_step = 64 if vmem_cap >= (96 << 20) else 32

    # >= 2 grid steps so the "parallel" axis can span both TensorCores on v7x,
    # and G balanced so the padded tail is small; clamp G by the VMEM budget
    # (double-buffered x/out/attn slabs).
    n_steps = max(2, _cdiv(NB, blocks_per_step)) if NB > 1 else 1
    G = _cdiv(NB, n_steps)
    g_max = max(1, (vmem_ceiling - (8 << 20)) // (2 * per_block_bytes))
    G = int(max(1, min(G, g_max)))
    n_steps = _cdiv(NB, G)
    NBp = n_steps * G
    if NBp > NB:
        # Padded tail blocks are all-zero -> uniform attention; results sliced off.
        xb = jnp.pad(xb, ((0, NBp - NB), (0, 0), (0, 0)))

    strip_rows = N if N <= 128 else next(
        c for c in (128, 96, 64, 32, 16, 8, N) if N % c == 0)

    buf_bytes = 2 * G * per_block_bytes + (Cf * C + Cf) * 4
    vmem_limit = int(min(max(buf_bytes + (8 << 20), 32 << 20), vmem_ceiling))

    # Advisory cost estimate so XLA schedules the wrapper reshapes correctly.
    flops = NBp * (2 * Cf * C * N + 2 * Cq * N * N + 2 * C * N * N)
    transcendentals = NBp * N * N
    bytes_accessed = (NBp * (2 * C * N * 4 + N * N * attn_itemsize)
                      + (Cf * C + Cf) * 4)

    if return_attention:
        out_shape = (jax.ShapeDtypeStruct((NBp, C, N), jnp.float32),
                     jax.ShapeDtypeStruct((NBp, N, N), attn_dtype))
        out_specs = (pl.BlockSpec((G, C, N), lambda i: (i, 0, 0)),
                     pl.BlockSpec((G, N, N), lambda i: (i, 0, 0)))
    else:
        out_shape = jax.ShapeDtypeStruct((NBp, C, N), jnp.float32)
        out_specs = pl.BlockSpec((G, C, N), lambda i: (i, 0, 0))

    kernel_fn = _make_attention_kernel(G, C, Cq, N, strip_rows,
                                       return_attention, attn_dtype)

    kernel = pl.pallas_call(
        kernel_fn,
        out_shape=out_shape,
        grid_spec=pltpu.PrefetchScalarGridSpec(
            num_scalar_prefetch=0,
            grid=(n_steps,),
            in_specs=[
                pl.BlockSpec((G, C, N), lambda i: (i, 0, 0)),   # x slab (G blocks)
                pl.BlockSpec((Cf, C), lambda i: (0, 0)),        # fused weight
                pl.BlockSpec((Cf, 1), lambda i: (0, 0)),        # fused bias
            ],
            out_specs=out_specs,
        ),
        compiler_params=pltpu.CompilerParams(
            dimension_semantics=("parallel",),
            vmem_limit_bytes=vmem_limit),
        cost_estimate=pl.CostEstimate(flops=flops,
                                      transcendentals=transcendentals,
                                      bytes_accessed=bytes_accessed),
    )
    results = kernel(xb, w_fused, b_fused)
    if return_attention:
        out_blocks, attention = results
        attention = attention[:NB]
    else:
        out_blocks, attention = results, None
    out_blocks = out_blocks[:NB]

    # Reassemble blocks -> (B, C, Wp, Hp), crop padding, residual with gamma.
    out = (out_blocks.reshape(B, nW, nH, C, blk, blk)
                     .transpose(0, 3, 1, 4, 2, 5)
                     .reshape(B, C, Wp, Hp))
    out = out[:, :, :W, :H]
    out = gamma * out + x
    return out, attention


def _reference_forward(x, params, block_size=16):
    """Pure-JAX mirror of the PyTorch forward, for correctness checking."""
    wq, bq, wk, bk, wv, bv, gamma = params
    B, C, W, H = x.shape
    blk = block_size
    pad_w = (-W) % blk
    pad_h = (-H) % blk
    xp = jnp.pad(x, ((0, 0), (0, 0), (0, pad_w), (0, pad_h)))
    Wp, Hp = W + pad_w, H + pad_h
    nW, nH = Wp // blk, Hp // blk
    N = blk * blk
    xb = (xp.reshape(B, C, nW, blk, nH, blk)
            .transpose(0, 2, 4, 1, 3, 5)
            .reshape(-1, C, N))
    mask = (jnp.sum(jnp.abs(xb), axis=1) > 0)                       # (NB, N)
    hi = jax.lax.Precision.HIGHEST
    q = jnp.einsum('oc,bcn->bon', wq, xb, precision=hi) + bq[None]
    k = jnp.einsum('oc,bcn->bon', wk, xb, precision=hi) + bk[None]
    v = jnp.einsum('oc,bcn->bon', wv, xb, precision=hi) + bv[None]
    energy = jnp.einsum('bcm,bcn->bmn', q, k, precision=hi)
    energy = jnp.where(mask[:, None, :], energy, -1e9)
    energy = jnp.where(mask[:, :, None], energy, -1e9)
    attn = jax.nn.softmax(energy, axis=-1)
    out = jnp.einsum('bcm,bnm->bcn', v, attn, precision=hi)
    out = (out.reshape(B, nW, nH, C, blk, blk)
              .transpose(0, 3, 1, 4, 2, 5)
              .reshape(B, C, Wp, Hp))[:, :, :W, :H]
    return gamma * out + x, attn


if __name__ == "__main__":
    # Small shapes consistent with the module: in_dim must be divisible by 8.
    B, C, W, H = 2, 16, 20, 20          # W,H not multiples of 16 -> exercises padding mask
    block_size = 16
    Cq = C // 8

    key = jax.random.PRNGKey(0)
    k1, k2, k3, k4, k5, k6, kx = jax.random.split(key, 7)
    wq = 0.1 * jax.random.normal(k1, (Cq, C), jnp.float32)   # query_conv weight (1x1)
    bq = 0.1 * jax.random.normal(k2, (Cq, 1), jnp.float32)   # query_conv bias
    wk = 0.1 * jax.random.normal(k3, (Cq, C), jnp.float32)   # key_conv weight
    bk = 0.1 * jax.random.normal(k4, (Cq, 1), jnp.float32)   # key_conv bias
    wv = 0.1 * jax.random.normal(k5, (C, C), jnp.float32)    # value_conv weight
    bv = 0.1 * jax.random.normal(k6, (C, 1), jnp.float32)    # value_conv bias
    gamma0 = jnp.zeros((1,), jnp.float32)                    # nn.Parameter(torch.zeros(1))
    x = jax.random.normal(kx, (B, C, W, H), jnp.float32)

    fwd = jax.jit(lambda xx, pp: self_attention_forward(xx, pp, block_size=block_size))

    # Module-default gamma = 0.
    params0 = (wq, bq, wk, bk, wv, bv, gamma0)
    out, attention = fwd(x, params0)
    out = jax.block_until_ready(out)
    attention = jax.block_until_ready(attention)
    out_ref, attn_ref = _reference_forward(x, params0, block_size)
    assert out.shape == (B, C, W, H)
    assert attention.shape == (B * 4, block_size * block_size, block_size * block_size)
    assert jnp.allclose(out, out_ref, rtol=1e-2, atol=1e-2)
    assert jnp.allclose(attention.astype(jnp.float32), attn_ref, rtol=1e-2, atol=1e-2)

    # Non-zero gamma exercises the attention-weighted output path end to end.
    params1 = (wq, bq, wk, bk, wv, bv, jnp.full((1,), 0.5, jnp.float32))
    out1, _ = fwd(x, params1)
    out1 = jax.block_until_ready(out1)
    out_ref1, _ = _reference_forward(x, params1, block_size)
    assert jnp.allclose(out1, out_ref1, rtol=1e-2, atol=1e-2)

    print("KERNEL_OK")
</pallas_src>

<mosaic_0001>
module attributes {stable_mosaic.version = 11 : i64} {
  func.func @kernel(%arg0: i32, %arg1: memref<4x16x256xf32, #tpu.memory_space<vmem>>, %arg2: memref<20x16xf32, #tpu.memory_space<vmem>>, %arg3: memref<20x1xf32, #tpu.memory_space<vmem>>, %arg4: memref<4x16x256xf32, #tpu.memory_space<vmem>>, %arg5: memref<4x256x256xbf16, #tpu.memory_space<vmem>>) attributes {dimension_semantics = [#tpu.dimension_semantics<parallel>], iteration_bounds = array<i64: 2>, scalar_prefetch = 0 : i64, scratch_operands = 0 : i64, tpu.core_type = #tpu.core_type<tc>, window_params = [{transform_indices = @transform_0, window_bounds = array<i64: 4, 16, 256>}, {pipeline_mode = #tpu.pipeline_mode<synchronous>, transform_indices = @transform_1, window_bounds = array<i64: 20, 16>}, {pipeline_mode = #tpu.pipeline_mode<synchronous>, transform_indices = @transform_2, window_bounds = array<i64: 20, 1>}, {transform_indices = @transform_3, window_bounds = array<i64: 4, 16, 256>}, {transform_indices = @transform_4, window_bounds = array<i64: 4, 256, 256>}]} {
    %c0 = arith.constant 0 : index
    %c0_0 = arith.constant 0 : index
    %0 = vector.load %arg2[%c0, %c0_0] : memref<20x16xf32, #tpu.memory_space<vmem>>, vector<20x16xf32>
    %1 = arith.truncf %0 : vector<20x16xf32> to vector<20x16xbf16>
    %c0_1 = arith.constant 0 : index
    %c0_2 = arith.constant 0 : index
    %2 = vector.load %arg3[%c0_1, %c0_2] : memref<20x1xf32, #tpu.memory_space<vmem>>, vector<20x1xf32>
    %3 = vector.shape_cast %2 : vector<20x1xf32> to vector<20x1xf32>
    %4 = vector.broadcast %3 : vector<20x1xf32> to vector<20x256xf32>
    %cst = arith.constant 0.000000e+00 : f32
    %5 = vector.broadcast %cst : f32 to vector<5x256xf32>
    %c0_i32 = arith.constant 0 : i32
    %c4_i32 = arith.constant 4 : i32
    %6 = arith.addi %c0_i32, %c4_i32 : i32
    %c1_i32 = arith.constant 1 : i32
    scf.for %arg6 = %c0_i32 to %6 step %c1_i32  : i32 {
      %c1_i32_4 = arith.constant 1 : i32
      %7 = arith.muli %arg6, %c1_i32_4 : i32
      %c0_i32_5 = arith.constant 0 : i32
      %8 = arith.addi %c0_i32_5, %7 : i32
      %9 = arith.index_cast %8 : i32 to index
      %c0_6 = arith.constant 0 : index
      %c0_7 = arith.constant 0 : index
      %10 = vector.load %arg1[%9, %c0_6, %c0_7] : memref<4x16x256xf32, #tpu.memory_space<vmem>>, vector<1x16x256xf32>
      %11 = vector.shape_cast %10 : vector<1x16x256xf32> to vector<16x256xf32>
      %12 = arith.truncf %11 : vector<16x256xf32> to vector<16x256xbf16>
      %cst_8 = arith.constant dense<0.000000e+00> : vector<20x256xf32>
      %13 = tpu.matmul %1, %12, %cst_8 {dimension_numbers = #tpu.dot_dimension_numbers<[1], [0], [0], [1], [0, 0, 1, 1], [], []>} : vector<20x16xbf16>, vector<16x256xbf16>, vector<20x256xf32> -> vector<20x256xf32>
      %14 = arith.addf %13, %4 : vector<20x256xf32>
      %15 = vector.extract_strided_slice %14 {offsets = [0, 0], sizes = [16, 256], strides = [1, 1]} : vector<20x256xf32> to vector<16x256xf32>
      %16 = vector.extract_strided_slice %14 {offsets = [16, 0], sizes = [2, 256], strides = [1, 1]} : vector<20x256xf32> to vector<2x256xf32>
      %17 = vector.extract_strided_slice %14 {offsets = [18, 0], sizes = [2, 256], strides = [1, 1]} : vector<20x256xf32> to vector<2x256xf32>
      %18 = tpu.transpose %15, [1, 0] : vector<16x256xf32> -> vector<256x16xf32>
      %19 = arith.truncf %18 : vector<256x16xf32> to vector<256x16xbf16>
      %20 = math.absf %11 : vector<16x256xf32>
      %cst_9 = arith.constant dense<0.000000e+00> : vector<256xf32>
      %21 = vector.multi_reduction <add>, %20, %cst_9 [0] : vector<16x256xf32> to vector<256xf32>
      %22 = vector.shape_cast %21 : vector<256xf32> to vector<1x256xf32>
      %cst_10 = arith.constant 0.000000e+00 : f32
      %23 = vector.broadcast %cst_10 : f32 to vector<1x256xf32>
      %24 = arith.cmpf ogt, %22, %23 : vector<1x256xf32>
      %25 = tpu.concatenate %16, %22, %5 in 0 : vector<2x256xf32>, vector<1x256xf32>, vector<5x256xf32> -> vector<8x256xf32>
      %26 = tpu.transpose %25, [1, 0] : vector<8x256xf32> -> vector<256x8xf32>
      %27 = vector.extract_strided_slice %26 {offsets = [0, 0], sizes = [128, 2], strides = [1, 1]} : vector<256x8xf32> to vector<128x2xf32>
      %28 = vector.extract_strided_slice %26 {offsets = [0, 2], sizes = [128, 1], strides = [1, 1]} : vector<256x8xf32> to vector<128x1xf32>
      %cst_11 = arith.constant 0.000000e+00 : f32
      %29 = vector.broadcast %cst_11 : f32 to vector<128x1xf32>
      %30 = arith.cmpf ogt, %28, %29 : vector<128x1xf32>
      %31 = vector.extract_strided_slice %27 {offsets = [0, 0], sizes = [128, 1], strides = [1, 1]} : vector<128x2xf32> to vector<128x1xf32>
      %32 = vector.extract_strided_slice %17 {offsets = [0, 0], sizes = [1, 256], strides = [1, 1]} : vector<2x256xf32> to vector<1x256xf32>
      %33 = vector.broadcast %31 : vector<128x1xf32> to vector<128x256xf32>
      %34 = vector.broadcast %32 : vector<1x256xf32> to vector<128x256xf32>
      %35 = arith.mulf %33, %34 : vector<128x256xf32>
      %36 = vector.extract_strided_slice %27 {offsets = [0, 1], sizes = [128, 1], strides = [1, 1]} : vector<128x2xf32> to vector<128x1xf32>
      %37 = vector.extract_strided_slice %17 {offsets = [1, 0], sizes = [1, 256], strides = [1, 1]} : vector<2x256xf32> to vector<1x256xf32>
      %38 = vector.broadcast %36 : vector<128x1xf32> to vector<128x256xf32>
      %39 = vector.broadcast %37 : vector<1x256xf32> to vector<128x256xf32>
      %40 = arith.mulf %38, %39 : vector<128x256xf32>
      %41 = arith.addf %35, %40 : vector<128x256xf32>
      %42 = vector.broadcast %30 : vector<128x1xi1> to vector<128x256xi1>
      %43 = vector.broadcast %24 : vector<1x256xi1> to vector<128x256xi1>
      %44 = arith.andi %42, %43 : vector<128x256xi1>
      %cst_12 = arith.constant -1.000000e+09 : f32
      %45 = vector.broadcast %cst_12 : f32 to vector<128x256xf32>
      %46 = arith.select %44, %41, %45 : vector<128x256xi1>, vector<128x256xf32>
      %cst_13 = arith.constant dense<0xFF800000> : vector<128xf32>
      %47 = vector.multi_reduction <maximumf>, %46, %cst_13 [1] : vector<128x256xf32> to vector<128xf32>
      %48 = vector.shape_cast %47 : vector<128xf32> to vector<128x1xf32>
      %49 = vector.broadcast %48 : vector<128x1xf32> to vector<128x256xf32>
      %50 = arith.subf %46, %49 : vector<128x256xf32>
      %51 = math.exp %50 : vector<128x256xf32>
      %cst_14 = arith.constant dense<0.000000e+00> : vector<128xf32>
      %52 = vector.multi_reduction <add>, %51, %cst_14 [1] : vector<128x256xf32> to vector<128xf32>
      %53 = vector.shape_cast %52 : vector<128xf32> to vector<128x1xf32>
      %54 = tpu.reciprocal %53 {approx = true} : vector<128x1xf32> -> vector<128x1xf32>
      %55 = vector.broadcast %54 : vector<128x1xf32> to vector<128x256xf32>
      %56 = arith.mulf %51, %55 : vector<128x256xf32>
      %57 = arith.truncf %56 : vector<128x256xf32> to vector<128x256xbf16>
      %58 = arith.index_cast %8 : i32 to index
      %c0_15 = arith.constant 0 : index
      %c0_16 = arith.constant 0 : index
      %59 = vector.load %arg5[%58, %c0_15, %c0_16] : memref<4x256x256xbf16, #tpu.memory_space<vmem>>, vector<1x128x256xbf16>
      %60 = vector.shape_cast %59 : vector<1x128x256xbf16> to vector<128x256xbf16>
      %61 = vector.shape_cast %57 : vector<128x256xbf16> to vector<1x128x256xbf16>
      tpu.vector_store %arg5[%58, %c0_15, %c0_16], %61 {strides = array<i32>} : memref<4x256x256xbf16, #tpu.memory_space<vmem>>, vector<1x128x256xbf16>,
      %62 = arith.truncf %56 : vector<128x256xf32> to vector<128x256xbf16>
      %cst_17 = arith.constant dense<0.000000e+00> : vector<128x16xf32>
      %63 = tpu.matmul %62, %19, %cst_17 {dimension_numbers = #tpu.dot_dimension_numbers<[1], [0], [0], [1], [0, 0, 1, 1], [], []>} : vector<128x256xbf16>, vector<256x16xbf16>, vector<128x16xf32> -> vector<128x16xf32>
      %64 = tpu.transpose %63, [1, 0] : vector<128x16xf32> -> vector<16x128xf32>
      %65 = arith.index_cast %8 : i32 to index
      %c0_18 = arith.constant 0 : index
      %c0_19 = arith.constant 0 : index
      %66 = vector.load %arg4[%65, %c0_18, %c0_19] : memref<4x16x256xf32, #tpu.memory_space<vmem>>, vector<1x16x128xf32>
      %67 = vector.shape_cast %66 : vector<1x16x128xf32> to vector<16x128xf32>
      %68 = vector.shape_cast %64 : vector<16x128xf32> to vector<1x16x128xf32>
      tpu.vector_store %arg4[%65, %c0_18, %c0_19], %68 {strides = array<i32>} : memref<4x16x256xf32, #tpu.memory_space<vmem>>, vector<1x16x128xf32>,
      %69 = vector.extract_strided_slice %26 {offsets = [128, 0], sizes = [128, 2], strides = [1, 1]} : vector<256x8xf32> to vector<128x2xf32>
      %70 = vector.extract_strided_slice %26 {offsets = [128, 2], sizes = [128, 1], strides = [1, 1]} : vector<256x8xf32> to vector<128x1xf32>
      %cst_20 = arith.constant 0.000000e+00 : f32
      %71 = vector.broadcast %cst_20 : f32 to vector<128x1xf32>
      %72 = arith.cmpf ogt, %70, %71 : vector<128x1xf32>
      %73 = vector.extract_strided_slice %69 {offsets = [0, 0], sizes = [128, 1], strides = [1, 1]} : vector<128x2xf32> to vector<128x1xf32>
      %74 = vector.extract_strided_slice %17 {offsets = [0, 0], sizes = [1, 256], strides = [1, 1]} : vector<2x256xf32> to vector<1x256xf32>
      %75 = vector.broadcast %73 : vector<128x1xf32> to vector<128x256xf32>
      %76 = vector.broadcast %74 : vector<1x256xf32> to vector<128x256xf32>
      %77 = arith.mulf %75, %76 : vector<128x256xf32>
      %78 = vector.extract_strided_slice %69 {offsets = [0, 1], sizes = [128, 1], strides = [1, 1]} : vector<128x2xf32> to vector<128x1xf32>
      %79 = vector.extract_strided_slice %17 {offsets = [1, 0], sizes = [1, 256], strides = [1, 1]} : vector<2x256xf32> to vector<1x256xf32>
      %80 = vector.broadcast %78 : vector<128x1xf32> to vector<128x256xf32>
      %81 = vector.broadcast %79 : vector<1x256xf32> to vector<128x256xf32>
      %82 = arith.mulf %80, %81 : vector<128x256xf32>
      %83 = arith.addf %77, %82 : vector<128x256xf32>
      %84 = vector.broadcast %72 : vector<128x1xi1> to vector<128x256xi1>
      %85 = vector.broadcast %24 : vector<1x256xi1> to vector<128x256xi1>
      %86 = arith.andi %84, %85 : vector<128x256xi1>
      %cst_21 = arith.constant -1.000000e+09 : f32
      %87 = vector.broadcast %cst_21 : f32 to vector<128x256xf32>
      %88 = arith.select %86, %83, %87 : vector<128x256xi1>, vector<128x256xf32>
      %cst_22 = arith.constant dense<0xFF800000> : vector<128xf32>
      %89 = vector.multi_reduction <maximumf>, %88, %cst_22 [1] : vector<128x256xf32> to vector<128xf32>
      %90 = vector.shape_cast %89 : vector<128xf32> to vector<128x1xf32>
      %91 = vector.broadcast %90 : vector<128x1xf32> to vector<128x256xf32>
      %92 = arith.subf %88, %91 : vector<128x256xf32>
      %93 = math.exp %92 : vector<128x256xf32>
      %cst_23 = arith.constant dense<0.000000e+00> : vector<128xf32>
      %94 = vector.multi_reduction <add>, %93, %cst_23 [1] : vector<128x256xf32> to vector<128xf32>
      %95 = vector.shape_cast %94 : vector<128xf32> to vector<128x1xf32>
      %96 = tpu.reciprocal %95 {approx = true} : vector<128x1xf32> -> vector<128x1xf32>
      %97 = vector.broadcast %96 : vector<128x1xf32> to vector<128x256xf32>
      %98 = arith.mulf %93, %97 : vector<128x256xf32>
      %99 = arith.truncf %98 : vector<128x256xf32> to vector<128x256xbf16>
      %100 = arith.index_cast %8 : i32 to index
      %c128 = arith.constant 128 : index
      %c0_24 = arith.constant 0 : index
      %101 = vector.load %arg5[%100, %c128, %c0_24] : memref<4x256x256xbf16, #tpu.memory_space<vmem>>, vector<1x128x256xbf16>
      %102 = vector.shape_cast %101 : vector<1x128x256xbf16> to vector<128x256xbf16>
      %103 = vector.shape_cast %99 : vector<128x256xbf16> to vector<1x128x256xbf16>
      tpu.vector_store %arg5[%100, %c128, %c0_24], %103 {strides = array<i32>} : memref<4x256x256xbf16, #tpu.memory_space<vmem>>, vector<1x128x256xbf16>,
      %104 = arith.truncf %98 : vector<128x256xf32> to vector<128x256xbf16>
      %cst_25 = arith.constant dense<0.000000e+00> : vector<128x16xf32>
      %105 = tpu.matmul %104, %19, %cst_25 {dimension_numbers = #tpu.dot_dimension_numbers<[1], [0], [0], [1], [0, 0, 1, 1], [], []>} : vector<128x256xbf16>, vector<256x16xbf16>, vector<128x16xf32> -> vector<128x16xf32>
      %106 = tpu.transpose %105, [1, 0] : vector<128x16xf32> -> vector<16x128xf32>
      %107 = arith.index_cast %8 : i32 to index
      %c0_26 = arith.constant 0 : index
      %c128_27 = arith.constant 128 : index
      %108 = vector.load %arg4[%107, %c0_26, %c128_27] : memref<4x16x256xf32, #tpu.memory_space<vmem>>, vector<1x16x128xf32>
      %109 = vector.shape_cast %108 : vector<1x16x128xf32> to vector<16x128xf32>
      %110 = vector.shape_cast %106 : vector<16x128xf32> to vector<1x16x128xf32>
      tpu.vector_store %arg4[%107, %c0_26, %c128_27], %110 {strides = array<i32>} : memref<4x16x256xf32, #tpu.memory_space<vmem>>, vector<1x16x128xf32>,
    }
    %c4_i32_3 = arith.constant 4 : i32
    return
  }
  func.func @transform_0(%arg0: i32) -> (i32, i32, i32) {
    %c0_i32 = arith.constant 0 : i32
    %c0_i32_0 = arith.constant 0 : i32
    %c0_i32_1 = arith.constant 0 : i32
    return %arg0, %c0_i32, %c0_i32_0 : i32, i32, i32
  }
  func.func @transform_1(%arg0: i32) -> (i32, i32) {
    %c0_i32 = arith.constant 0 : i32
    %c0_i32_0 = arith.constant 0 : i32
    %c0_i32_1 = arith.constant 0 : i32
    return %c0_i32, %c0_i32_0 : i32, i32
  }
  func.func @transform_2(%arg0: i32) -> (i32, i32) {
    %c0_i32 = arith.constant 0 : i32
    %c0_i32_0 = arith.constant 0 : i32
    %c0_i32_1 = arith.constant 0 : i32
    return %c0_i32, %c0_i32_0 : i32, i32
  }
  func.func @transform_3(%arg0: i32) -> (i32, i32, i32) {
    %c0_i32 = arith.constant 0 : i32
    %c0_i32_0 = arith.constant 0 : i32
    %c0_i32_1 = arith.constant 0 : i32
    return %arg0, %c0_i32, %c0_i32_0 : i32, i32, i32
  }
  func.func @transform_4(%arg0: i32) -> (i32, i32, i32) {
    %c0_i32 = arith.constant 0 : i32
    %c0_i32_0 = arith.constant 0 : i32
    %c0_i32_1 = arith.constant 0 : i32
    return %arg0, %c0_i32, %c0_i32_0 : i32, i32, i32
  }
}

</mosaic_0001>

<bundles_post_ra>
// kernel: _lambda_.1
= control target key start
LH: loop header
LB: loop body
LE: loop exit
PB: predicated region body
PF: predicated region fallthrough
CT: control target
= control target key end

     0   :  { %10 = vsyncpa [#allocation3], 0  ;;  %s4857_s0 = inlined_call_operand.vmem [shape: f32[8,16,256], index: 0, kind: input, shape index: {}]   ;;  %s4858_s1 = inlined_call_operand.vmem [shape: f32[20,16], index: 1, kind: input, shape index: {}]   ;;  %s4859_s2 = inlined_call_operand.vmem [shape: f32[20,1], index: 2, kind: input, shape index: {}]   ;;  %s4860_s3 = inlined_call_operand.vmem [shape: f32[8,16,256], index: 3, kind: output, shape index: {0}]   ;;  %s4861_s4 = inlined_call_operand.hbm [shape: bf16[8,256,256], index: 4, kind: output, shape index: {1}]  }
   0x1   :  { %12 = vsyncpa [#allocation3 + $0x1], 0  ;;  %s3153_s15 = smov 0   ;;  %s3155_s16 = smov 0  }
   0x2   :  { %s3157_s17 = smov 0   ;;  %s3159_s18 = smov 0  }
   0x3 LB: > { %s3174_s19 = sadd.s32 4294967295, %s3115_s18   ;;  %s2400_s20 = sadd.s32 4294967294, %s3115_s18   ;;  %s3115_s18 = sphi %s3159_s18, %s5034_s18   ;;  %s3111_s17 = sphi %s3157_s17, %s5033_s17   ;;  %s3107_s16 = sphi %s3155_s16, %s5032_s16   ;;  %s3103_s15 = sphi %s3153_s15, %s5031_s15  }
   0x4   : > { %s3178_s21 = sadd.s32 1, %s3115_s18   ;;  %s119_s22 = sadd.s32 1, %s3111_s17 }
   0x5   : > { %s116_s23 = ssub.s32 %s3115_s18, %s3178_s21  ;;  %p129_p0 = scmp.ne.s32.totalorder %s3111_s17, %s3107_s16 }
   0x6   : > { %p117_p1 = scmp.eq.s32.totalorder %s116_s23, 0  ;;  %p130_p2 = scmp.eq.s32.totalorder %s3174_s19, 1 }
   0x7   : > { %p135_p3 = scmp.ne.s32.totalorder %s3107_s16, %s3103_s15  ;;  %p136_p4 = scmp.eq.s32.totalorder %s2400_s20, 1 }
   0x8   : > { %s3189_s24 = scalar_select %p117_p1, %s3111_s17, %s119_s22  }
   0x9   : > { %p3191_p5 = por %p130_p2, %p129_p0  ;;  %p3195_p6 = por %p136_p4, %p135_p3 }
   0xa   : > { %p2403_p7 = scmp.ge.s32.totalorder %s3115_s18, 1  ;;  %p170_p8 = scmp.lt.s32.totalorder %s3115_s18, 3 }
   0xc   : > { %p171_p9 = pnand %p2403_p7, %p170_p8 }
   0xe   : > { %174 = sbr.rel (%p171_p9) target bundleno = 1589 (0x635), region = 32 }
  0x15   : > { %v224_v0 = vld [vmem:[%s4859_s2] sm:$0xff]  ;;  %v226_v1 = vld [vmem:[%s4859_s2 + $0x10] sm:$0xf]  ;;  %s2405_s5 = sshll.u32 %s3174_s19, 2  ;;  %v3121_v2 = vmov 0   ;;  %v225_v3 = vld [vmem:[%s4859_s2 + $0x8] sm:$0xff] }
  0x16   : > { %2677 = vset.pattern.permute.xlu0 %v3121_v2  ;;  %2678 = vset.pattern.permute.xlu1 %v3121_v2  ;;  %p204_p10 = scmp.lt.s32.totalorder %s2405_s5, 7  ;;  %s200_s8 = sand.u32 1, %s3107_s16   ;;  %v3219_v4 = vld [vmem:[%s4858_s1] sm:$0xff]  ;;  %v3224_v5 = vld [vmem:[%s4858_s1 + $0x8] sm:$0xff]  ;;  %v3229_v6 = vld [vmem:[%s4858_s1 + $0x10] sm:$0xf] }
  0x17   : > { %229 = vperm.xlu0 %2677, %v224_v0   ;;  %239 = vperm.xlu1 %2678, %v226_v1   ;;  %s3214_s9 = sshll.u32 %s200_s8, 10  ;;  %4912 = vst [vmem:[#allocation5_spill] sm:$0xff] %v3219_v4  ;;  %4913 = vst [vmem:[#allocation6_spill] sm:$0xff] %v3224_v5  ;;  %s3252_s10 = smov 0  }
  0x18   : > { %4914 = vst [vmem:[#allocation7_spill] sm:$0xff] %v3229_v6  ;;  %s5036_s5 = smov (!%p204_p10, %s2405_s5), 7  ;;  %s202_s7 = scalar_lea.vmem [#allocation2], %s3214_s9 }
  0x19   : > { %s2456_s22 = sshll.u32 %s5036_s5, 5 }
  0x1a   : > { %s3238_s28 = scalar_lea.vmem %s4857_s0, %s2456_s22  ;;  %s3243_s6 = scalar_lea.vmem %s4860_s3, %s2456_s22 }
  0x1b   : > { %234 = vperm.xlu0 %2677, %v225_v3  }
  0x96   : > { %v3245_v9 = vpop.permute.xlu0 %229  ;;  %v3247_v10 = vpop.permute.xlu1 %239 }
  0x97   : > { %4915 = vst [vmem:[#allocation8_spill] sm:$0xff] %v3245_v9  ;;  %4916 = vst [vmem:[#allocation9_spill] sm:$0xff] %v3247_v10 }
  0x9a   : > { %v3249_v11 = vpop.permute.xlu0 %234 }
  0x9b   : > { %4917 = vst [vmem:[#allocation10_spill] sm:$0xff] %v3249_v11 }
  0x9c LB: >> { %v4921_v6 = vld [vmem:[#allocation7_spill] sm:$0xff]  ;;  %v4865_v12 = vmov 0   ;;  %s2458_s5 = sshll.u32 %s3119_s10, 5  ;;  %vm257_vm0 = vcmask 130048   ;;  %v4922_v5 = vld [vmem:[#allocation6_spill] sm:$0xff]  ;;  %v4923_v4 = vld [vmem:[#allocation5_spill] sm:$0xff]  ;;  %s3119_s10 = sphi %s3252_s10, %s247_s10  }
  0x9d   : >> { %296 = vmatprep.mubr.bf16.mxu0 %v4865_v12  ;;  %s250_s11 = scalar_lea.vmem %s3238_s28, %s2458_s5  ;;  %v4924_v7 = vpack.c.bf16 %v4922_v5, %v4923_v4  ;;  %v4925_v8 = vpack.c.bf16 %v4921_v6, %v4921_v6  ;;  %vm415_vm1 = vcmask 1041408   ;;  %vm418_vm2 = vcmask 1042432   ;;  %s2475_s12 = sshll.u32 %s3119_s10, 8 }
  0x9e   : >> { %v4919_v10 = vld [vmem:[#allocation9_spill] sm:$0xff]  ;;  %v4920_v9 = vld [vmem:[#allocation8_spill] sm:$0xff]  ;;  %v252_v13 = vld [vmem:[%s250_s11 + $0x8] sm:$0xff]  ;;  %v4862_v62 = vmov 1   ;;  %v4864_v2 = vmov 2   ;;  %s4702_s13 = scalar_lea.vmem %s202_s7, %s2475_s12 [#allocation2]  ;;  %s1390_s14 = scalar_lea.vmem %s3243_s6, %s2458_s5 }
  0x9f   : >> { %v254_v14 = vld [vmem:[%s250_s11 + $0x18] sm:$0xff]  ;;  %v251_v15 = vld [vmem:[%s250_s11] sm:$0xff]  ;;  %v396_v17 = vand.u32 2147483647, %v252_v13  ;;  %v253_v19 = vld [vmem:[%s250_s11 + $0x10] sm:$0xff]  ;;  %s247_s10 = sadd.s32 1, %s3119_s10  }
  0xa0   : >> { %v256_v16 = vpack.c.bf16 %v254_v14, %v252_v13  ;;  %v398_v18 = vand.u32 2147483647, %v254_v14  ;;  %v255_v20 = vpack.c.bf16 %v253_v19, %v251_v15  ;;  %v395_v21 = vand.u32 2147483647, %v251_v15  ;;  %p244_p11 = scmp.ge.s32.totalorder %s247_s10, 4  }
  0xa1   : >> { %v397_v22 = vand.u32 2147483647, %v253_v19  ;;  %s2494_s20 = sshll.u32 (%p244_p11), %s3174_s19, 14  ;;  %s2301_s29 = sshll.u32 (%p244_p11), %s202_s7, 4  ;;  %s4812_s29 = int_to_ptr.vmem [resolvable:$true] %s2301_s29 }
  0xa2   : >> { %v4918_v11 = vld [vmem:[#allocation10_spill] sm:$0xff]  ;;  %264 = vmatprep.subr.bf16.mxu0 %v256_v16  ;;  %v406_v23 = vadd.f32 %v398_v18, %v396_v17  ;;  %s4808_s27 = scalar_lea.hbm (%p244_p11), %s4861_s4, %s2494_s20  ;;  %s4816_s30 = scalar_lea.sflag (%p244_p11), [#allocation3], %s200_s8 }
  0xa3   : >> { %265 = vmatpush1.bf16.msra.mxu0 %v255_v20  ;;  %v399_v24 = vadd.f32 %v397_v22, %v395_v21  ;;  %s3049_s28 = scalar_lea.vmem (%p244_p11), %s4812_s29, 16384  ;;  %s3125_s19 = smov (%p244_p11), [#allocation2]  }
  0xa4   : >> { %v407_v48 = vrot.slane %v406_v23, 4  ;;  %p3050_p12 = scmp.ne.s32.totalorder (%p244_p11), %s4812_s29, %s3049_s28  ;;  %s3053_s6 = sshll.u32 (%p244_p11), %s3125_s19, 4  ;;  %s3054_s6 = int_to_ptr.vmem [resolvable:$false] %s3053_s6 }
  0xa5   : >> { %v400_v25 = vrot.slane %v399_v24, 4  ;;  %s3055_s10 = scalar_lea.vmem (%p244_p11), %s3054_s6, 32768  ;;  %p3056_p1 = scmp.lt.s32.totalorder (%p244_p11), %s4812_s29, %s3054_s6 }
  0xa6   : >> { %2413 = vmatmul.mubr.msk.bf16.vlgmr.msra.gmra.mrb[0].mxu0 %vm257_vm0, %v4924_v7  ;;  %v408_v49 = vadd.f32 %v407_v48, %v406_v23  ;;  %p3051_p13 = pnand (%p244_p11), %p3050_p12, %p3191_p5  ;;  %p3057_p2 = scmp.lt.s32.totalorder (%p244_p11), %s3055_s10, %s3049_s28 }
  0xa7   : >> { %306 = vmatprep.mubr.bf16.mxu0 %v4865_v12  ;;  %v401_v26 = vadd.f32 %v400_v25, %v399_v24 }
  0xa8   : >> { %v409_v50 = vrot.slane %v408_v49, 2  ;;  %p3052_p0 = pneg (%p244_p11), %p3051_p13  ;;  %p3058_p3 = por (%p244_p11), %p3057_p2, %p3056_p1 }
  0xa9   : >> { %v402_v27 = vrot.slane %v401_v26, 2 }
  0xaa   : >> { %v410_v51 = vadd.f32 %v409_v50, %v408_v49  ;;  %p3059_p4 = pnand (%p244_p11), %p3058_p3, %p3052_p0 }
  0xab   : >> { %v403_v28 = vadd.f32 %v402_v27, %v401_v26 }
  0xac   : >> { %v411_v52 = vrot.slane %v410_v51, 1 }
  0xad   : >> { %v404_v36 = vrot.slane %v403_v28, 1 }
  0xae   : >> { %2414 = vmatmul.mubr.msk.bf16.gmra.mrb[4].mxu0 %vm257_vm0, %v4925_v8  ;;  %v3286_v54 = vadd.f32 %v411_v52, %v410_v51 }
  0xaf   : >> { %v3273_v40 = vadd.f32 %v404_v36, %v403_v28 }
 0x179   : >> { %v298_v29 = vpop.f32.mrb[0].mxu0 }
 0x17a   : >> { %v299_v30 = vadd.f32 %v298_v29, %v4920_v9  ;;  %v300_v31 = vpop.f32.mrb[1].mxu0 }
 0x17b   : >> { %v301_v32 = vadd.f32 %v300_v31, %v4920_v9  ;;  %v302_v33 = vpop.f32.mrb[2].mxu0 }
 0x17c   : >> { %v303_v34 = vadd.f32 %v302_v33, %v4918_v11  ;;  %v304_v35 = vpop.f32.mrb[3].mxu0 }
 0x17d   : >> { %v305_v37 = vadd.f32 %v304_v35, %v4918_v11  ;;  %v2679_v38 = vpack.i.bf16 %v301_v32, %v299_v30 }
 0x17f   : >> { %2680 = vxpose.xlu0.b32.start [1/2] (short) %v2679_v38, 128  ;;  %v2681_v39 = vpack.i.bf16 %v305_v37, %v303_v34 }
 0x181   : >> { %v308_v41 = vpop.f32.mrb[4].mxu0 }
 0x182   : >> { %v3276_v42 = vadd.f32 %v308_v41, %v4919_v10  ;;  %v310_v43 = vpop.f32.mrb[5].mxu0 }
 0x183   : >> { %v312_v44 = vpop.f32.mrb[6].mxu0  ;;  %2682 = vxpose.xlu0.b32.end [2/2] (short) %v2681_v39, 128  ;;  %v3284_v53 = vadd.f32 %v310_v43, %v4919_v10 }
 0x184   : >> { %v313_v45 = vpop.f32.mrb[7].mxu0  ;;  %v416_v46 = vsel %vm415_vm1, %v3276_v42, %v3273_v40 }
 0x185   : >> { %v419_v47 = vsel %vm418_vm2, %v416_v46, 0.0  ;;  %v417_v55 = vsel %vm415_vm1, %v3284_v53, %v3286_v54 }
 0x186   : >> { %421 = vxpose.xlu1.b32.start.end [1/1] (short) %v419_v47, 128  ;;  %v420_v56 = vsel %vm418_vm2, %v417_v55, 0.0 }
 0x1ac   : >> { %2763 = vset.pattern.permute.xlu0 %v4865_v12 }
 0x1c3   : >> { %453 = vxpose.xlu1.b32.start.end [1/1] (short) %v420_v56, 128 }
 0x1e1   : >> { %2765 = vset.pattern.permute.xlu1 %v4865_v12 }
 0x1ff   : >> { %v2683_v57 = vpop.trf.xlu0 }
 0x200   : >> { %v2687_v39 = vunpack.i.h.bf16 %v2683_v57  ;;  %v2684_v43 = vunpack.i.l.bf16 %v2683_v57 }
 0x203   : >> { %v2688_v58 = vpop.trf.xlu0 }
 0x204   : >> { %v2692_v38 = vunpack.i.h.bf16 %v2688_v58  ;;  %v2689_v41 = vunpack.i.l.bf16 %v2688_v58 }
 0x206   : >> { %v437_v59 = vpop.trf.xlu1  ;;  %v387_v45 = vpack.c.bf16 %v2692_v38, %v2687_v39  ;;  %v379_v46 = vpack.c.bf16 %v2689_v41, %v2684_v43 }
 0x207   : >> { %503 = vperm.xlu0 %2763, %v437_v59   ;;  %v3293_v60 = vpop.trf.xlu0  ;;  %vm485_vm3 = vcmp.gt.f32.partialorder %v437_v59, 0.0 }
 0x208   : >> { %v757_v3 = vsel %vm485_vm3, 1, %v4865_v12  ;;  %2495 = vmatprep.subr.bf16.mxu1 %v387_v45  ;;  %2559 = vmatprep.subr.bf16.mxu0 %v387_v45  ;;  %v2697_v50 = vunpack.i.h.bf16 %v3293_v60  ;;  %v2694_v52 = vunpack.i.l.bf16 %v3293_v60 }
 0x209   : >> { %2496 = vmatpush3.bf16.msra.mxu1 %v379_v46  ;;  %2560 = vmatpush3.bf16.msra.mxu0 %v379_v46 }
 0x20a   : >> { %v3295_v61 = vpop.trf.xlu1 }
 0x20b   : >> { %2764 = vset.pattern.permute.xlu0 %v4862_v62  ;;  %v3298_v63 = vpop.trf.xlu0  ;;  %vm486_vm7 = vcmp.gt.f32.partialorder %v3295_v61, 0.0 }
 0x20c   : >> { %622 = vperm.xlu0 %2764, %v437_v59   ;;  %v2702_v49 = vunpack.i.h.bf16 %v3298_v63  ;;  %v2699_v51 = vunpack.i.l.bf16 %v3298_v63 }
 0x20e   : >> { %v3300_v0 = vpop.trf.xlu1  ;;  %v388_v55 = vpack.c.bf16 %v2702_v49, %v2697_v50  ;;  %v380_v56 = vpack.c.bf16 %v2699_v51, %v2694_v52 }
 0x20f   : >> { %v3302_v1 = vpop.trf.xlu0  ;;  %vm487_vm6 = vcmp.gt.f32.partialorder %v3300_v0, 0.0 }
 0x210   : >> { %2767 = vset.pattern.permute.xlu0 %v4864_v2  ;;  %2497 = vmatprep.subr.bf16.mxu1 %v388_v55  ;;  %v2707_v58 = vunpack.i.h.bf16 %v3302_v1  ;;  %v759_v59 = vsel %vm487_vm6, 1, %v4865_v12  ;;  %v2704_v63 = vunpack.i.l.bf16 %v3302_v1 }
 0x211   : >> { %774 = vperm.xlu0 %2767, %v757_v3   ;;  %2561 = vmatprep.subr.bf16.mxu0 %v388_v55 }
 0x212   : >> { %v3306_v13 = vpop.trf.xlu1  ;;  %2498 = vmatpush3.bf16.msra.mxu1 %v380_v56  ;;  %2562 = vmatpush3.bf16.msra.mxu0 %v380_v56 }
 0x213   : >> { %v3308_v14 = vpop.trf.xlu0  ;;  %vm488_vm11 = vcmp.gt.f32.partialorder %v3306_v13, 0.0 }
 0x214   : >> { %v2712_v57 = vunpack.i.h.bf16 %v3308_v14  ;;  %v2709_v60 = vunpack.i.l.bf16 %v3308_v14 }
 0x215   : >> { %2771 = vset.pattern.permute.xlu0 %v4865_v12 }
 0x216   : >> { %v3311_v15 = vpop.trf.xlu1  ;;  %v389_v3 = vpack.c.bf16 %v2712_v57, %v2707_v58 }
 0x217   : >> { %v3313_v16 = vpop.trf.xlu0  ;;  %vm489_vm10 = vcmp.gt.f32.partialorder %v3311_v15, 0.0 }
 0x218   : >> { %2499 = vmatprep.subr.bf16.mxu1 %v389_v3  ;;  %2563 = vmatprep.subr.bf16.mxu0 %v389_v3  ;;  %v2717_v38 = vunpack.i.h.bf16 %v3313_v16  ;;  %v2714_v41 = vunpack.i.l.bf16 %v3313_v16 }
 0x21a   : >> { %v3315_v17 = vpop.trf.xlu1 }
 0x21b   : >> { %v3317_v18 = vpop.trf.xlu0  ;;  %vm490_vm15 = vcmp.gt.f32.partialorder %v3315_v17, 0.0 }
 0x21c   : >> { %v2722_v1 = vunpack.i.h.bf16 %v3317_v18  ;;  %v2719_v39 = vunpack.i.l.bf16 %v3317_v18 }
 0x21e   : >> { %v3319_v19 = vpop.trf.xlu1  ;;  %v390_v43 = vpack.c.bf16 %v2722_v1, %v2717_v38  ;;  %v382_v45 = vpack.c.bf16 %v2719_v39, %v2714_v41 }
 0x21f   : >> { %v3321_v20 = vpop.trf.xlu0  ;;  %vm491_vm14 = vcmp.gt.f32.partialorder %v3319_v19, 0.0 }
 0x220   : >> { %v2727_v18 = vunpack.i.h.bf16 %v3321_v20 }
 0x222   : >> { %v3323_v21 = vpop.trf.xlu1 }
 0x223   : >> { %v3325_v22 = vpop.trf.xlu0  ;;  %vm492_vm3 = vcmp.gt.f32.partialorder %v3323_v21, 0.0 }
 0x224   : >> { %v2732_v16 = vunpack.i.h.bf16 %v3325_v22  ;;  %v2729_v46 = vunpack.i.l.bf16 %v3325_v22 }
 0x226   : >> { %v3327_v23 = vpop.trf.xlu1 }
 0x227   : >> { %v3329_v24 = vpop.trf.xlu0  ;;  %vm493_vm2 = vcmp.gt.f32.partialorder %v3327_v23, 0.0 }
 0x228   : >> { %v2737_v22 = vunpack.i.h.bf16 %v3329_v24  ;;  %v2734_v51 = vunpack.i.l.bf16 %v3329_v24 }
 0x22a   : >> { %v3331_v25 = vpop.trf.xlu1 }
 0x22b   : >> { %v3333_v26 = vpop.trf.xlu0 }
 0x22e   : >> { %v3335_v27 = vpop.trf.xlu1 }
 0x22f   : >> { %v3337_v28 = vpop.trf.xlu0  ;;  %vm495_vm6 = vcmp.gt.f32.partialorder %v3335_v27, 0.0 }
 0x230   : >> { %v2747_v57 = vunpack.i.h.bf16 %v3337_v28 }
 0x232   : >> { %v3339_v29 = vpop.trf.xlu1 }
 0x233   : >> { %v3341_v30 = vpop.trf.xlu0 }
 0x234   : >> { %v2752_v56 = vunpack.i.h.bf16 %v3341_v30  ;;  %v2749_v58 = vunpack.i.l.bf16 %v3341_v30 }
 0x236   : >> { %v3343_v31 = vpop.trf.xlu1 }
 0x237   : >> { %v3345_v32 = vpop.trf.xlu0 }
 0x23a   : >> { %v3347_v33 = vpop.trf.xlu1 }
 0x23b   : >> { %v3349_v34 = vpop.trf.xlu0 }
 0x23c   : >> { %v2762_v30 = vunpack.i.h.bf16 %v3349_v34 }
 0x23e   : >> { %v3351_v35 = vpop.trf.xlu1 }
 0x242   : >> { %v3353_v36 = vpop.trf.xlu1 }
 0x246   : >> { %v469_v37 = vpop.trf.xlu1 }
 0x247   : >> { %1411 = vperm.xlu1 %2765, %v469_v37   ;;  %vm1393_vm5 = vcmp.gt.f32.partialorder %v469_v37, 0.0 }
 0x248   : >> { %v1649_v48 = vsel %vm1393_vm5, 1, %v4865_v12 }
 0x24a   : >> { %v470_v44 = vpop.trf.xlu1 }
 0x24b   : >> { %2766 = vset.pattern.permute.xlu1 %v4862_v62  ;;  %1416 = vperm.xlu0 %2771, %v470_v44   ;;  %vm1394_vm4 = vcmp.gt.f32.partialorder %v470_v44, 0.0 }
 0x24c   : >> { %1522 = vperm.xlu1 %2766, %v469_v37   ;;  %v1650_v47 = vsel %vm1394_vm4, 1, %v4865_v12  ;;  %v381_v37 = vpack.c.bf16 %v2709_v60, %v2704_v63  ;;  %v393_v60 = vpack.c.bf16 %v2752_v56, %v2747_v57 }
 0x24e   : >> { %2500 = vmatpush3.bf16.msra.mxu1 %v381_v37  ;;  %2564 = vmatpush3.bf16.msra.mxu0 %v381_v37  ;;  %v471_v14 = vpop.trf.xlu1  ;;  %v2757_v37 = vunpack.i.h.bf16 %v3345_v32 }
 0x24f   : >> { %2773 = vset.pattern.permute.xlu0 %v4864_v2  ;;  %2501 = vmatprep.subr.bf16.mxu1 %v390_v43  ;;  %vm1395_vm9 = vcmp.gt.f32.partialorder %v471_v14, 0.0 }
 0x250   : >> { %2768 = vset.pattern.permute.xlu1 %v4864_v2  ;;  %1669 = vperm.xlu0 %2773, %v1650_v47   ;;  %v2724_v47 = vunpack.i.l.bf16 %v3321_v20  ;;  %v2739_v20 = vunpack.i.l.bf16 %v3333_v26  ;;  %v1651_v24 = vsel %vm1395_vm9, 1, %v4865_v12  ;;  %v394_v38 = vpack.c.bf16 %v2762_v30, %v2757_v37 }
 0x251   : >> { %1666 = vperm.xlu1 %2768, %v1649_v48   ;;  %2565 = vmatprep.subr.bf16.mxu0 %v390_v43  ;;  %v391_v48 = vpack.c.bf16 %v2732_v16, %v2727_v18  ;;  %v763_v43 = vsel %vm491_vm14, 1, %v4865_v12  ;;  %vm499_vm14 = vcmp.gt.f32.partialorder %v3351_v35, 0.0 }
 0x252   : >> { %2502 = vmatpush3.bf16.msra.mxu1 %v382_v45  ;;  %2566 = vmatpush3.bf16.msra.mxu0 %v382_v45  ;;  %v383_v50 = vpack.c.bf16 %v2729_v46, %v2724_v47  ;;  %v384_v55 = vpack.c.bf16 %v2739_v20, %v2734_v51  ;;  %v765_v47 = vsel %vm493_vm2, 1, %v4865_v12 }
 0x253   : >> { %2503 = vmatprep.subr.bf16.mxu1 %v391_v48  ;;  %2567 = vmatprep.subr.bf16.mxu0 %v391_v48 }
 0x254   : >> { %2774 = vset.pattern.permute.xlu0 %v4865_v12 }
 0x255   : >> { %2769 = vset.pattern.permute.xlu1 %v4865_v12  ;;  %513 = vperm.xlu0 %2774, %v3300_v0  }
 0x256   : >> { %508 = vperm.xlu1 %2769, %v3295_v61   ;;  %2504 = vmatpush3.bf16.msra.mxu1 %v383_v50 }
 0x257   : >> { %2568 = vmatpush3.bf16.msra.mxu0 %v383_v50 }
 0x259   : >> { %2778 = vset.pattern.permute.xlu0 %v4864_v2 }
 0x25a   : >> { %2770 = vset.pattern.permute.xlu1 %v4862_v62  ;;  %780 = vperm.xlu0 %2778, %v759_v59   ;;  %v2744_v59 = vunpack.i.l.bf16 %v3337_v28  ;;  %v760_v28 = vsel %vm488_vm11, 1, %v4865_v12  ;;  %vm496_vm11 = vcmp.gt.f32.partialorder %v3339_v29, 0.0 }
 0x25b   : >> { %626 = vperm.xlu1 %2770, %v3295_v61   ;;  %v472_v61 = vpop.trf.xlu1 }
 0x25c   : >> { %vm1396_vm8 = vcmp.gt.f32.partialorder %v472_v61, 0.0  ;;  %v385_v63 = vpack.c.bf16 %v2749_v58, %v2744_v59  ;;  %v767_v59 = vsel %vm495_vm6, 1, %v4865_v12 }
 0x25d   : >> { %v1652_v49 = vsel %vm1396_vm8, 1, %v4865_v12 }
 0x25e   : >> { %2780 = vset.pattern.permute.xlu0 %v4865_v12 }
 0x25f   : >> { %1526 = vperm.xlu1 %2770, %v470_v44   ;;  %518 = vperm.xlu0 %2780, %v3306_v13   ;;  %v758_v44 = vsel %vm486_vm7, 1, %v4865_v12  ;;  %v473_v3 = vpop.trf.xlu1  ;;  %vm494_vm7 = vcmp.gt.f32.partialorder %v3331_v25, 0.0 }
 0x260   : >> { %vm1397_vm13 = vcmp.gt.f32.partialorder %v473_v3, 0.0 }
 0x263   : >> { %2772 = vset.pattern.permute.xlu1 %v4864_v2  ;;  %2781 = vset.pattern.permute.xlu0 %v4862_v62  ;;  %v474_v1 = vpop.trf.xlu1 }
 0x264   : >> { %777 = vperm.xlu1 %2772, %v758_v44   ;;  %634 = vperm.xlu0 %2781, %v3306_v13   ;;  %v2759_v13 = vunpack.i.l.bf16 %v3349_v34  ;;  %vm1398_vm12 = vcmp.gt.f32.partialorder %v474_v1, 0.0 }
 0x265   : >> { %v1654_v41 = vsel %vm1398_vm12, 1, %v4865_v12 }
 0x267   : >> { %v475_v34 = vpop.trf.xlu1 }
 0x268   : >> { %2775 = vset.pattern.permute.xlu1 %v4862_v62  ;;  %2782 = vset.pattern.permute.xlu0 %v4865_v12  ;;  %vm1399_vm1 = vcmp.gt.f32.partialorder %v475_v34, 0.0 }
 0x269   : >> { %630 = vperm.xlu1 %2775, %v3300_v0   ;;  %1426 = vperm.xlu0 %2782, %v472_v61   ;;  %v2742_v0 = vunpack.i.h.bf16 %v3333_v26  ;;  %v761_v26 = vsel %vm489_vm10, 1, %v4865_v12  ;;  %vm497_vm10 = vcmp.gt.f32.partialorder %v3343_v31, 0.0 }
 0x26b   : >> { %v392_v52 = vpack.c.bf16 %v2742_v0, %v2737_v22  ;;  %v764_v0 = vsel %vm492_vm3, 1, %v4865_v12  ;;  %vm413_vm3 = vcmp.gt.f32.partialorder %v3273_v40, 0.0 }
 0x26d   : >> { %2776 = vset.pattern.permute.xlu1 %v4865_v12  ;;  %2785 = vset.pattern.permute.xlu0 %v4864_v2 }
 0x26e   : >> { %1421 = vperm.xlu1 %2776, %v471_v14   ;;  %1675 = vperm.xlu0 %2785, %v1652_v49  }
 0x26f   : >> { %2505 = vmatprep.subr.bf16.mxu1 %v392_v52  ;;  %2569 = vmatprep.subr.bf16.mxu0 %v392_v52 }
 0x270   : >> { %2506 = vmatpush3.bf16.msra.mxu1 %v384_v55  ;;  %2570 = vmatpush3.bf16.msra.mxu0 %v384_v55 }
 0x271   : >> { %2507 = vmatprep.subr.bf16.mxu1 %v393_v60  ;;  %2571 = vmatprep.subr.bf16.mxu0 %v393_v60 }
 0x272   : >> { %2777 = vset.pattern.permute.xlu1 %v4862_v62  ;;  %2786 = vset.pattern.permute.xlu0 %v4865_v12 }
 0x273   : >> { %1530 = vperm.xlu1 %2777, %v471_v14   ;;  %523 = vperm.xlu0 %2786, %v3311_v15   ;;  %v2754_v14 = vunpack.i.l.bf16 %v3345_v32  ;;  %v476_v32 = vpop.trf.xlu1 }
 0x274   : >> { %2508 = vmatpush3.bf16.msra.mxu1 %v385_v63  ;;  %2572 = vmatpush3.bf16.msra.mxu0 %v385_v63  ;;  %vm1400_vm0 = vcmp.gt.f32.partialorder %v476_v32, 0.0 }
 0x275   : >> { %v386_v39 = vpack.c.bf16 %v2759_v13, %v2754_v14  ;;  %2509 = vmatprep.subr.bf16.mxu1 %v394_v38  ;;  %2573 = vmatprep.subr.bf16.mxu0 %v394_v38 }
 0x277   : >> { %2779 = vset.pattern.permute.xlu1 %v4864_v2  ;;  %2790 = vset.pattern.permute.xlu0 %v4864_v2  ;;  %v3440_v44 = vpop.trf.xlu1 }
 0x278   : >> { %1672 = vperm.xlu1 %2779, %v1651_v24   ;;  %786 = vperm.xlu0 %2790, %v761_v26   ;;  %vm1401_vm5 = vcmp.gt.f32.partialorder %v3440_v44, 0.0 }
 0x279   : >> { %2510 = vmatpush3.bf16.msra.mxu1 %v386_v39  ;;  %2574 = vmatpush3.bf16.msra.mxu0 %v386_v39  ;;  %v1657_v56 = vsel %vm1401_vm5, 1, %v4865_v12 }
 0x27b   : >> { %v3446_v45 = vpop.trf.xlu1 }
 0x27c   : >> { %2783 = vset.pattern.permute.xlu1 %v4862_v62  ;;  %2792 = vset.pattern.permute.xlu0 %v4865_v12  ;;  %vm1402_vm4 = vcmp.gt.f32.partialorder %v3446_v45, 0.0 }
 0x27d   : >> { %1534 = vperm.xlu1 %2783, %v472_v61   ;;  %528 = vperm.xlu0 %2792, %v3315_v17   ;;  %v762_v61 = vsel %vm490_vm15, 1, %v4865_v12  ;;  %vm498_vm15 = vcmp.gt.f32.partialorder %v3347_v33, 0.0 }
 0x27f   : >> { %v3452_v16 = vpop.trf.xlu1 }
 0x280   : >> { %vm1403_vm9 = vcmp.gt.f32.partialorder %v3452_v16, 0.0 }
 0x281   : >> { %2784 = vset.pattern.permute.xlu1 %v4864_v2  ;;  %2793 = vset.pattern.permute.xlu0 %v4862_v62 }
 0x282   : >> { %783 = vperm.xlu1 %2784, %v760_v28   ;;  %642 = vperm.xlu0 %2793, %v3315_v17   ;;  %v1656_v17 = vsel %vm1400_vm0, 1, %v4865_v12 }
 0x283   : >> { %v3458_v18 = vpop.trf.xlu1 }
 0x284   : >> { %vm1404_vm8 = vcmp.gt.f32.partialorder %v3458_v18, 0.0 }
 0x285   : >> { %v1660_v13 = vsel %vm1404_vm8, 1, %v4865_v12  ;;  %vm500_vm8 = vcmp.gt.f32.partialorder %v3353_v36, 0.0 }
 0x286   : >> { %2787 = vset.pattern.permute.xlu1 %v4862_v62  ;;  %2794 = vset.pattern.permute.xlu0 %v4865_v12  ;;  %v3480_v50 = vpop.permute.xlu0 %503 }
 0x287   : >> { %638 = vperm.xlu1 %2787, %v3311_v15   ;;  %1436 = vperm.xlu0 %2794, %v474_v1   ;;  %v1653_v15 = vsel %vm1397_vm13, 1, %v4865_v12  ;;  %v3464_v46 = vpop.trf.xlu1 }
 0x288   : >> { %vm1405_vm13 = vcmp.gt.f32.partialorder %v3464_v46, 0.0 }
 0x28b   : >> { %2788 = vset.pattern.permute.xlu1 %v4865_v12  ;;  %2797 = vset.pattern.permute.xlu0 %v4864_v2  ;;  %v3472_v48 = vpop.trf.xlu1  ;;  %v3488_v20 = vpop.permute.xlu0 %622 }
 0x28c   : >> { %1431 = vperm.xlu1 %2788, %v473_v3   ;;  %1681 = vperm.xlu0 %2797, %v1654_v41   ;;  %vm1406_vm12 = vcmp.gt.f32.partialorder %v3472_v48, 0.0 }
 0x28f   : >> { %v3478_v49 = vpop.trf.xlu1 }
 0x290   : >> { %2789 = vset.pattern.permute.xlu1 %v4862_v62  ;;  %2798 = vset.pattern.permute.xlu0 %v4865_v12  ;;  %v3498_v52 = vpop.permute.xlu0 %774 }
 0x291   : >> { %1538 = vperm.xlu1 %2789, %v473_v3   ;;  %533 = vperm.xlu0 %2798, %v3319_v19   ;;  %v766_v3 = vsel %vm494_vm7, 1, %v4865_v12 }
 0x293   : >> { %v3486_v22 = vpop.trf.xlu1 }
 0x294   : >> { %vm1408_vm0 = vcmp.gt.f32.partialorder %v3486_v22, 0.0 }
 0x295   : >> { %2791 = vset.pattern.permute.xlu1 %v4864_v2  ;;  %2802 = vset.pattern.permute.xlu0 %v4864_v2 }
 0x296   : >> { %1678 = vperm.xlu1 %2791, %v1653_v15   ;;  %792 = vperm.xlu0 %2802, %v763_v43  }
 0x29a   : >> { %2795 = vset.pattern.permute.xlu1 %v4862_v62  ;;  %2804 = vset.pattern.permute.xlu0 %v4865_v12 }
 0x29b   : >> { %1542 = vperm.xlu1 %2795, %v474_v1   ;;  %538 = vperm.xlu0 %2804, %v3323_v21   ;;  %v1659_v1 = vsel %vm1403_vm9, 1, %v4865_v12 }
 0x29f   : >> { %2796 = vset.pattern.permute.xlu1 %v4864_v2  ;;  %2805 = vset.pattern.permute.xlu0 %v4862_v62 }
 0x2a0   : >> { %789 = vperm.xlu1 %2796, %v762_v61   ;;  %650 = vperm.xlu0 %2805, %v3323_v21   ;;  %v1658_v21 = vsel %vm1402_vm4, 1, %v4865_v12  ;;  %vm414_vm4 = vcmp.gt.f32.partialorder %v3286_v54, 0.0 }
 0x2a4   : >> { %2799 = vset.pattern.permute.xlu1 %v4862_v62  ;;  %2806 = vset.pattern.permute.xlu0 %v4865_v12 }
 0x2a5   : >> { %646 = vperm.xlu1 %2799, %v3319_v19   ;;  %1446 = vperm.xlu0 %2806, %v476_v32   ;;  %v1655_v19 = vsel %vm1399_vm1, 1, %v4865_v12  ;;  %vm1407_vm1 = vcmp.gt.f32.partialorder %v3478_v49, 0.0 }
 0x2a9   : >> { %2800 = vset.pattern.permute.xlu1 %v4865_v12  ;;  %2809 = vset.pattern.permute.xlu0 %v4864_v2 }
 0x2aa   : >> { %1441 = vperm.xlu1 %2800, %v475_v34   ;;  %1687 = vperm.xlu0 %2809, %v1656_v17   ;;  %v1662_v17 = vsel %vm1406_vm12, 1, %v4865_v12 }
 0x2ae   : >> { %2801 = vset.pattern.permute.xlu1 %v4862_v62  ;;  %2810 = vset.pattern.permute.xlu0 %v4865_v12 }
 0x2af   : >> { %1546 = vperm.xlu1 %2801, %v475_v34   ;;  %543 = vperm.xlu0 %2810, %v3327_v23  }
 0x2b3   : >> { %2803 = vset.pattern.permute.xlu1 %v4864_v2  ;;  %2814 = vset.pattern.permute.xlu0 %v4864_v2 }
 0x2b4   : >> { %1684 = vperm.xlu1 %2803, %v1655_v19   ;;  %798 = vperm.xlu0 %2814, %v765_v47   ;;  %v1661_v19 = vsel %vm1405_vm13, 1, %v4865_v12 }
 0x2b8   : >> { %2807 = vset.pattern.permute.xlu1 %v4862_v62  ;;  %2816 = vset.pattern.permute.xlu0 %v4865_v12 }
 0x2b9   : >> { %1550 = vperm.xlu1 %2807, %v476_v32   ;;  %548 = vperm.xlu0 %2816, %v3331_v25   ;;  %v769_v32 = vsel %vm497_vm10, 1, %v4865_v12 }
 0x2bd   : >> { %2808 = vset.pattern.permute.xlu1 %v4864_v2  ;;  %2817 = vset.pattern.permute.xlu0 %v4862_v62 }
 0x2be   : >> { %795 = vperm.xlu1 %2808, %v764_v0   ;;  %658 = vperm.xlu0 %2817, %v3331_v25  }
 0x2c2   : >> { %2811 = vset.pattern.permute.xlu1 %v4862_v62  ;;  %2818 = vset.pattern.permute.xlu0 %v4865_v12 }
 0x2c3   : >> { %654 = vperm.xlu1 %2811, %v3327_v23   ;;  %1456 = vperm.xlu0 %2818, %v3446_v45  }
 0x2c6   : >> { %v3496_v51 = vpop.permute.xlu1 %1411 }
 0x2c7   : >> { %2812 = vset.pattern.permute.xlu1 %v4865_v12  ;;  %2821 = vset.pattern.permute.xlu0 %v4864_v2 }
 0x2c8   : >> { %1451 = vperm.xlu1 %2812, %v3440_v44   ;;  %1693 = vperm.xlu0 %2821, %v1658_v21  }
 0x2ca   : >> { %v3503_v55 = vpop.permute.xlu0 %1416 }
 0x2cb   : >> { %v3505_v24 = vpop.permute.xlu1 %1522 }
 0x2cc   : >> { %2813 = vset.pattern.permute.xlu1 %v4862_v62  ;;  %2822 = vset.pattern.permute.xlu0 %v4865_v12 }
 0x2cd   : >> { %1554 = vperm.xlu1 %2813, %v3440_v44   ;;  %553 = vperm.xlu0 %2822, %v3335_v27   ;;  %v768_v44 = vsel %vm496_vm11, 1, %v4865_v12 }
 0x2cf   : >> { %v3512_v23 = vpop.permute.xlu0 %1669 }
 0x2d0   : >> { %v3514_v26 = vpop.permute.xlu1 %1666 }
 0x2d1   : >> { %2815 = vset.pattern.permute.xlu1 %v4864_v2  ;;  %2825 = vset.pattern.permute.xlu0 %v4862_v62  ;;  %vm1713_vm2 = vcmp.eq.s32.totalorder %v3514_v26, 1 }
 0x2d2   : >> { %1690 = vperm.xlu1 %2815, %v1657_v56   ;;  %1562 = vperm.xlu0 %2825, %v3452_v16   ;;  %v771_v56 = vsel %vm499_vm14, 1, %v4865_v12  ;;  %vm1729_vm5 = vmand %vm1713_vm2, %vm413_vm3 }
 0x2d3   : >> { %vm1730_vm6 = vmand %vm1713_vm2, %vm414_vm4 }
 0x2d4   : >> { %v3521_v57 = vpop.permute.xlu0 %513 }
 0x2d5   : >> { %v3523_v58 = vpop.permute.xlu1 %508 }
 0x2d6   : >> { %2819 = vset.pattern.permute.xlu1 %v4862_v62  ;;  %2826 = vset.pattern.permute.xlu0 %v4864_v2 }
 0x2d7   : >> { %1558 = vperm.xlu1 %2819, %v3446_v45   ;;  %804 = vperm.xlu0 %2826, %v767_v59  }
 0x2d9   : >> { %v3530_v60 = vpop.permute.xlu0 %780 }
 0x2da   : >> { %v3532_v63 = vpop.permute.xlu1 %626  ;;  %vm823_vm11 = vcmp.eq.s32.totalorder %v3530_v60, 1 }
 0x2db   : >> { %2820 = vset.pattern.permute.xlu1 %v4864_v2  ;;  %2828 = vset.pattern.permute.xlu0 %v4865_v12  ;;  %vm845_vm12 = vmand %vm823_vm11, %vm413_vm3 }
 0x2dc   : >> { %801 = vperm.xlu1 %2820, %v766_v3   ;;  %558 = vperm.xlu0 %2828, %v3339_v29   ;;  %vm846_vm14 = vmand %vm823_vm11, %vm414_vm4 }
 0x2de   : >> { %v3538_v28 = vpop.permute.xlu1 %1526  ;;  %v3540_v30 = vpop.permute.xlu0 %518 }
 0x2e0   : >> { %2823 = vset.pattern.permute.xlu1 %v4862_v62  ;;  %2829 = vset.pattern.permute.xlu0 %v4862_v62 }
 0x2e1   : >> { %662 = vperm.xlu1 %2823, %v3335_v27   ;;  %666 = vperm.xlu0 %2829, %v3339_v29  }
 0x2e3   : >> { %v3547_v25 = vpop.permute.xlu1 %777  ;;  %v3549_v37 = vpop.permute.xlu0 %634 }
 0x2e4   : >> { %vm822_vm7 = vcmp.eq.s32.totalorder %v3547_v25, 1 }
 0x2e5   : >> { %2824 = vset.pattern.permute.xlu1 %v4865_v12  ;;  %2833 = vset.pattern.permute.xlu0 %v4864_v2  ;;  %vm843_vm9 = vmand %vm822_vm7, %vm413_vm3 }
 0x2e6   : >> { %1461 = vperm.xlu1 %2824, %v3452_v16   ;;  %1699 = vperm.xlu0 %2833, %v1660_v13   ;;  %v770_v13 = vsel %vm498_vm15, 1, %v4865_v12  ;;  %vm844_vm10 = vmand %vm822_vm7, %vm414_vm4 }
 0x2e8   : >> { %v3556_v27 = vpop.permute.xlu1 %630  ;;  %v3558_v14 = vpop.permute.xlu0 %1426 }
 0x2ea   : >> { %2827 = vset.pattern.permute.xlu1 %v4864_v2  ;;  %2834 = vset.pattern.permute.xlu0 %v4865_v12 }
 0x2eb   : >> { %1696 = vperm.xlu1 %2827, %v1659_v1   ;;  %563 = vperm.xlu0 %2834, %v3343_v31  }
 0x2ed   : >> { %v3564_v38 = vpop.permute.xlu1 %1421  ;;  %v3566_v39 = vpop.permute.xlu0 %1675 }
 0x2ef   : >> { %2830 = vset.pattern.permute.xlu1 %v4865_v12  ;;  %2837 = vset.pattern.permute.xlu0 %v4862_v62 }
 0x2f0   : >> { %1466 = vperm.xlu1 %2830, %v3458_v18   ;;  %1570 = vperm.xlu0 %2837, %v3464_v46  }
 0x2f2   : >> { %v3573_v41 = vpop.permute.xlu1 %1530  ;;  %v3575_v34 = vpop.permute.xlu0 %523 }
 0x2f4   : >> { %2831 = vset.pattern.permute.xlu1 %v4862_v62  ;;  %2838 = vset.pattern.permute.xlu0 %v4864_v2 }
 0x2f5   : >> { %1566 = vperm.xlu1 %2831, %v3458_v18   ;;  %810 = vperm.xlu0 %2838, %v769_v32  }
 0x2f7   : >> { %v3582_v15 = vpop.permute.xlu1 %1672  ;;  %v3584_v43 = vpop.permute.xlu0 %786 }
 0x2f8   : >> { %vm1715_vm13 = vcmp.eq.s32.totalorder %v3582_v15, 1 }
 0x2f9   : >> { %2832 = vset.pattern.permute.xlu1 %v4864_v2  ;;  %2840 = vset.pattern.permute.xlu0 %v4865_v12  ;;  %vm1733_vm15 = vmand %vm1715_vm13, %vm413_vm3 }
 0x2fa   : >> { %807 = vperm.xlu1 %2832, %v768_v44   ;;  %568 = vperm.xlu0 %2840, %v3347_v33  }
 0x2fc   : >> { %v3590_v45 = vpop.permute.xlu1 %1534  ;;  %v3592_v61 = vpop.permute.xlu0 %528 }
 0x2fe   : >> { %2835 = vset.pattern.permute.xlu1 %v4862_v62  ;;  %2841 = vset.pattern.permute.xlu0 %v4862_v62 }
 0x2ff   : >> { %670 = vperm.xlu1 %2835, %v3343_v31   ;;  %674 = vperm.xlu0 %2841, %v3347_v33   ;;  %v1664_v33 = vsel %vm1408_vm0, 1, %v4865_v12  ;;  %vm1734_vm0 = vmand %vm1715_vm13, %vm414_vm4  ;;  %vm821_vm13 = vcmp.eq.s32.totalorder %v3498_v52, 1 }
 0x301   : >> { %v3599_v29 = vpop.permute.xlu1 %783  ;;  %v3601_v16 = vpop.permute.xlu0 %642 }
 0x303   : >> { %2836 = vset.pattern.permute.xlu1 %v4865_v12  ;;  %2845 = vset.pattern.permute.xlu0 %v4864_v2 }
 0x304   : >> { %1471 = vperm.xlu1 %2836, %v3464_v46   ;;  %1705 = vperm.xlu0 %2845, %v1662_v17   ;;  %v581_v17 = vlaneseq }
 0x306   : >> { %v3608_v31 = vpop.permute.xlu1 %638  ;;  %v3610_v18 = vpop.permute.xlu0 %1436 }
 0x308   : >> { %2839 = vset.pattern.permute.xlu1 %v4864_v2  ;;  %2846 = vset.pattern.permute.xlu0 %v4865_v12 }
 0x309   : >> { %1702 = vperm.xlu1 %2839, %v1661_v19   ;;  %573 = vperm.xlu0 %2846, %v3351_v35  }
 0x30b   : >> { %v3616_v47 = vpop.permute.xlu1 %1431  ;;  %v3618_v0 = vpop.permute.xlu0 %1681 }
 0x30d   : >> { %2842 = vset.pattern.permute.xlu1 %v4865_v12  ;;  %2849 = vset.pattern.permute.xlu0 %v4862_v62 }
 0x30e   : >> { %1476 = vperm.xlu1 %2842, %v3472_v48   ;;  %1578 = vperm.xlu0 %2849, %v3478_v49  }
 0x310   : >> { %v3625_v46 = vpop.permute.xlu1 %1538  ;;  %v3627_v21 = vpop.permute.xlu0 %533 }
 0x312   : >> { %2843 = vset.pattern.permute.xlu1 %v4862_v62  ;;  %2850 = vset.pattern.permute.xlu0 %v4864_v2 }
 0x313   : >> { %1574 = vperm.xlu1 %2843, %v3472_v48   ;;  %816 = vperm.xlu0 %2850, %v771_v56  }
 0x315   : >> { %v3634_v59 = vpop.permute.xlu1 %1678  ;;  %v3636_v3 = vpop.permute.xlu0 %792 }
 0x316   : >> { %vm1717_vm2 = vcmp.eq.s32.totalorder %v3634_v59, 1 }
 0x317   : >> { %2844 = vset.pattern.permute.xlu1 %v4864_v2  ;;  %2853 = vset.pattern.permute.xlu0 %v4862_v62  ;;  %vm1737_vm7 = vmand %vm1717_vm2, %vm413_vm3 }
 0x318   : >> { %813 = vperm.xlu1 %2844, %v770_v13   ;;  %682 = vperm.xlu0 %2853, %v3353_v36   ;;  %v582_v13 = vshrl.u32 %v581_v17, 7 }
 0x31a   : >> { %v3643_v1 = vpop.permute.xlu1 %1542  ;;  %v3645_v48 = vpop.permute.xlu0 %538  ;;  %v687_v8 = vsub.s32 3, %v582_v13 }
 0x31b   : >> { %4926 = vst [vmem:[#allocation11_spill] sm:$0xff] %v3645_v48 }
 0x31c   : >> { %2847 = vset.pattern.permute.xlu1 %v4862_v62  ;;  %2856 = vset.pattern.permute.xlu0 %v4864_v2  ;;  %v3678_v17 = vrot.slane %v3284_v53, %v687_v8 }
 0x31d   : >> { %678 = vperm.xlu1 %2847, %v3351_v35   ;;  %1711 = vperm.xlu0 %2856, %v1664_v33   ;;  %v1663_v35 = vsel %vm1407_vm1, 1, %v4865_v12  ;;  %vm825_vm1 = vcmp.eq.s32.totalorder %v3584_v43, 1 }
 0x31e   : >> { %v1586_v5 = vmul.f32 %v3505_v24, %v3678_v17  ;;  %v698_v11 = vmul.f32 %v3678_v17, %v3556_v27  ;;  %v1594_v43 = vmul.f32 %v3625_v46, %v3678_v17 }
 0x31f   : >> { %v3651_v32 = vpop.permute.xlu1 %789  ;;  %v3653_v44 = vpop.permute.xlu0 %650 }
 0x320   : >> { %4927 = vst [vmem:[#allocation12_spill] sm:$0xff] %v3653_v44 }
 0x321   : >> { %2848 = vset.pattern.permute.xlu1 %v4865_v12 }
 0x322   : >> { %1481 = vperm.xlu1 %2848, %v3478_v49   ;;  %v583_v49 = vsub.s32 2, %v582_v13 }
 0x324   : >> { %v3658_v19 = vpop.permute.xlu1 %646  ;;  %v3660_v56 = vpop.permute.xlu0 %1446 }
 0x325   : >> { %4928 = vst [vmem:[#allocation13_spill] sm:$0xff] %v3660_v56 }
 0x326   : >> { %2851 = vset.pattern.permute.xlu1 %v4864_v2  ;;  %v3675_v2 = vrot.slane %v3276_v42, %v687_v8 }
 0x327   : >> { %1708 = vperm.xlu1 %2851, %v1663_v35   ;;  %v3683_v35 = vrot.slane %v3276_v42, %v583_v49 }
 0x328   : >> { %v1585_v13 = vmul.f32 %v3505_v24, %v3675_v2  ;;  %v4930_v24 = vmov 1   ;;  %v695_v9 = vmul.f32 %v3675_v2, %v3532_v63  ;;  %v697_v10 = vmul.f32 %v3675_v2, %v3556_v27 }
 0x329   : >> { %v3664_v33 = vpop.permute.xlu1 %1441  ;;  %v3666_v7 = vpop.permute.xlu0 %1687  ;;  %v1489_v8 = vmul.f32 %v3496_v51, %v3683_v35  ;;  %v1587_v52 = vmul.f32 %v3538_v28, %v3675_v2 }
 0x32a   : >> { %4929 = vst [vmem:[#allocation14_spill] sm:$0xff] %v3666_v7 }
 0x32b   : >> { %2852 = vset.pattern.permute.xlu1 %v4865_v12  ;;  %v3686_v12 = vrot.slane %v3284_v53, %v583_v49  ;;  %v1617_v49 = vadd.f32 %v1585_v13, %v1489_v8 }
 0x32c   : >> { %578 = vperm.xlu1 %2852, %v3353_v36  }
 0x32d   : >> { %v1490_v42 = vmul.f32 %v3496_v51, %v3686_v12  ;;  %v696_v51 = vmul.f32 %v3678_v17, %v3532_v63  ;;  %v3718_v56 = vsel %vm1729_vm5, %v1617_v49, -1e+09  ;;  %v592_v63 = vmul.f32 %v3686_v12, %v3523_v58  ;;  %vm849_vm5 = vmand %vm825_vm1, %vm413_vm3 }
 0x32e   : >> { %v3670_v62 = vpop.permute.xlu1 %1546  ;;  %v3672_v4 = vpop.permute.xlu0 %543  ;;  %v594_v36 = vmul.f32 %v3686_v12, %v3521_v57 }
 0x32f   : >> { %v1618_v6 = vadd.f32 %v1586_v5, %v1490_v42  ;;  %v591_v5 = vmul.f32 %v3683_v35, %v3523_v58  ;;  %v728_v8 = vadd.f32 %v696_v51, %v592_v63  ;;  %v4931_v42 = vmov 2  }
 0x330   : >> { %1486 = vperm.xlu1 %2852, %v3486_v22   ;;  %v730_v48 = vadd.f32 %v698_v11, %v594_v36  ;;  %v1494_v36 = vmul.f32 %v3564_v38, %v3686_v12 }
 0x331   : >> { %v3720_v13 = vsel %vm1730_vm6, %v1618_v6, -1e+09  ;;  %v727_v58 = vadd.f32 %v695_v9, %v591_v5  ;;  %v3749_v44 = vsel %vm844_vm10, %v728_v8, -1e+09  ;;  %v1589_v9 = vmul.f32 %v3573_v41, %v3675_v2  ;;  %vm850_vm6 = vmand %vm825_vm1, %vm414_vm4 }
 0x332   : >> { %v3768_v63 = vsel %vm846_vm14, %v730_v48, -1e+09  ;;  %v598_v8 = vmul.f32 %v3686_v12, %v3575_v34  ;;  %vm841_vm1 = vmand %vm821_vm13, %vm413_vm3 }
 0x333   : >> { %v3700_v53 = vpop.permute.xlu1 %1684  ;;  %v3702_v26 = vpop.permute.xlu0 %798  ;;  %v3747_v25 = vsel %vm843_vm9, %v727_v58, -1e+09  ;;  %vm827_vm9 = vcmp.eq.s32.totalorder %v3636_v3, 1  ;;  %v693_v3 = vmul.f32 %v3675_v2, %v3488_v20 }
 0x334   : >> { %2854 = vset.pattern.permute.xlu1 %v4930_v24  ;;  %v4932_v24 = vmov 0   ;;  %v908_v51 = vmax.f32 %v3747_v25, %v3749_v44  ;;  %vm853_vm10 = vmand %vm827_vm9, %vm413_vm3  ;;  %vm1719_vm11 = vcmp.eq.s32.totalorder %v3700_v53, 1 }
 0x335   : >> { %1582 = vperm.xlu1 %2854, %v3486_v22   ;;  %v593_v22 = vmul.f32 %v3683_v35, %v3521_v57  ;;  %v772_v49 = vsel %vm500_vm8, 1, %v4932_v24  ;;  %v1793_v57 = vmax.f32 %v3718_v56, %v3720_v13  ;;  %vm1738_vm8 = vmand %vm1717_vm2, %vm414_vm4  ;;  %vm829_vm2 = vcmp.eq.s32.totalorder %v3702_v26, 1 }
 0x336   : >> { %vm3873_vm14 = vmand %vm1719_vm11, %vm413_vm3 }
 0x337   : >> { %v729_v7 = vadd.f32 %v697_v10, %v593_v22  ;;  %v1590_v10 = vmul.f32 %v3573_v41, %v3678_v17  ;;  %v1493_v22 = vmul.f32 %v3564_v38, %v3683_v35  ;;  %v701_v41 = vmul.f32 %v3675_v2, %v3608_v31 }
 0x338   : >> { %v3738_v6 = vpop.permute.xlu1 %1550  ;;  %v3740_v27 = vpop.permute.xlu0 %548  ;;  %v597_v38 = vmul.f32 %v3683_v35, %v3575_v34  ;;  %v1593_v34 = vmul.f32 %v3625_v46, %v3675_v2 }
 0x339   : >> { %2855 = vset.pattern.permute.xlu1 %v4931_v42  ;;  %v3766_v5 = vsel %vm845_vm12, %v729_v7, -1e+09  ;;  %v702_v7 = vmul.f32 %v3678_v17, %v3608_v31  ;;  %v1621_v48 = vadd.f32 %v1589_v9, %v1493_v22  ;;  %v1622_v58 = vadd.f32 %v1590_v10, %v1494_v36  ;;  %vm854_vm12 = vmand %vm827_vm9, %vm414_vm4 }
 0x33a   : >> { %819 = vperm.xlu1 %2855, %v772_v49   ;;  %v911_v31 = vmax.f32 %v3766_v5, %v3768_v63  ;;  %v733_v15 = vadd.f32 %v701_v41, %v597_v38  ;;  %v705_v10 = vmul.f32 %v3675_v2, %v3658_v19  ;;  %v1497_v36 = vmul.f32 %v3616_v47, %v3683_v35  ;;  %vm858_vm9 = vmand %vm829_vm2, %vm414_vm4 }
 0x33b   : >> { %v3793_v24 = vsel %vm1733_vm15, %v1621_v48, -1e+09  ;;  %v3795_v49 = vsel %vm1734_vm0, %v1622_v58, -1e+09  ;;  %v1498_v41 = vmul.f32 %v3616_v47, %v3686_v12  ;;  %v601_v58 = vmul.f32 %v3683_v35, %v3627_v21  ;;  %vm1742_vm0 = vmand %vm1719_vm11, %vm414_vm4 }
 0x33c   : >> { %1794 = vmax.xlane.f32.xlu0 %v1793_v57  ;;  %4933 = vst [vmem:[#allocation15_spill] sm:$0xff] %v3793_v24  ;;  %4934 = vst [vmem:[#allocation16_spill] sm:$0xff] %v3795_v49  ;;  %v734_v57 = vadd.f32 %v702_v7, %v598_v8  ;;  %v1799_v22 = vmax.f32 %v3793_v24, %v3795_v49  ;;  %v3826_v48 = vsel %vm849_vm5, %v733_v15, -1e+09  ;;  %vm1714_vm15 = vcmp.eq.s32.totalorder %v3512_v23, 1 }
 0x33d   : >> { %v3760_v11 = vpop.permute.xlu1 %795  ;;  %v3762_v60 = vpop.permute.xlu0 %658  ;;  %v602_v38 = vmul.f32 %v3686_v12, %v3627_v21  ;;  %v1625_v47 = vadd.f32 %v1593_v34, %v1497_v36  ;;  %v1626_v8 = vadd.f32 %v1594_v43, %v1498_v41  ;;  %v1597_v34 = vmul.f32 %v3670_v62, %v3675_v2  ;;  %vm842_vm5 = vmand %vm821_vm13, %vm414_vm4 }
 0x33e   : >> { %v1598_v43 = vmul.f32 %v3670_v62, %v3678_v17  ;;  %v1501_v36 = vmul.f32 %v3664_v33, %v3683_v35  ;;  %v1502_v41 = vmul.f32 %v3664_v33, %v3686_v12  ;;  %vm824_vm13 = vcmp.eq.s32.totalorder %v3599_v29, 1 }
 0x33f   : >> { %v3841_v49 = vsel %vm1737_vm7, %v1625_v47, -1e+09  ;;  %v3843_v24 = vsel %vm1738_vm8, %v1626_v8, -1e+09  ;;  %v589_v47 = vmul.f32 %v3683_v35, %v3480_v50  ;;  %v694_v8 = vmul.f32 %v3678_v17, %v3488_v20  ;;  %vm857_vm8 = vmand %vm829_vm2, %vm413_vm3 }
 0x340   : >> { %909 = vmax.xlane.f32.xlu0 %v908_v51  ;;  %v706_v51 = vmul.f32 %v3678_v17, %v3658_v19  ;;  %v3828_v19 = vsel %vm850_vm6, %v734_v57, -1e+09  ;;  %4935 = vst [vmem:[#allocation17_spill] sm:$0xff] %v3841_v49  ;;  %4936 = vst [vmem:[#allocation18_spill] sm:$0xff] %v3843_v24  ;;  %v1629_v33 = vadd.f32 %v1597_v34, %v1501_v36 }
 0x341   : >> { %v917_v57 = vmax.f32 %v3826_v48, %v3828_v19  ;;  %v590_v20 = vmul.f32 %v3686_v12, %v3480_v50  ;;  %vm3917_vm6 = vmand %vm1714_vm15, %vm413_vm3  ;;  %v1588_v36 = vmul.f32 %v3538_v28, %v3678_v17  ;;  %v1492_v28 = vmul.f32 %v3503_v55, %v3686_v12 }
 0x342   : >> { %v655_v42 = vpop.permute.xlu1 %654  ;;  %v3797_v9 = vpop.permute.xlu0 %1456  ;;  %v738_v15 = vadd.f32 %v706_v51, %v602_v38 }
 0x343   : >> { %v710_v38 = vmul.f32 %v3678_v17, %v655_v42 }
 0x344   : >> { %912 = vmax.xlane.f32.xlu0 %v911_v31  ;;  %v737_v31 = vadd.f32 %v705_v10, %v601_v58  ;;  %v1805_v10 = vmax.f32 %v3841_v49, %v3843_v24  ;;  %v709_v58 = vmul.f32 %v3675_v2, %v655_v42  ;;  %v606_v42 = vmul.f32 %v3686_v12, %v3672_v4 }
 0x345   : >> { %v725_v49 = vadd.f32 %v693_v3, %v589_v47  ;;  %v1491_v47 = vmul.f32 %v3503_v55, %v3683_v35 }
 0x346   : >> { %v3861_v51 = vsel %vm853_vm10, %v737_v31, -1e+09  ;;  %v1630_v31 = vadd.f32 %v1598_v43, %v1502_v41  ;;  %v742_v34 = vadd.f32 %v710_v38, %v606_v42  ;;  %v726_v43 = vadd.f32 %v694_v8, %v590_v20 }
 0x347   : >> { %v3822_v46 = vpop.permute.xlu1 %1451  ;;  %v3824_v7 = vpop.permute.xlu0 %1693  ;;  %v3925_v41 = vsel %vm841_vm1, %v725_v49, -1e+09  ;;  %v1619_v42 = vadd.f32 %v1587_v52, %v1491_v47  ;;  %v1620_v20 = vadd.f32 %v1588_v36, %v1492_v28  ;;  %v595_v52 = vmul.f32 %v3683_v35, %v3540_v30 }
 0x348   : >> { %1800 = vmax.xlane.f32.xlu0 %v1799_v22  ;;  %v3863_v22 = vsel %vm854_vm12, %v738_v15, -1e+09  ;;  %v605_v15 = vmul.f32 %v3683_v35, %v3672_v4  ;;  %v3909_v4 = vsel %vm3873_vm14, %v1629_v33, -1e+09  ;;  %v3911_v50 = vsel %vm1742_vm0, %v1630_v31, -1e+09  ;;  %vm3971_vm12 = vmand %vm1714_vm15, %vm414_vm4 }
 0x349   : >> { %v923_v53 = vmax.f32 %v3861_v51, %v3863_v22  ;;  %v3933_v38 = vsel %vm842_vm5, %v726_v43, -1e+09  ;;  %v1505_v33 = vmul.f32 %v3822_v46, %v3683_v35  ;;  %v1506_v31 = vmul.f32 %v3822_v46, %v3686_v12  ;;  %vm847_vm14 = vmand %vm824_vm13, %vm413_vm3 }
 0x34a   : >> { %v741_v3 = vadd.f32 %v709_v58, %v605_v15  ;;  %v3962_v15 = vsel %vm858_vm9, %v742_v34, -1e+09  ;;  %v905_v23 = vmax.f32 %v3925_v41, %v3933_v38  ;;  %v1591_v36 = vmul.f32 %v3590_v45, %v3675_v2  ;;  %vm848_vm15 = vmand %vm824_vm13, %vm414_vm4 }
 0x34b   : >> { %v596_v28 = vmul.f32 %v3686_v12, %v3540_v30  ;;  %v1495_v30 = vmul.f32 %v3558_v14, %v3683_v35  ;;  %vm1716_vm0 = vcmp.eq.s32.totalorder %v3566_v39, 1 }
 0x34c   : >> { %v1555_v21 = vpop.permute.xlu1 %1554  ;;  %918 = vmax.xlane.f32.xlu0 %v917_v57  ;;  %v3848_v59 = vpop.permute.xlu0 %553  ;;  %v3960_v26 = vsel %vm857_vm8, %v741_v3, -1e+09  ;;  %vm4038_vm2 = vmand %vm1716_vm0, %vm413_vm3 }
 0x34d   : >> { %v1601_v62 = vmul.f32 %v1555_v21, %v3675_v2  ;;  %v1602_v58 = vmul.f32 %v1555_v21, %v3678_v17  ;;  %v1811_v21 = vmax.f32 %v3909_v4, %v3911_v50  ;;  %v929_v43 = vmax.f32 %v3960_v26, %v3962_v15  ;;  %vm4052_vm5 = vmand %vm1716_vm0, %vm414_vm4 }
 0x34f   : >> { %v1633_v3 = vadd.f32 %v1601_v62, %v1505_v33  ;;  %v1634_v34 = vadd.f32 %v1602_v58, %v1506_v31  ;;  %v4008_v33 = vsel %vm3917_vm6, %v1619_v42, -1e+09  ;;  %v4012_v31 = vsel %vm3971_vm12, %v1620_v20, -1e+09 }
 0x350   : >> { %1806 = vmax.xlane.f32.xlu0 %v1805_v10  ;;  %v1623_v42 = vadd.f32 %v1591_v36, %v1495_v30  ;;  %v1796_v20 = vmax.f32 %v4008_v33, %v4012_v31  ;;  %vm826_vm6 = vcmp.eq.s32.totalorder %v3651_v32, 1  ;;  %vm828_vm12 = vcmp.eq.s32.totalorder %v3760_v11, 1 }
 0x351   : >> { %v1691_v57 = vpop.permute.xlu1 %1690  ;;  %v3892_v24 = vpop.permute.xlu0 %1562  ;;  %vm4087_vm9 = vmand %vm826_vm6, %vm413_vm3 }
 0x352   : >> { %vm1721_vm7 = vcmp.eq.s32.totalorder %v1691_v57, 1  ;;  %v700_v57 = vmul.f32 %v3678_v17, %v3549_v37 }
 0x353   : >> { %vm3956_vm10 = vmand %vm1721_vm7, %vm413_vm3 }
 0x354   : >> { %924 = vmax.xlane.f32.xlu0 %v923_v53  ;;  %vm1746_vm11 = vmand %vm1721_vm7, %vm414_vm4  ;;  %v699_v53 = vmul.f32 %v3675_v2, %v3549_v37  ;;  %v3990_v47 = vsel %vm3956_vm10, %v1633_v3, -1e+09  ;;  %v1496_v3 = vmul.f32 %v3558_v14, %v3686_v12  ;;  %vm1718_vm10 = vcmp.eq.s32.totalorder %v3618_v0, 1 }
 0x355   : >> { %v3992_v62 = vsel %vm1746_vm11, %v1634_v34, -1e+09  ;;  %vm852_vm11 = vmand %vm826_vm6, %vm414_vm4 }
 0x356   : >> { %v3943_v49 = vpop.permute.xlu1 %1558  ;;  %v3945_v8 = vpop.permute.xlu0 %804  ;;  %v731_v55 = vadd.f32 %v699_v53, %v595_v52  ;;  %v1817_v10 = vmax.f32 %v3990_v47, %v3992_v62  ;;  %vm4121_vm13 = vmand %vm1718_vm10, %vm413_vm3 }
 0x357   : >> { %vm831_vm1 = vcmp.eq.s32.totalorder %v3945_v8, 1  ;;  %vm856_vm6 = vmand %vm828_vm12, %vm414_vm4 }
 0x358   : >> { %1812 = vmax.xlane.f32.xlu0 %v1811_v21  ;;  %v1592_v21 = vmul.f32 %v3590_v45, %v3678_v17  ;;  %v732_v45 = vadd.f32 %v700_v57, %v596_v28  ;;  %v4027_v53 = vsel %vm847_vm14, %v731_v55, -1e+09  ;;  %v704_v55 = vmul.f32 %v3678_v17, %v3601_v16  ;;  %vm861_vm7 = vmand %vm831_vm1, %vm413_vm3 }
 0x359   : >> { %vm862_vm8 = vmand %vm831_vm1, %vm414_vm4 }
 0x35a   : >> { %v1624_v46 = vadd.f32 %v1592_v21, %v1496_v3  ;;  %v4029_v34 = vsel %vm848_vm15, %v732_v45, -1e+09  ;;  %v599_v21 = vmul.f32 %v3683_v35, %v3592_v61  ;;  %v600_v45 = vmul.f32 %v3686_v12, %v3592_v61  ;;  %vm4137_vm14 = vmand %vm1718_vm10, %vm414_vm4 }
 0x35b   : >> { %v3994_v58 = vpop.permute.xlu1 %801  ;;  %v3996_v37 = vpop.permute.xlu0 %558  ;;  %v1595_v3 = vmul.f32 %v3643_v1, %v3675_v2  ;;  %v1606_v61 = vmul.f32 %v3892_v24, %v3678_v17  ;;  %vm4155_vm15 = vmand %vm828_vm12, %vm413_vm3 }
 0x35c   : >> { %930 = vmax.xlane.f32.xlu0 %v929_v43  ;;  %v609_v43 = vmul.f32 %v3683_v35, %v3848_v59 }
 0x35e   : >> { %906 = vmax.xlane.f32.xlu1 %v905_v23  ;;  %v610_v23 = vmul.f32 %v3686_v12, %v3848_v59  ;;  %v703_v59 = vmul.f32 %v3675_v2, %v3601_v16  ;;  %v914_v16 = vmax.f32 %v4027_v53, %v4029_v34 }
 0x360   : >> { %v663_v29 = vpop.permute.xlu1 %662  ;;  %1818 = vmax.xlane.f32.xlu0 %v1817_v10  ;;  %v4032_v14 = vpop.permute.xlu0 %666  ;;  %v4079_v10 = vsel %vm4038_vm2, %v1623_v42, -1e+09  ;;  %v4099_v42 = vsel %vm4052_vm5, %v1624_v46, -1e+09  ;;  %v1500_v46 = vmul.f32 %v3610_v18, %v3686_v12 }
 0x361   : >> { %v713_v52 = vmul.f32 %v3675_v2, %v663_v29  ;;  %v714_v36 = vmul.f32 %v3678_v17, %v663_v29  ;;  %v1802_v32 = vmax.f32 %v4079_v10, %v4099_v42 }
 0x362   : >> { %1797 = vmax.xlane.f32.xlu1 %v1796_v20  ;;  %v1596_v20 = vmul.f32 %v3643_v1, %v3678_v17  ;;  %v1499_v1 = vmul.f32 %v3610_v18, %v3683_v35 }
 0x363   : >> { %v745_v39 = vadd.f32 %v713_v52, %v609_v43  ;;  %v746_v30 = vadd.f32 %v714_v36, %v610_v23  ;;  %v735_v52 = vadd.f32 %v703_v59, %v599_v21  ;;  %v736_v36 = vadd.f32 %v704_v55, %v600_v45  ;;  %v4964_v21 = vld [vmem:[#allocation13_spill] sm:$0xff] }
 0x364   : >> { %v1628_v18 = vadd.f32 %v1596_v20, %v1500_v46  ;;  %v1605_v45 = vmul.f32 %v3892_v24, %v3675_v2 }
 0x365   : >> { %v1462_v8 = vpop.permute.xlu1 %1461  ;;  %v4091_v29 = vpop.permute.xlu0 %1699  ;;  %v4093_v43 = vsel %vm861_vm7, %v745_v39, -1e+09  ;;  %v4095_v23 = vsel %vm862_vm8, %v746_v30, -1e+09  ;;  %v1627_v39 = vadd.f32 %v1595_v3, %v1499_v1  ;;  %v4127_v59 = vsel %vm4087_vm9, %v735_v52, -1e+09 }
 0x366   : >> { %4951 = vst [vmem:[#allocation19_spill] sm:$0xff] %v4093_v43  ;;  %4952 = vst [vmem:[#allocation20_spill] sm:$0xff] %v4095_v23  ;;  %915 = vmax.xlane.f32.xlu1 %v914_v16  ;;  %v935_v57 = vmax.f32 %v4093_v43, %v4095_v23  ;;  %v1509_v28 = vmul.f32 %v1462_v8, %v3683_v35  ;;  %v1510_v30 = vmul.f32 %v1462_v8, %v3686_v12  ;;  %v4957_v16 = vld [vmem:[#allocation12_spill] sm:$0xff] }
 0x367   : >> { %v4129_v55 = vsel %vm852_vm11, %v736_v36, -1e+09  ;;  %v707_v20 = vmul.f32 %v3675_v2, %v4957_v16  ;;  %v708_v0 = vmul.f32 %v3678_v17, %v4957_v16  ;;  %v4167_v23 = vsel %vm4121_vm13, %v1627_v39, -1e+09 }
 0x368   : >> { %936 = vmax.xlane.f32.xlu0 %v935_v57  ;;  %v4958_v57 = vld [vmem:[#allocation11_spill] sm:$0xff]  ;;  %v1637_v46 = vadd.f32 %v1605_v45, %v1509_v28  ;;  %v920_v16 = vmax.f32 %v4127_v59, %v4129_v55  ;;  %v1599_v43 = vmul.f32 %v3738_v6, %v3675_v2  ;;  %v1600_v28 = vmul.f32 %v3738_v6, %v3678_v17 }
 0x369   : >> { %v603_v52 = vmul.f32 %v3683_v35, %v4958_v57  ;;  %v604_v24 = vmul.f32 %v3686_v12, %v4958_v57  ;;  %v4179_v45 = vsel %vm4137_vm14, %v1628_v18, -1e+09  ;;  %v1503_v57 = vmul.f32 %v4964_v21, %v3683_v35 }
 0x36a   : >> { %v1697_v8 = vpop.permute.xlu1 %1696  ;;  %1803 = vmax.xlane.f32.xlu1 %v1802_v32  ;;  %v4145_v1 = vpop.permute.xlu0 %563  ;;  %v1638_v32 = vadd.f32 %v1606_v61, %v1510_v30  ;;  %v1504_v3 = vmul.f32 %v4964_v21, %v3686_v12  ;;  %v1808_v11 = vmax.f32 %v4167_v23, %v4179_v45  ;;  %vm830_vm9 = vcmp.eq.s32.totalorder %v3994_v58, 1 }
 0x36b   : >> { %vm1723_vm0 = vcmp.eq.s32.totalorder %v1697_v8, 1  ;;  %v739_v61 = vadd.f32 %v707_v20, %v603_v52  ;;  %v4962_v8 = vld [vmem:[#allocation14_spill] sm:$0xff]  ;;  %v740_v6 = vadd.f32 %v708_v0, %v604_v24  ;;  %v711_v21 = vmul.f32 %v3675_v2, %v3762_v60  ;;  %vm859_vm10 = vmand %vm830_vm9, %vm413_vm3 }
 0x36c   : >> { %vm1749_vm1 = vmand %vm1723_vm0, %vm413_vm3  ;;  %vm1720_vm5 = vcmp.eq.s32.totalorder %v4962_v8, 1  ;;  %v1632_v24 = vadd.f32 %v1600_v28, %v1504_v3  ;;  %v607_v36 = vmul.f32 %v3683_v35, %v3740_v27  ;;  %v1603_v28 = vmul.f32 %v3943_v49, %v3675_v2 }
 0x36d   : >> { %vm1750_vm2 = vmand %vm1723_vm0, %vm414_vm4  ;;  %v4175_v30 = vsel %vm1749_vm1, %v1637_v46, -1e+09  ;;  %v1631_v46 = vadd.f32 %v1599_v43, %v1503_v57  ;;  %v712_v43 = vmul.f32 %v3678_v17, %v3762_v60  ;;  %v1604_v57 = vmul.f32 %v3943_v49, %v3678_v17 }
 0x36e   : >> { %4961 = vst [vmem:[#allocation12_spill] sm:$0xff] %v4175_v30  ;;  %v4186_v39 = vsel %vm1750_vm2, %v1638_v32, -1e+09  ;;  %921 = vmax.xlane.f32.xlu1 %v920_v16  ;;  %vm4202_vm7 = vmand %vm1720_vm5, %vm413_vm3  ;;  %v4208_v32 = vsel %vm4155_vm15, %v739_v61, -1e+09  ;;  %vm1722_vm11 = vcmp.eq.s32.totalorder %v3824_v7, 1  ;;  %v1508_v0 = vmul.f32 %v3797_v9, %v3686_v12 }
 0x36f   : >> { %4963 = vst [vmem:[#allocation11_spill] sm:$0xff] %v4186_v39  ;;  %v1823_v18 = vmax.f32 %v4175_v30, %v4186_v39  ;;  %v1467_v20 = vpop.permute.xlu1 %1466  ;;  %v4194_v52 = vpop.permute.xlu0 %1570  ;;  %v4210_v16 = vsel %vm856_vm6, %v740_v6, -1e+09  ;;  %vm1744_vm8 = vmand %vm1720_vm5, %vm414_vm4  ;;  %v608_v6 = vmul.f32 %v3686_v12, %v3740_v27  ;;  %v4237_v3 = vsel %vm4202_vm7, %v1631_v46, -1e+09 }
 0x370   : >> { %v926_v8 = vmax.f32 %v4208_v32, %v4210_v16  ;;  %vm860_vm12 = vmand %vm830_vm9, %vm414_vm4  ;;  %v743_v27 = vadd.f32 %v711_v21, %v607_v36  ;;  %v1636_v7 = vadd.f32 %v1604_v57, %v1508_v0  ;;  %v715_v21 = vmul.f32 %v3675_v2, %v4032_v14 }
 0x371   : >> { %1824 = vmax.xlane.f32.xlu0 %v1823_v18  ;;  %v4239_v18 = vsel %vm1744_vm8, %v1632_v24, -1e+09  ;;  %v744_v49 = vadd.f32 %v712_v43, %v608_v6  ;;  %vm4254_vm13 = vmand %vm1722_vm11, %vm413_vm3  ;;  %v611_v36 = vmul.f32 %v3683_v35, %v3996_v37  ;;  %v614_v39 = vmul.f32 %v3686_v12, %v4145_v1 }
 0x372   : >> { %1809 = vmax.xlane.f32.xlu1 %v1808_v11  ;;  %v1507_v11 = vmul.f32 %v3797_v9, %v3683_v35  ;;  %v1814_v24 = vmax.f32 %v4237_v3, %v4239_v18  ;;  %v4258_v30 = vsel %vm859_vm10, %v743_v27, -1e+09  ;;  %vm1748_vm14 = vmand %vm1722_vm11, %vm414_vm4  ;;  %v716_v9 = vmul.f32 %v3678_v17, %v4032_v14 }
 0x373   : >> { %v4260_v58 = vsel %vm860_vm12, %v744_v49, -1e+09  ;;  %v747_v27 = vadd.f32 %v715_v21, %v611_v36  ;;  %v613_v36 = vmul.f32 %v3683_v35, %v4145_v1  ;;  %vm1724_vm5 = vcmp.eq.s32.totalorder %v4091_v29, 1 }
 0x374   : >> { %v1567_v61 = vpop.permute.xlu1 %1566  ;;  %v811_v60 = vpop.permute.xlu0 %810  ;;  %v1635_v46 = vadd.f32 %v1603_v28, %v1507_v11  ;;  %4969 = vst [vmem:[#allocation14_spill] sm:$0xff] %v4260_v58  ;;  %v932_v11 = vmax.f32 %v4258_v30, %v4260_v58  ;;  %vm1751_vm8 = vmand %vm1724_vm5, %vm413_vm3  ;;  %v1609_v29 = vmul.f32 %v4194_v52, %v3675_v2 }
 0x375   : >> { %v1607_v6 = vmul.f32 %v1567_v61, %v3675_v2  ;;  %v1608_v57 = vmul.f32 %v1567_v61, %v3678_v17  ;;  %v1511_v61 = vmul.f32 %v1467_v20, %v3683_v35  ;;  %vm833_vm1 = vcmp.eq.s32.totalorder %v811_v60, 1  ;;  %vm1752_vm9 = vmand %vm1724_vm5, %vm414_vm4 }
 0x376   : >> { %927 = vmax.xlane.f32.xlu1 %v926_v8  ;;  %v612_v8 = vmul.f32 %v3686_v12, %v3996_v37  ;;  %v4287_v49 = vsel %vm4254_vm13, %v1635_v46, -1e+09  ;;  %v4289_v37 = vsel %vm1748_vm14, %v1636_v7, -1e+09  ;;  %vm865_vm6 = vmand %vm833_vm1, %vm413_vm3 }
 0x377   : >> { %vm866_vm7 = vmand %vm833_vm1, %vm414_vm4 }
 0x378   : >> { %v748_v0 = vadd.f32 %v716_v9, %v612_v8 }
 0x379   : >> { %v808_v43 = vpop.permute.xlu1 %807  ;;  %v4270_v28 = vpop.permute.xlu0 %568 }
 0x37a   : >> { %vm832_vm15 = vcmp.eq.s32.totalorder %v808_v43, 1  ;;  %1815 = vmax.xlane.f32.xlu1 %v1814_v24  ;;  %v1512_v24 = vmul.f32 %v1467_v20, %v3686_v12  ;;  %v1639_v20 = vadd.f32 %v1607_v6, %v1511_v61  ;;  %v1820_v43 = vmax.f32 %v4287_v49, %v4289_v37 }
 0x37b   : >> { %vm4281_vm0 = vmand %vm832_vm15, %vm413_vm3 }
 0x37c   : >> { %vm864_vm2 = vmand %vm832_vm15, %vm414_vm4  ;;  %v1640_v9 = vadd.f32 %v1608_v57, %v1512_v24  ;;  %v4310_v8 = vsel %vm4281_vm0, %v747_v27, -1e+09  ;;  %v4334_v61 = vsel %vm1751_vm8, %v1639_v20, -1e+09 }
 0x37d   : >> { %v4312_v1 = vsel %vm864_vm2, %v748_v0, -1e+09  ;;  %4973 = vst [vmem:[#allocation21_spill] sm:$0xff] %v4334_v61 }
 0x37e   : >> { %v671_v21 = vpop.permute.xlu1 %670  ;;  %933 = vmax.xlane.f32.xlu1 %v932_v11  ;;  %v938_v60 = vmax.f32 %v4310_v8, %v4312_v1  ;;  %v4336_v24 = vsel %vm1752_vm9, %v1640_v9, -1e+09 }
 0x37f   : >> { %v717_v46 = vmul.f32 %v3675_v2, %v671_v21  ;;  %v718_v7 = vmul.f32 %v3678_v17, %v671_v21  ;;  %v675_v21 = vpop.permute.xlu0 %674  ;;  %4974 = vst [vmem:[#allocation22_spill] sm:$0xff] %v4336_v24 }
 0x381   : >> { %v749_v11 = vadd.f32 %v717_v46, %v613_v36  ;;  %v750_v58 = vadd.f32 %v718_v7, %v614_v39  ;;  %v1610_v39 = vmul.f32 %v4194_v52, %v3678_v17  ;;  %v1826_v7 = vmax.f32 %v4334_v61, %v4336_v24 }
 0x382   : >> { %1821 = vmax.xlane.f32.xlu1 %v1820_v43 }
 0x383   : >> { %v1472_v6 = vpop.permute.xlu1 %1471  ;;  %v4321_v57 = vsel %vm865_vm6, %v749_v11, -1e+09  ;;  %v4323_v27 = vsel %vm866_vm7, %v750_v58, -1e+09  ;;  %v1706_v36 = vpop.permute.xlu0 %1705 }
 0x384   : >> { %4972 = vst [vmem:[#allocation13_spill] sm:$0xff] %v4323_v27  ;;  %v941_v14 = vmax.f32 %v4321_v57, %v4323_v27  ;;  %v1513_v0 = vmul.f32 %v1472_v6, %v3683_v35  ;;  %v1514_v58 = vmul.f32 %v1472_v6, %v3686_v12  ;;  %vm1726_vm13 = vcmp.eq.s32.totalorder %v1706_v36, 1 }
 0x385   : >> { %vm1755_vm1 = vmand %vm1726_vm13, %vm413_vm3 }
 0x386   : >> { %939 = vmax.xlane.f32.xlu1 %v938_v60  ;;  %942 = vmax.xlane.f32.xlu0 %v941_v14  ;;  %v1641_v43 = vadd.f32 %v1609_v29, %v1513_v0  ;;  %v1642_v20 = vadd.f32 %v1610_v39, %v1514_v58  ;;  %v719_v58 = vmul.f32 %v3675_v2, %v675_v21  ;;  %vm1756_vm2 = vmand %vm1726_vm13, %vm414_vm4 }
 0x387   : >> { %v720_v29 = vmul.f32 %v3678_v17, %v675_v21 }
 0x388   : >> { %v1703_v46 = vpop.permute.xlu1 %1702  ;;  %v574_v6 = vpop.permute.xlu0 %573 }
 0x389   : >> { %vm1725_vm10 = vcmp.eq.s32.totalorder %v1703_v46, 1  ;;  %v617_v36 = vmul.f32 %v3683_v35, %v574_v6 }
 0x38a   : >> { %vm1753_vm11 = vmand %vm1725_vm10, %vm413_vm3  ;;  %1827 = vmax.xlane.f32.xlu1 %v1826_v7  ;;  %v615_v7 = vmul.f32 %v3683_v35, %v4270_v28 }
 0x38b   : >> { %vm1754_vm12 = vmand %vm1725_vm10, %vm414_vm4  ;;  %v4349_v9 = vsel %vm1753_vm11, %v1641_v43, -1e+09  ;;  %v616_v43 = vmul.f32 %v3686_v12, %v4270_v28 }
 0x38c   : >> { %4975 = vst [vmem:[#allocation23_spill] sm:$0xff] %v4349_v9  ;;  %v4351_v11 = vsel %vm1754_vm12, %v1642_v20, -1e+09 }
 0x38d   : >> { %4976 = vst [vmem:[#allocation24_spill] sm:$0xff] %v4351_v11  ;;  %v1829_v52 = vmax.f32 %v4349_v9, %v4351_v11  ;;  %v1477_v60 = vpop.permute.xlu1 %1476  ;;  %v1579_v0 = vpop.permute.xlu0 %1578  ;;  %v751_v9 = vadd.f32 %v719_v58, %v615_v7  ;;  %v752_v24 = vadd.f32 %v720_v29, %v616_v43 }
 0x38e   : >> { %v1515_v20 = vmul.f32 %v1477_v60, %v3683_v35 }
 0x38f   : >> { %1830 = vmax.xlane.f32.xlu0 %v1829_v52  ;;  %v1516_v52 = vmul.f32 %v1477_v60, %v3686_v12 }
 0x392   : >> { %v1575_v14 = vpop.permute.xlu1 %1574  ;;  %v817_v27 = vpop.permute.xlu0 %816 }
 0x393   : >> { %v1611_v39 = vmul.f32 %v1575_v14, %v3675_v2  ;;  %v1612_v46 = vmul.f32 %v1575_v14, %v3678_v17  ;;  %vm835_vm5 = vcmp.eq.s32.totalorder %v817_v27, 1 }
 0x394   : >> { %vm869_vm6 = vmand %vm835_vm5, %vm413_vm3 }
 0x395   : >> { %v1643_v21 = vadd.f32 %v1611_v39, %v1515_v20  ;;  %v1644_v61 = vadd.f32 %v1612_v46, %v1516_v52  ;;  %vm870_vm7 = vmand %vm835_vm5, %vm414_vm4 }
 0x397   : >> { %v814_v11 = vpop.permute.xlu1 %813  ;;  %v4383_v39 = vsel %vm1755_vm1, %v1643_v21, -1e+09 }
 0x398   : >> { %vm834_vm14 = vcmp.eq.s32.totalorder %v814_v11, 1  ;;  %v618_v11 = vmul.f32 %v3686_v12, %v574_v6  ;;  %4977 = vst [vmem:[#allocation25_spill] sm:$0xff] %v4383_v39 }
 0x399   : >> { %vm867_vm15 = vmand %vm834_vm14, %vm413_vm3 }
 0x39a   : >> { %vm868_vm0 = vmand %vm834_vm14, %vm414_vm4  ;;  %v4369_v14 = vsel %vm867_vm15, %v751_v9, -1e+09 }
 0x39b   : >> { %v4373_v28 = vsel %vm868_vm0, %v752_v24, -1e+09  ;;  %v4385_v24 = vsel %vm1756_vm2, %v1644_v61, -1e+09 }
 0x39c   : >> { %v944_v60 = vmax.f32 %v4369_v14, %v4373_v28  ;;  %v679_v58 = vpop.permute.xlu1 %678  ;;  %4978 = vst [vmem:[#allocation26_spill] sm:$0xff] %v4385_v24  ;;  %v1832_v27 = vmax.f32 %v4383_v39, %v4385_v24 }
 0x39d   : >> { %v721_v9 = vmul.f32 %v3675_v2, %v679_v58  ;;  %v722_v29 = vmul.f32 %v3678_v17, %v679_v58 }
 0x39e   : >> { %945 = vmax.xlane.f32.xlu1 %v944_v60 }
 0x39f   : >> { %v753_v46 = vadd.f32 %v721_v9, %v617_v36  ;;  %v754_v7 = vadd.f32 %v722_v29, %v618_v11  ;;  %v1613_v36 = vmul.f32 %v1579_v0, %v3675_v2  ;;  %v1614_v11 = vmul.f32 %v1579_v0, %v3678_v17 }
 0x3a1   : >> { %v1482_v6 = vpop.permute.xlu1 %1481  ;;  %v4393_v43 = vsel %vm869_vm6, %v753_v46, -1e+09  ;;  %v4395_v20 = vsel %vm870_vm7, %v754_v7, -1e+09 }
 0x3a2   : >> { %4979 = vst [vmem:[#allocation27_spill] sm:$0xff] %v4393_v43  ;;  %4980 = vst [vmem:[#allocation28_spill] sm:$0xff] %v4395_v20  ;;  %1833 = vmax.xlane.f32.xlu1 %v1832_v27  ;;  %v947_v61 = vmax.f32 %v4393_v43, %v4395_v20  ;;  %v1517_v52 = vmul.f32 %v1482_v6, %v3683_v35  ;;  %v1518_v21 = vmul.f32 %v1482_v6, %v3686_v12  ;;  %v683_v6 = vpop.permute.xlu0 %682 }
 0x3a4   : >> { %948 = vmax.xlane.f32.xlu0 %v947_v61  ;;  %v1645_v58 = vadd.f32 %v1613_v36, %v1517_v52  ;;  %v1646_v9 = vadd.f32 %v1614_v11, %v1518_v21 }
 0x3a6   : >> { %v1709_v60 = vpop.permute.xlu1 %1708  ;;  %v1712_v21 = vpop.permute.xlu0 %1711 }
 0x3a7   : >> { %vm1727_vm8 = vcmp.eq.s32.totalorder %v1709_v60, 1  ;;  %vm1728_vm11 = vcmp.eq.s32.totalorder %v1712_v21, 1 }
 0x3a8   : >> { %vm1757_vm9 = vmand %vm1727_vm8, %vm413_vm3 }
 0x3a9   : >> { %vm1758_vm10 = vmand %vm1727_vm8, %vm414_vm4  ;;  %v4407_v29 = vsel %vm1757_vm9, %v1645_v58, -1e+09  ;;  %v723_v58 = vmul.f32 %v3675_v2, %v683_v6 }
 0x3aa   : >> { %4981 = vst [vmem:[#allocation29_spill] sm:$0xff] %v4407_v29  ;;  %v4409_v46 = vsel %vm1758_vm10, %v1646_v9, -1e+09  ;;  %v724_v9 = vmul.f32 %v3678_v17, %v683_v6  ;;  %vm1759_vm15 = vmand %vm1728_vm11, %vm413_vm3 }
 0x3ab   : >> { %4982 = vst [vmem:[#allocation30_spill] sm:$0xff] %v4409_v46  ;;  %v1835_v7 = vmax.f32 %v4407_v29, %v4409_v46  ;;  %v579_v27 = vpop.permute.xlu1 %578  ;;  %vm1760_vm0 = vmand %vm1728_vm11, %vm414_vm4 }
 0x3ac   : >> { %v619_v52 = vmul.f32 %v3683_v35, %v579_v27  ;;  %v620_v36 = vmul.f32 %v3686_v12, %v579_v27 }
 0x3ad   : >> { %1836 = vmax.xlane.f32.xlu0 %v1835_v7 }
 0x3ae   : >> { %v755_v20 = vadd.f32 %v723_v58, %v619_v52  ;;  %v756_v43 = vadd.f32 %v724_v9, %v620_v36 }
 0x3af   : >> { %v1487_v0 = vpop.permute.xlu1 %1486 }
 0x3b0   : >> { %v1519_v46 = vmul.f32 %v1487_v0, %v3683_v35  ;;  %v1520_v7 = vmul.f32 %v1487_v0, %v3686_v12 }
 0x3b4   : >> { %v1583_v61 = vpop.permute.xlu1 %1582 }
 0x3b5   : >> { %v1615_v11 = vmul.f32 %v1583_v61, %v3675_v2  ;;  %v1616_v60 = vmul.f32 %v1583_v61, %v3678_v17 }
 0x3b7   : >> { %v1647_v24 = vadd.f32 %v1615_v11, %v1519_v46  ;;  %v1648_v39 = vadd.f32 %v1616_v60, %v1520_v7  ;;  %v4983_v7 = vld [vmem:[#allocation15_spill] sm:$0xff] }
 0x3b9   : >> { %v820_v29 = vpop.permute.xlu1 %819  ;;  %v4435_v35 = vsel %vm1759_vm15, %v1647_v24, -1e+09 }
 0x3ba   : >> { %vm836_vm12 = vcmp.eq.s32.totalorder %v820_v29, 1  ;;  %v4437_v29 = vsel %vm1760_vm0, %v1648_v39, -1e+09 }
 0x3bb   : >> { %vm871_vm13 = vmand %vm836_vm12, %vm413_vm3 }
 0x3bc   : >> { %vm872_vm14 = vmand %vm836_vm12, %vm414_vm4  ;;  %v4425_v2 = vsel %vm871_vm13, %v755_v20, -1e+09  ;;  %v1838_v20 = vmax.f32 %v4435_v35, %v4437_v29 }
 0x3bd   : >> { %v4429_v17 = vsel %vm872_vm14, %v756_v43, -1e+09 }
 0x3be   : >> { %v950_v12 = vmax.f32 %v4425_v2, %v4429_v17 }
 0x3c0   : >> { %951 = vmax.xlane.f32.xlu1 %v950_v12 }
 0x3c4   : >> { %1839 = vmax.xlane.f32.xlu1 %v1838_v20 }
 0x3c9   : >> { %v1795_v46 = vpop.xlane.xlu0 %1794 }
 0x3ca   : >> { %v1841_v21 = vsub.f32 %v3718_v56, %v1795_v46 }
 0x3cc   : >> { %v1873_v60 = vmul.f32 1.442695, %v1841_v21 }
 0x3cd   : >> { %v910_v40 = vpop.xlane.xlu0 %909 }
 0x3ce   : >> { %v955_v43 = vsub.f32 %v3747_v25, %v910_v40  ;;  %v956_v27 = vsub.f32 %v3749_v44, %v910_v40  ;;  %v1842_v25 = vsub.f32 %v3720_v13, %v1795_v46  ;;  %v4984_v40 = vld [vmem:[#allocation16_spill] sm:$0xff] }
 0x3d0   : >> { %v989_v54 = vmul.f32 1.442695, %v955_v43  ;;  %v991_v0 = vmul.f32 1.442695, %v956_v27  ;;  %v1875_v58 = vmul.f32 1.442695, %v1842_v25 }
 0x3d1   : >> { %v913_v6 = vpop.xlane.xlu0 %912 }
 0x3d2   : >> { %2857 = vpow2.f32 %v989_v54  ;;  %v957_v44 = vsub.f32 %v3766_v5, %v913_v6  ;;  %v958_v11 = vsub.f32 %v3768_v63, %v913_v6 }
 0x3d3   : >> { %2859 = vpow2.f32 %v991_v0 }
 0x3d4   : >> { %v993_v9 = vmul.f32 1.442695, %v957_v44  ;;  %v995_v20 = vmul.f32 1.442695, %v958_v11  ;;  %2861 = vpow2.f32 %v1873_v60 }
 0x3d5   : >> { %v1801_v52 = vpop.xlane.xlu0 %1800  ;;  %2863 = vpow2.f32 %v1875_v58 }
 0x3d6   : >> { %v1845_v12 = vsub.f32 %v4983_v7, %v1801_v52  ;;  %v1846_v43 = vsub.f32 %v4984_v40, %v1801_v52  ;;  %2865 = vpow2.f32 %v993_v9 }
 0x3d7   : >> { %2867 = vpow2.f32 %v995_v20 }
 0x3d8   : >> { %v1881_v5 = vmul.f32 1.442695, %v1845_v12  ;;  %v1883_v0 = vmul.f32 1.442695, %v1846_v43 }
 0x3d9   : >> { %v919_v36 = vpop.xlane.xlu0 %918 }
 0x3da   : >> { %v961_v6 = vsub.f32 %v3826_v48, %v919_v36 }
 0x3dc   : >> { %v4443_v24 = vpop.eup %2857  ;;  %v1001_v11 = vmul.f32 1.442695, %v961_v6 }
 0x3dd   : >> { %v4445_v39 = vpop.eup %2859  ;;  %v1807_v54 = vpop.xlane.xlu0 %1806 }
 0x3de   : >> { %v1052_v61 = vadd.f32 %v4445_v39, %v4443_v24  ;;  %v4463_v9 = vpop.eup %2861 }
 0x3e0   : >> { %1053 = vadd.xlane.f32.xlu1 %v1052_v61 }
 0x3eb   : >> { %v907_v27 = vpop.xlane.xlu1 %906 }
 0x3ec   : >> { %v953_v56 = vsub.f32 %v3925_v41, %v907_v27  ;;  %v954_v13 = vsub.f32 %v3933_v38, %v907_v27  ;;  %v962_v41 = vsub.f32 %v3828_v19, %v919_v36  ;;  %v925_v38 = vpop.xlane.xlu0 %924  ;;  %v4466_v19 = vpop.eup %2863  ;;  %v4986_v36 = vld [vmem:[#allocation18_spill] sm:$0xff] }
 0x3ed   : >> { %v1850_v40 = vsub.f32 %v4986_v36, %v1807_v54  ;;  %v4469_v27 = vpop.eup %2865 }
 0x3ee   : >> { %v985_v46 = vmul.f32 1.442695, %v953_v56  ;;  %v987_v63 = vmul.f32 1.442695, %v954_v13 }
 0x3ef   : >> { %v1798_v61 = vpop.xlane.xlu1 %1797  ;;  %v1891_v6 = vmul.f32 1.442695, %v1850_v40 }
 0x3f0   : >> { %2869 = vpow2.f32 %v985_v46  ;;  %v1843_v52 = vsub.f32 %v4008_v33, %v1798_v61  ;;  %v1844_v21 = vsub.f32 %v4012_v31, %v1798_v61  ;;  %v1003_v33 = vmul.f32 1.442695, %v962_v41  ;;  %v4985_v31 = vld [vmem:[#allocation17_spill] sm:$0xff]  ;;  %v1813_v56 = vpop.xlane.xlu0 %1812 }
 0x3f1   : >> { %2871 = vpow2.f32 %v987_v63  ;;  %v1849_v7 = vsub.f32 %v4985_v31, %v1807_v54  ;;  %v965_v63 = vsub.f32 %v3861_v51, %v925_v38  ;;  %v966_v61 = vsub.f32 %v3863_v22, %v925_v38 }
 0x3f2   : >> { %2873 = vpow2.f32 %v1881_v5  ;;  %v1877_v25 = vmul.f32 1.442695, %v1843_v52  ;;  %v1879_v44 = vmul.f32 1.442695, %v1844_v21  ;;  %v1853_v52 = vsub.f32 %v3909_v4, %v1813_v56 }
 0x3f3   : >> { %2875 = vpow2.f32 %v1883_v0  ;;  %v916_v60 = vpop.xlane.xlu1 %915  ;;  %v1889_v46 = vmul.f32 1.442695, %v1849_v7  ;;  %v1937_v22 = vadd.f32 %v4466_v19, %v4463_v9  ;;  %v1009_v4 = vmul.f32 1.442695, %v965_v63 }
 0x3f4   : >> { %2877 = vpow2.f32 %v1877_v25  ;;  %v959_v58 = vsub.f32 %v4027_v53, %v916_v60  ;;  %v960_v48 = vsub.f32 %v4029_v34, %v916_v60  ;;  %v4472_v34 = vpop.eup %2867 }
 0x3f5   : >> { %2879 = vpow2.f32 %v1879_v44 }
 0x3f6   : >> { %v997_v12 = vmul.f32 1.442695, %v959_v58  ;;  %v999_v20 = vmul.f32 1.442695, %v960_v48  ;;  %2881 = vpow2.f32 %v1001_v11  ;;  %v931_v11 = vpop.xlane.xlu0 %930  ;;  %v1854_v48 = vsub.f32 %v3911_v50, %v1813_v56 }
 0x3f7   : >> { %v1804_v43 = vpop.xlane.xlu1 %1803 }
 0x3f8   : >> { %2883 = vpow2.f32 %v997_v12  ;;  %v1847_v53 = vsub.f32 %v4079_v10, %v1804_v43  ;;  %v1848_v13 = vsub.f32 %v4099_v42, %v1804_v43  ;;  %v1899_v56 = vmul.f32 1.442695, %v1854_v48 }
 0x3f9   : >> { %2885 = vpow2.f32 %v999_v20 }
 0x3fa   : >> { %v4475_v5 = vpop.eup %2869  ;;  %2887 = vpow2.f32 %v1003_v33  ;;  %v1885_v0 = vmul.f32 1.442695, %v1847_v53  ;;  %v1887_v10 = vmul.f32 1.442695, %v1848_v13  ;;  %v1897_v33 = vmul.f32 1.442695, %v1853_v52  ;;  %v1819_v63 = vpop.xlane.xlu0 %1818 }
 0x3fb   : >> { %v4478_v54 = vpop.eup %2871  ;;  %v922_v21 = vpop.xlane.xlu1 %921  ;;  %v1055_v13 = vadd.f32 %v4472_v34, %v4469_v27  ;;  %v1858_v48 = vsub.f32 %v3992_v62, %v1819_v63  ;;  %v4988_v62 = vld [vmem:[#allocation14_spill] sm:$0xff] }
 0x3fc   : >> { %v4482_v41 = vpop.eup %2873  ;;  %2889 = vpow2.f32 %v1885_v0  ;;  %v963_v42 = vsub.f32 %v4127_v59, %v922_v21  ;;  %v964_v25 = vsub.f32 %v4129_v55, %v922_v21  ;;  %v1049_v51 = vadd.f32 %v4478_v54, %v4475_v5 }
 0x3fd   : >> { %v4488_v44 = vpop.eup %2875  ;;  %2891 = vpow2.f32 %v1887_v10  ;;  %v1011_v55 = vmul.f32 1.442695, %v966_v61 }
 0x3fe   : >> { %v4492_v38 = vpop.eup %2877  ;;  %2893 = vpow2.f32 %v1889_v46  ;;  %v1005_v60 = vmul.f32 1.442695, %v963_v42  ;;  %v1007_v58 = vmul.f32 1.442695, %v964_v25  ;;  %1050 = vadd.xlane.f32.xlu0 %v1049_v51  ;;  %v1943_v51 = vadd.f32 %v4488_v44, %v4482_v41 }
 0x3ff   : >> { %v4494_v59 = vpop.eup %2879  ;;  %2895 = vpow2.f32 %v1891_v6  ;;  %v1810_v31 = vpop.xlane.xlu1 %1809 }
 0x400   : >> { %2897 = vpow2.f32 %v1005_v60  ;;  %v1851_v7 = vsub.f32 %v4167_v23, %v1810_v31  ;;  %v1852_v12 = vsub.f32 %v4179_v45, %v1810_v31  ;;  %v1940_v20 = vadd.f32 %v4494_v59, %v4492_v38  ;;  %v4501_v36 = vpop.eup %2881 }
 0x401   : >> { %2899 = vpow2.f32 %v1007_v58  ;;  %v969_v23 = vsub.f32 %v3960_v26, %v931_v11  ;;  %v970_v26 = vsub.f32 %v3962_v15, %v931_v11 }
 0x402   : >> { %v4503_v40 = vpop.eup %2883  ;;  %2901 = vpow2.f32 %v1009_v4  ;;  %v1893_v43 = vmul.f32 1.442695, %v1851_v7  ;;  %v1895_v53 = vmul.f32 1.442695, %v1852_v12  ;;  %1938 = vadd.xlane.f32.xlu0 %v1937_v22  ;;  %1941 = vadd.xlane.f32.xlu1 %v1940_v20  ;;  %v937_v4 = vpop.xlane.xlu0 %936 }
 0x403   : >> { %v4505_v50 = vpop.eup %2885  ;;  %2903 = vpow2.f32 %v1011_v55  ;;  %v928_v45 = vpop.xlane.xlu1 %927  ;;  %v1017_v25 = vmul.f32 1.442695, %v969_v23 }
 0x404   : >> { %v4510_v46 = vpop.eup %2887  ;;  %2905 = vpow2.f32 %v1897_v33  ;;  %v967_v0 = vsub.f32 %v4208_v32, %v928_v45  ;;  %v968_v6 = vsub.f32 %v4210_v16, %v928_v45  ;;  %v1058_v61 = vadd.f32 %v4505_v50, %v4503_v40 }
 0x405   : >> { %2907 = vpow2.f32 %v1893_v43  ;;  %v1857_v32 = vsub.f32 %v3990_v47, %v1819_v63  ;;  %v1019_v47 = vmul.f32 1.442695, %v970_v26  ;;  %v1061_v43 = vadd.f32 %v4510_v46, %v4501_v36 }
 0x406   : >> { %v4516_v52 = vpop.eup %2889  ;;  %2909 = vpow2.f32 %v1895_v53  ;;  %v1013_v10 = vmul.f32 1.442695, %v967_v0  ;;  %v1015_v21 = vmul.f32 1.442695, %v968_v6  ;;  %1059 = vadd.xlane.f32.xlu1 %v1058_v61  ;;  %1056 = vadd.xlane.f32.xlu0 %v1055_v13  ;;  %v1907_v0 = vmul.f32 1.442695, %v1858_v48 }
 0x407   : >> { %v4519_v42 = vpop.eup %2891  ;;  %2911 = vpow2.f32 %v1899_v56  ;;  %v1816_v16 = vpop.xlane.xlu1 %1815  ;;  %v4990_v48 = vld [vmem:[#allocation12_spill] sm:$0xff] }
 0x408   : >> { %v4524_v22 = vpop.eup %2893  ;;  %2913 = vpow2.f32 %v1013_v10  ;;  %v1855_v15 = vsub.f32 %v4237_v3, %v1816_v16  ;;  %v1856_v11 = vsub.f32 %v4239_v18, %v1816_v16  ;;  %v1946_v60 = vadd.f32 %v4519_v42, %v4516_v52  ;;  %v4987_v18 = vld [vmem:[#allocation19_spill] sm:$0xff] }
 0x409   : >> { %v4530_v58 = vpop.eup %2895  ;;  %2915 = vpow2.f32 %v1015_v21  ;;  %v1905_v3 = vmul.f32 1.442695, %v1857_v32  ;;  %v973_v12 = vsub.f32 %v4987_v18, %v937_v4  ;;  %v4991_v18 = vld [vmem:[#allocation11_spill] sm:$0xff] }
 0x40a   : >> { %v4532_v55 = vpop.eup %2897  ;;  %v1901_v33 = vmul.f32 1.442695, %v1855_v15  ;;  %v1903_v31 = vmul.f32 1.442695, %v1856_v11  ;;  %1947 = vadd.xlane.f32.xlu1 %v1946_v60  ;;  %1944 = vadd.xlane.f32.xlu0 %v1943_v51  ;;  %2917 = vpow2.f32 %v1017_v25  ;;  %v1825_v25 = vpop.xlane.xlu0 %1824  ;;  %v1949_v11 = vadd.f32 %v4530_v58, %v4524_v22 }
 0x40b   : >> { %v4535_v7 = vpop.eup %2899  ;;  %v934_v20 = vpop.xlane.xlu1 %933  ;;  %v1025_v21 = vmul.f32 1.442695, %v973_v12  ;;  %v1862_v12 = vsub.f32 %v4991_v18, %v1825_v25 }
 0x40c   : >> { %v4540_v53 = vpop.eup %2901  ;;  %2919 = vpow2.f32 %v1901_v33  ;;  %v971_v56 = vsub.f32 %v4258_v30, %v934_v20  ;;  %v972_v23 = vsub.f32 %v4988_v62, %v934_v20  ;;  %v1064_v45 = vadd.f32 %v4535_v7, %v4532_v55  ;;  %v4989_v30 = vld [vmem:[#allocation20_spill] sm:$0xff] }
 0x40d   : >> { %v4546_v13 = vpop.eup %2903  ;;  %2921 = vpow2.f32 %v1903_v31  ;;  %v974_v10 = vsub.f32 %v4989_v30, %v937_v4  ;;  %v1861_v33 = vsub.f32 %v4990_v48, %v1825_v25  ;;  %v4992_v25 = vld [vmem:[#allocation13_spill] sm:$0xff] }
 0x40e   : >> { %v4548_v63 = vpop.eup %2905  ;;  %2923 = vpow2.f32 %v1019_v47  ;;  %v1021_v6 = vmul.f32 1.442695, %v971_v56  ;;  %v1023_v61 = vmul.f32 1.442695, %v972_v23  ;;  %1065 = vadd.xlane.f32.xlu1 %v1064_v45  ;;  %1062 = vadd.xlane.f32.xlu0 %v1061_v43  ;;  %v1067_v23 = vadd.f32 %v4546_v13, %v4540_v53 }
 0x40f   : >> { %v4550_v26 = vpop.eup %2907  ;;  %2925 = vpow2.f32 %v1905_v3  ;;  %v1822_v32 = vpop.xlane.xlu1 %1821 }
 0x410   : >> { %v4553_v16 = vpop.eup %2909  ;;  %2927 = vpow2.f32 %v1021_v6  ;;  %v1859_v51 = vsub.f32 %v4287_v49, %v1822_v32  ;;  %v1860_v15 = vsub.f32 %v4289_v37, %v1822_v32  ;;  %v1027_v37 = vmul.f32 1.442695, %v974_v10 }
 0x411   : >> { %v4559_v60 = vpop.eup %2911  ;;  %2929 = vpow2.f32 %v1023_v61  ;;  %v1952_v47 = vadd.f32 %v4553_v16, %v4550_v26  ;;  %v1913_v61 = vmul.f32 1.442695, %v1861_v33  ;;  %v4994_v33 = vld [vmem:[#allocation22_spill] sm:$0xff] }
 0x412   : >> { %v4563_v4 = vpop.eup %2913  ;;  %2931 = vpow2.f32 %v1907_v0  ;;  %v1909_v31 = vmul.f32 1.442695, %v1859_v51  ;;  %v1911_v3 = vmul.f32 1.442695, %v1860_v15  ;;  %1950 = vadd.xlane.f32.xlu0 %v1949_v11  ;;  %v1955_v15 = vadd.f32 %v4559_v60, %v4548_v63 }
 0x413   : >> { %v4566_v49 = vpop.eup %2915  ;;  %2933 = vpow2.f32 %v1025_v21  ;;  %1953 = vadd.xlane.f32.xlu1 %v1952_v47  ;;  %v940_v20 = vpop.xlane.xlu1 %939  ;;  %v4993_v47 = vld [vmem:[#allocation21_spill] sm:$0xff] }
 0x414   : >> { %v943_v43 = vpop.xlane.xlu0 %942  ;;  %2935 = vpow2.f32 %v1909_v31  ;;  %v975_v56 = vsub.f32 %v4310_v8, %v940_v20  ;;  %v976_v62 = vsub.f32 %v4312_v1, %v940_v20  ;;  %v4573_v45 = vpop.eup %2917  ;;  %v1070_v0 = vadd.f32 %v4566_v49, %v4563_v4 }
 0x415   : >> { %2937 = vpow2.f32 %v1911_v3  ;;  %v977_v21 = vsub.f32 %v4321_v57, %v943_v43  ;;  %v1915_v1 = vmul.f32 1.442695, %v1862_v12  ;;  %v978_v32 = vsub.f32 %v4992_v25, %v943_v43  ;;  %v4997_v25 = vld [vmem:[#allocation24_spill] sm:$0xff] }
 0x416   : >> { %v4577_v6 = vpop.eup %2919  ;;  %v1029_v30 = vmul.f32 1.442695, %v975_v56  ;;  %v1031_v10 = vmul.f32 1.442695, %v976_v62  ;;  %1068 = vadd.xlane.f32.xlu0 %v1067_v23  ;;  %2939 = vpow2.f32 %v1027_v37 }
 0x417   : >> { %v4580_v8 = vpop.eup %2921  ;;  %1071 = vadd.xlane.f32.xlu1 %v1070_v0  ;;  %v1828_v51 = vpop.xlane.xlu1 %1827  ;;  %v1033_v18 = vmul.f32 1.442695, %v977_v21  ;;  %v1035_v56 = vmul.f32 1.442695, %v978_v32 }
 0x418   : >> { %v4585_v11 = vpop.eup %2923  ;;  %2941 = vpow2.f32 %v1029_v30  ;;  %v1863_v48 = vsub.f32 %v4993_v47, %v1828_v51  ;;  %v1864_v31 = vsub.f32 %v4994_v33, %v1828_v51  ;;  %v1958_v57 = vadd.f32 %v4580_v8, %v4577_v6 }
 0x419   : >> { %v4591_v3 = vpop.eup %2925  ;;  %2943 = vpow2.f32 %v1031_v10  ;;  %v1073_v30 = vadd.f32 %v4585_v11, %v4573_v45  ;;  %v4996_v10 = vld [vmem:[#allocation23_spill] sm:$0xff] }
 0x41a   : >> { %v4593_v37 = vpop.eup %2927  ;;  %2945 = vpow2.f32 %v1913_v61  ;;  %v1917_v12 = vmul.f32 1.442695, %v1863_v48  ;;  %v1919_v20 = vmul.f32 1.442695, %v1864_v31  ;;  %1956 = vadd.xlane.f32.xlu0 %v1955_v15 }
 0x41b   : >> { %v4595_v43 = vpop.eup %2929  ;;  %2947 = vpow2.f32 %v1915_v1  ;;  %1959 = vadd.xlane.f32.xlu1 %v1958_v57 }
 0x41c   : >> { %v4597_v62 = vpop.eup %2931  ;;  %2949 = vpow2.f32 %v1917_v12  ;;  %v1831_v23 = vpop.xlane.xlu0 %1830  ;;  %v1076_v0 = vadd.f32 %v4595_v43, %v4593_v37 }
 0x41d   : >> { %v4603_v61 = vpop.eup %2933  ;;  %2951 = vpow2.f32 %v1919_v20  ;;  %v1865_v21 = vsub.f32 %v4996_v10, %v1831_v23  ;;  %v1866_v51 = vsub.f32 %v4997_v25, %v1831_v23  ;;  %v1961_v33 = vadd.f32 %v4597_v62, %v4591_v3 }
 0x41e   : >> { %4995 = vst [vmem:[#allocation15_spill] sm:$0xff] %v4603_v61  ;;  %v4607_v1 = vpop.eup %2935  ;;  %2953 = vpow2.f32 %v1033_v18  ;;  %1074 = vadd.xlane.f32.xlu0 %v1073_v30 }
 0x41f   : >> { %v4609_v32 = vpop.eup %2937  ;;  %2955 = vpow2.f32 %v1035_v56  ;;  %v1921_v15 = vmul.f32 1.442695, %v1865_v21  ;;  %v1923_v47 = vmul.f32 1.442695, %v1866_v51  ;;  %1077 = vadd.xlane.f32.xlu1 %v1076_v0 }
 0x420   : >> { %v1964_v48 = vadd.f32 %v4609_v32, %v4607_v1  ;;  %v4615_v31 = vpop.eup %2939 }
 0x421   : >> { %2957 = vpow2.f32 %v1921_v15  ;;  %v1079_v56 = vadd.f32 %v4615_v31, %v4603_v61  ;;  %v5009_v61 = vld [vmem:[#allocation28_spill] sm:$0xff] }
 0x422   : >> { %v4617_v57 = vpop.eup %2941  ;;  %1962 = vadd.xlane.f32.xlu0 %v1961_v33  ;;  %2959 = vpow2.f32 %v1923_v47 }
 0x423   : >> { %4998 = vst [vmem:[#allocation16_spill] sm:$0xff] %v4617_v57  ;;  %v4619_v18 = vpop.eup %2943  ;;  %1965 = vadd.xlane.f32.xlu1 %v1964_v48 }
 0x424   : >> { %4999 = vst [vmem:[#allocation17_spill] sm:$0xff] %v4619_v18  ;;  %v4621_v12 = vpop.eup %2945  ;;  %v1082_v20 = vadd.f32 %v4619_v18, %v4617_v57 }
 0x425   : >> { %5000 = vst [vmem:[#allocation18_spill] sm:$0xff] %v4621_v12  ;;  %v4627_v23 = vpop.eup %2947 }
 0x426   : >> { %5001 = vst [vmem:[#allocation19_spill] sm:$0xff] %v4627_v23  ;;  %v4629_v0 = vpop.eup %2949  ;;  %1080 = vadd.xlane.f32.xlu0 %v1079_v56  ;;  %v1967_v25 = vadd.f32 %v4627_v23, %v4621_v12  ;;  %v5006_v23 = vld [vmem:[#allocation25_spill] sm:$0xff] }
 0x427   : >> { %5002 = vst [vmem:[#allocation14_spill] sm:$0xff] %v4629_v0  ;;  %v4631_v30 = vpop.eup %2951  ;;  %1083 = vadd.xlane.f32.xlu1 %v1082_v20 }
 0x428   : >> { %5003 = vst [vmem:[#allocation20_spill] sm:$0xff] %v4631_v30  ;;  %v4633_v10 = vpop.eup %2953  ;;  %v1970_v21 = vadd.f32 %v4631_v30, %v4629_v0 }
 0x429   : >> { %5004 = vst [vmem:[#allocation12_spill] sm:$0xff] %v4633_v10  ;;  %v4639_v51 = vpop.eup %2955 }
 0x42a   : >> { %5005 = vst [vmem:[#allocation11_spill] sm:$0xff] %v4639_v51  ;;  %1968 = vadd.xlane.f32.xlu0 %v1967_v25  ;;  %v1085_v20 = vadd.f32 %v4639_v51, %v4633_v10  ;;  %v5008_v10 = vld [vmem:[#allocation27_spill] sm:$0xff] }
 0x42b   : >> { %1971 = vadd.xlane.f32.xlu1 %v1970_v21  ;;  %v946_v15 = vpop.xlane.xlu1 %945  ;;  %v4641_v47 = vpop.eup %2957  ;;  %v5007_v21 = vld [vmem:[#allocation26_spill] sm:$0xff] }
 0x42c   : >> { %v979_v48 = vsub.f32 %v4369_v14, %v946_v15  ;;  %v980_v33 = vsub.f32 %v4373_v28, %v946_v15  ;;  %v4647_v56 = vpop.eup %2959 }
 0x42d   : >> { %v1973_v18 = vadd.f32 %v4647_v56, %v4641_v47 }
 0x42e   : >> { %v1037_v0 = vmul.f32 1.442695, %v979_v48  ;;  %v1039_v30 = vmul.f32 1.442695, %v980_v33  ;;  %1086 = vadd.xlane.f32.xlu0 %v1085_v20 }
 0x42f   : >> { %v1834_v12 = vpop.xlane.xlu1 %1833 }
 0x430   : >> { %2961 = vpow2.f32 %v1037_v0  ;;  %v1867_v25 = vsub.f32 %v5006_v23, %v1834_v12  ;;  %v1868_v57 = vsub.f32 %v5007_v21, %v1834_v12 }
 0x431   : >> { %2963 = vpow2.f32 %v1039_v30  ;;  %v949_v14 = vpop.xlane.xlu0 %948  ;;  %v5010_v30 = vld [vmem:[#allocation29_spill] sm:$0xff] }
 0x432   : >> { %v1925_v28 = vmul.f32 1.442695, %v1867_v25  ;;  %v1927_v15 = vmul.f32 1.442695, %v1868_v57  ;;  %1974 = vadd.xlane.f32.xlu0 %v1973_v18  ;;  %v981_v51 = vsub.f32 %v5008_v10, %v949_v14  ;;  %v982_v48 = vsub.f32 %v5009_v61, %v949_v14  ;;  %v5011_v25 = vld [vmem:[#allocation30_spill] sm:$0xff] }
 0x434   : >> { %2965 = vpow2.f32 %v1925_v28  ;;  %v1041_v33 = vmul.f32 1.442695, %v981_v51  ;;  %v1043_v20 = vmul.f32 1.442695, %v982_v48 }
 0x435   : >> { %2967 = vpow2.f32 %v1927_v15 }
 0x436   : >> { %2969 = vpow2.f32 %v1041_v33 }
 0x437   : >> { %2971 = vpow2.f32 %v1043_v20 }
 0x43a   : >> { %v4655_v23 = vpop.eup %2961  ;;  %v1837_v12 = vpop.xlane.xlu0 %1836 }
 0x43b   : >> { %v4657_v0 = vpop.eup %2963  ;;  %v1869_v21 = vsub.f32 %v5010_v30, %v1837_v12  ;;  %v1870_v57 = vsub.f32 %v5011_v25, %v1837_v12 }
 0x43c   : >> { %v1088_v18 = vadd.f32 %v4657_v0, %v4655_v23 }
 0x43d   : >> { %v1929_v10 = vmul.f32 1.442695, %v1869_v21  ;;  %v1931_v61 = vmul.f32 1.442695, %v1870_v57 }
 0x43e   : >> { %v4663_v14 = vpop.eup %2965  ;;  %1089 = vadd.xlane.f32.xlu1 %v1088_v18 }
 0x43f   : >> { %v4665_v51 = vpop.eup %2967  ;;  %2973 = vpow2.f32 %v1929_v10 }
 0x440   : >> { %v4667_v28 = vpop.eup %2969  ;;  %2975 = vpow2.f32 %v1931_v61  ;;  %v1976_v15 = vadd.f32 %v4665_v51, %v4663_v14 }
 0x441   : >> { %5012 = vst [vmem:[#allocation13_spill] sm:$0xff] %v4667_v28  ;;  %v4671_v48 = vpop.eup %2971 }
 0x442   : >> { %5013 = vst [vmem:[#allocation21_spill] sm:$0xff] %v4671_v48  ;;  %1977 = vadd.xlane.f32.xlu1 %v1976_v15  ;;  %v1091_v33 = vadd.f32 %v4671_v48, %v4667_v28 }
 0x444   : >> { %1092 = vadd.xlane.f32.xlu0 %v1091_v33 }
 0x449   : >> { %v4675_v20 = vpop.eup %2973 }
 0x44a   : >> { %v4677_v12 = vpop.eup %2975 }
 0x44b   : >> { %v1979_v30 = vadd.f32 %v4677_v12, %v4675_v20 }
 0x44d   : >> { %1980 = vadd.xlane.f32.xlu0 %v1979_v30  ;;  %v952_v21 = vpop.xlane.xlu1 %951 }
 0x44e   : >> { %v983_v25 = vsub.f32 %v4425_v2, %v952_v21  ;;  %v984_v57 = vsub.f32 %v4429_v17, %v952_v21 }
 0x450   : >> { %v1045_v18 = vmul.f32 1.442695, %v983_v25  ;;  %v1047_v10 = vmul.f32 1.442695, %v984_v57 }
 0x451   : >> { %v1840_v61 = vpop.xlane.xlu1 %1839 }
 0x452   : >> { %2977 = vpow2.f32 %v1045_v18  ;;  %v1871_v15 = vsub.f32 %v4435_v35, %v1840_v61  ;;  %v1872_v33 = vsub.f32 %v4437_v29, %v1840_v61 }
 0x453   : >> { %2979 = vpow2.f32 %v1047_v10 }
 0x454   : >> { %v1933_v28 = vmul.f32 1.442695, %v1871_v15  ;;  %v1935_v48 = vmul.f32 1.442695, %v1872_v33 }
 0x456   : >> { %2981 = vpow2.f32 %v1933_v28 }
 0x457   : >> { %2983 = vpow2.f32 %v1935_v48 }
 0x45c   : >> { %v4685_v30 = vpop.eup %2977 }
 0x45d   : >> { %5014 = vst [vmem:[#allocation22_spill] sm:$0xff] %v4685_v30  ;;  %v4687_v2 = vpop.eup %2979 }
 0x45e   : >> { %v1094_v17 = vadd.f32 %v4687_v2, %v4685_v30 }
 0x460   : >> { %v4691_v21 = vpop.eup %2981  ;;  %1095 = vadd.xlane.f32.xlu1 %v1094_v17 }
 0x461   : >> { %5015 = vst [vmem:[#allocation23_spill] sm:$0xff] %v4691_v21  ;;  %v4693_v35 = vpop.eup %2983 }
 0x462   : >> { %5016 = vst [vmem:[#allocation24_spill] sm:$0xff] %v4693_v35  ;;  %v1982_v29 = vadd.f32 %v4693_v35, %v4691_v21 }
 0x464   : >> { %1983 = vadd.xlane.f32.xlu1 %v1982_v29 }
 0x46d   : >> { %v1054_v25 = vpop.xlane.xlu1 %1053 }
 0x46e   : >> { %2985 = vrcp.f32 %v1054_v25 }
 0x478   : >> { %v2986_v28 = vpop.eup %2985 }
 0x479   : >> { %v1115_v48 = vmul.f32 %v2986_v28, %v4443_v24  ;;  %v1116_v57 = vmul.f32 %v2986_v28, %v4445_v39 }
 0x47b   : >> { %v2460_v18 = vpack.c.bf16 %v1116_v57, %v1115_v48 }
 0x47d   : >> { %1245 = vst [vmem:[%s4702_s13 + $0x8] sm:$0xff] %v2460_v18 }
 0x48b   : >> { %v1051_v10 = vpop.xlane.xlu0 %1050 }
 0x48c   : >> { %2987 = vrcp.f32 %v1051_v10 }
 0x48f   : >> { %v1942_v61 = vpop.xlane.xlu1 %1941  ;;  %v1939_v15 = vpop.xlane.xlu0 %1938 }
 0x490   : >> { %2989 = vrcp.f32 %v1942_v61 }
 0x491   : >> { %2991 = vrcp.f32 %v1939_v15 }
 0x493   : >> { %v1060_v33 = vpop.xlane.xlu1 %1059  ;;  %v1057_v17 = vpop.xlane.xlu0 %1056 }
 0x494   : >> { %2993 = vrcp.f32 %v1060_v33 }
 0x495   : >> { %2995 = vrcp.f32 %v1057_v17 }
 0x496   : >> { %v2988_v24 = vpop.eup %2987 }
 0x497   : >> { %v1948_v29 = vpop.xlane.xlu1 %1947  ;;  %v1945_v39 = vpop.xlane.xlu0 %1944  ;;  %v1113_v25 = vmul.f32 %v2988_v24, %v4475_v5  ;;  %v1114_v28 = vmul.f32 %v2988_v24, %v4478_v54 }
 0x498   : >> { %2997 = vrcp.f32 %v1948_v29 }
 0x499   : >> { %2999 = vrcp.f32 %v1945_v39  ;;  %v1146_v18 = vpack.c.bf16 %v1116_v57, %v1114_v28  ;;  %v2459_v10 = vpack.c.bf16 %v1114_v28, %v1113_v25  ;;  %v1145_v21 = vpack.c.bf16 %v1115_v48, %v1113_v25 }
 0x49a   : >> { %v2990_v35 = vpop.eup %2989 }
 0x49b   : >> { %v2992_v61 = vpop.eup %2991  ;;  %v1066_v15 = vpop.xlane.xlu1 %1065  ;;  %1244 = vst [vmem:[%s4702_s13] sm:$0xff] %v2459_v10  ;;  %1292 = vmatprep.mubr.bf16.mxu1 %v1146_v18  ;;  %v2003_v17 = vmul.f32 %v2990_v35, %v4492_v38  ;;  %v2004_v30 = vmul.f32 %v2990_v35, %v4494_v59 }
 0x49c   : >> { %v1063_v33 = vpop.xlane.xlu0 %1062  ;;  %3001 = vrcp.f32 %v1066_v15  ;;  %1293 = vmatmul.mubr.bf16.vlgmr.msra.gmra.mrb[0].mxu1 %v1145_v21  ;;  %v2001_v5 = vmul.f32 %v2992_v61, %v4463_v9  ;;  %v2002_v54 = vmul.f32 %v2992_v61, %v4466_v19 }
 0x49d   : >> { %3003 = vrcp.f32 %v1063_v33  ;;  %v2478_v48 = vpack.c.bf16 %v2004_v30, %v2003_v17 }
 0x49e   : >> { %v2994_v57 = vpop.eup %2993  ;;  %v2034_v24 = vpack.c.bf16 %v2004_v30, %v2002_v54  ;;  %v2477_v29 = vpack.c.bf16 %v2002_v54, %v2001_v5  ;;  %v2033_v39 = vpack.c.bf16 %v2003_v17, %v2001_v5 }
 0x49f   : >> { %v2996_v25 = vpop.eup %2995  ;;  %2130 = vst [vmem:[%s4702_s13 + $0x88] sm:$0xff] %v2478_v48  ;;  %v1120_v38 = vmul.f32 %v2994_v57, %v4505_v50  ;;  %v1119_v59 = vmul.f32 %v2994_v57, %v4503_v40 }
 0x4a0   : >> { %v1951_v28 = vpop.xlane.xlu0 %1950  ;;  %v1954_v35 = vpop.xlane.xlu1 %1953  ;;  %2129 = vst [vmem:[%s4702_s13 + $0x80] sm:$0xff] %v2477_v29  ;;  %2177 = vmatprep.mubr.bf16.mxu0 %v2034_v24  ;;  %v1118_v9 = vmul.f32 %v2996_v25, %v4472_v34  ;;  %v1117_v19 = vmul.f32 %v2996_v25, %v4469_v27 }
 0x4a1   : >> { %3005 = vrcp.f32 %v1951_v28  ;;  %2178 = vmatmul.mubr.bf16.vlgmr.msra.gmra.mrb[8].mxu0 %v2033_v39  ;;  %v2462_v30 = vpack.c.bf16 %v1120_v38, %v1119_v59 }
 0x4a2   : >> { %3007 = vrcp.f32 %v1954_v35  ;;  %v2998_v21 = vpop.eup %2997  ;;  %v1148_v18 = vpack.c.bf16 %v1120_v38, %v1118_v9  ;;  %v1147_v10 = vpack.c.bf16 %v1119_v59, %v1117_v19  ;;  %v2461_v61 = vpack.c.bf16 %v1118_v9, %v1117_v19 }
 0x4a3   : >> { %v3000_v50 = vpop.eup %2999  ;;  %1247 = vst [vmem:[%s4702_s13 + $0x18] sm:$0xff] %v2462_v30  ;;  %v2008_v40 = vmul.f32 %v2998_v21, %v4519_v42  ;;  %v2007_v33 = vmul.f32 %v2998_v21, %v4516_v52 }
 0x4a4   : >> { %v1069_v15 = vpop.xlane.xlu0 %1068  ;;  %v1072_v17 = vpop.xlane.xlu1 %1071  ;;  %1300 = vmatprep.mubr.bf16.mxu1 %v1148_v18  ;;  %1246 = vst [vmem:[%s4702_s13 + $0x10] sm:$0xff] %v2461_v61  ;;  %v2006_v27 = vmul.f32 %v3000_v50, %v4488_v44  ;;  %v2005_v34 = vmul.f32 %v3000_v50, %v4482_v41 }
 0x4a5   : >> { %3009 = vrcp.f32 %v1069_v15  ;;  %1301 = vmatmul.mubr.bf16.gmra.mrb[4].mxu1 %v1147_v10  ;;  %v2480_v5 = vpack.c.bf16 %v2008_v40, %v2007_v33 }
 0x4a6   : >> { %3011 = vrcp.f32 %v1072_v17  ;;  %v3002_v54 = vpop.eup %3001  ;;  %v2036_v48 = vpack.c.bf16 %v2008_v40, %v2006_v27  ;;  %v2035_v57 = vpack.c.bf16 %v2007_v33, %v2005_v34  ;;  %v2479_v24 = vpack.c.bf16 %v2006_v27, %v2005_v34 }
 0x4a7   : >> { %v3004_v42 = vpop.eup %3003  ;;  %2132 = vst [vmem:[%s4702_s13 + $0x98] sm:$0xff] %v2480_v5  ;;  %v1124_v52 = vmul.f32 %v3002_v54, %v4535_v7  ;;  %v1123_v39 = vmul.f32 %v3002_v54, %v4532_v55 }
 0x4a8   : >> { %v1957_v29 = vpop.xlane.xlu0 %1956  ;;  %v1960_v25 = vpop.xlane.xlu1 %1959  ;;  %2185 = vmatprep.mubr.bf16.mxu0 %v2036_v48  ;;  %2131 = vst [vmem:[%s4702_s13 + $0x90] sm:$0xff] %v2479_v24  ;;  %v1122_v41 = vmul.f32 %v3004_v42, %v4510_v46  ;;  %v1121_v44 = vmul.f32 %v3004_v42, %v4501_v36 }
 0x4a9   : >> { %3013 = vrcp.f32 %v1957_v29  ;;  %2186 = vmatmul.mubr.bf16.gmra.mrb[12].mxu0 %v2035_v57  ;;  %v2464_v28 = vpack.c.bf16 %v1124_v52, %v1123_v39 }
 0x4aa   : >> { %3015 = vrcp.f32 %v1960_v25  ;;  %v1150_v59 = vpack.c.bf16 %v1124_v52, %v1122_v41  ;;  %v1149_v35 = vpack.c.bf16 %v1123_v39, %v1121_v44  ;;  %v2463_v9 = vpack.c.bf16 %v1122_v41, %v1121_v44 }
 0x4ab   : >> { %v3006_v38 = vpop.eup %3005  ;;  %1249 = vst [vmem:[%s4702_s13 + $0x28] sm:$0xff] %v2464_v28 }
 0x4ac   : >> { %v3008_v7 = vpop.eup %3007  ;;  %v1075_v19 = vpop.xlane.xlu0 %1074  ;;  %v2010_v55 = vmul.f32 %v3006_v38, %v4530_v58  ;;  %v2009_v30 = vmul.f32 %v3006_v38, %v4524_v22  ;;  %1308 = vmatprep.mubr.bf16.mxu1 %v1150_v59  ;;  %1248 = vst [vmem:[%s4702_s13 + $0x20] sm:$0xff] %v2463_v9 }
 0x4ad   : >> { %v1078_v21 = vpop.xlane.xlu1 %1077  ;;  %3017 = vrcp.f32 %v1075_v19  ;;  %v2012_v36 = vmul.f32 %v3008_v7, %v4553_v16  ;;  %v2011_v46 = vmul.f32 %v3008_v7, %v4550_v26  ;;  %1309 = vmatmul.mubr.bf16.gmra.mrb[8].mxu1 %v1149_v35 }
 0x4ae   : >> { %3019 = vrcp.f32 %v1078_v21  ;;  %v2481_v18 = vpack.c.bf16 %v2010_v55, %v2009_v30 }
 0x4af   : >> { %v3010_v10 = vpop.eup %3009  ;;  %v2038_v61 = vpack.c.bf16 %v2012_v36, %v2010_v55  ;;  %v2037_v50 = vpack.c.bf16 %v2011_v46, %v2009_v30  ;;  %v2482_v15 = vpack.c.bf16 %v2012_v36, %v2011_v46 }
 0x4b0   : >> { %v3012_v58 = vpop.eup %3011  ;;  %v1963_v40 = vpop.xlane.xlu0 %1962  ;;  %2133 = vst [vmem:[%s4702_s13 + $0xa0] sm:$0xff] %v2481_v18  ;;  %v1126_v22 = vmul.f32 %v3010_v10, %v4546_v13  ;;  %v1125_v33 = vmul.f32 %v3010_v10, %v4540_v53 }
 0x4b1   : >> { %v1966_v17 = vpop.xlane.xlu1 %1965  ;;  %3021 = vrcp.f32 %v1963_v40  ;;  %2193 = vmatprep.mubr.bf16.mxu0 %v2038_v61  ;;  %2134 = vst [vmem:[%s4702_s13 + $0xa8] sm:$0xff] %v2482_v15  ;;  %v1128_v26 = vmul.f32 %v3012_v58, %v4566_v49  ;;  %v1127_v16 = vmul.f32 %v3012_v58, %v4563_v4  ;;  %v5019_v58 = vld [vmem:[#allocation16_spill] sm:$0xff] }
 0x4b2   : >> { %3023 = vrcp.f32 %v1966_v17  ;;  %2194 = vmatmul.mubr.bf16.gmra.mrb[16].mxu0 %v2037_v50  ;;  %v2465_v27 = vpack.c.bf16 %v1126_v22, %v1125_v33 }
 0x4b3   : >> { %v3014_v34 = vpop.eup %3013  ;;  %v1152_v5 = vpack.c.bf16 %v1128_v26, %v1126_v22  ;;  %v1151_v54 = vpack.c.bf16 %v1127_v16, %v1125_v33  ;;  %v2466_v48 = vpack.c.bf16 %v1128_v26, %v1127_v16 }
 0x4b4   : >> { %v3016_v13 = vpop.eup %3015  ;;  %v1081_v57 = vpop.xlane.xlu0 %1080  ;;  %1250 = vst [vmem:[%s4702_s13 + $0x30] sm:$0xff] %v2465_v27  ;;  %v2014_v53 = vmul.f32 %v3014_v34, %v4559_v60  ;;  %v2013_v24 = vmul.f32 %v3014_v34, %v4548_v63 }
 0x4b5   : >> { %v1084_v42 = vpop.xlane.xlu1 %1083  ;;  %3025 = vrcp.f32 %v1081_v57  ;;  %1316 = vmatprep.mubr.bf16.mxu1 %v1152_v5  ;;  %1251 = vst [vmem:[%s4702_s13 + $0x38] sm:$0xff] %v2466_v48  ;;  %v2016_v4 = vmul.f32 %v3016_v13, %v4580_v8  ;;  %v2015_v49 = vmul.f32 %v3016_v13, %v4577_v6  ;;  %v5021_v5 = vld [vmem:[#allocation18_spill] sm:$0xff]  ;;  %v5022_v48 = vld [vmem:[#allocation20_spill] sm:$0xff] }
 0x4b6   : >> { %3027 = vrcp.f32 %v1084_v42  ;;  %1317 = vmatmul.mubr.bf16.gmra.mrb[12].mxu1 %v1151_v54  ;;  %v2483_v29 = vpack.c.bf16 %v2014_v53, %v2013_v24  ;;  %v5023_v57 = vld [vmem:[#allocation14_spill] sm:$0xff] }
 0x4b7   : >> { %v3018_v52 = vpop.eup %3017  ;;  %v2040_v39 = vpack.c.bf16 %v2016_v4, %v2014_v53  ;;  %v2039_v25 = vpack.c.bf16 %v2015_v49, %v2013_v24  ;;  %v2484_v41 = vpack.c.bf16 %v2016_v4, %v2015_v49 }
 0x4b8   : >> { %v3020_v60 = vpop.eup %3019  ;;  %v1969_v44 = vpop.xlane.xlu0 %1968  ;;  %2135 = vst [vmem:[%s4702_s13 + $0xb0] sm:$0xff] %v2483_v29  ;;  %v1130_v63 = vmul.f32 %v3018_v52, %v4585_v11  ;;  %v1129_v28 = vmul.f32 %v3018_v52, %v4573_v45  ;;  %v5024_v52 = vld [vmem:[#allocation11_spill] sm:$0xff] }
 0x4b9   : >> { %v1972_v38 = vpop.xlane.xlu1 %1971  ;;  %3029 = vrcp.f32 %v1969_v44  ;;  %2201 = vmatprep.mubr.bf16.mxu0 %v2040_v39  ;;  %2136 = vst [vmem:[%s4702_s13 + $0xb8] sm:$0xff] %v2484_v41  ;;  %v1132_v6 = vmul.f32 %v3020_v60, %v4595_v43  ;;  %v1131_v8 = vmul.f32 %v3020_v60, %v4593_v37 }
 0x4ba   : >> { %3031 = vrcp.f32 %v1972_v38  ;;  %2202 = vmatmul.mubr.bf16.gmra.mrb[20].mxu0 %v2039_v25  ;;  %v2467_v59 = vpack.c.bf16 %v1130_v63, %v1129_v28  ;;  %v5025_v25 = vld [vmem:[#allocation12_spill] sm:$0xff] }
 0x4bb   : >> { %v3022_v35 = vpop.eup %3021  ;;  %v1154_v9 = vpack.c.bf16 %v1132_v6, %v1130_v63  ;;  %v1153_v7 = vpack.c.bf16 %v1131_v8, %v1129_v28  ;;  %v2468_v19 = vpack.c.bf16 %v1132_v6, %v1131_v8 }
 0x4bc   : >> { %v3024_v11 = vpop.eup %3023  ;;  %v1087_v55 = vpop.xlane.xlu0 %1086  ;;  %1252 = vst [vmem:[%s4702_s13 + $0x40] sm:$0xff] %v2467_v59  ;;  %v2018_v45 = vmul.f32 %v3022_v35, %v4597_v62  ;;  %v2017_v30 = vmul.f32 %v3022_v35, %v4591_v3  ;;  %v5017_v62 = vld [vmem:[#allocation15_spill] sm:$0xff] }
 0x4bd   : >> { %3033 = vrcp.f32 %v1087_v55  ;;  %1324 = vmatprep.mubr.bf16.mxu1 %v1154_v9  ;;  %1253 = vst [vmem:[%s4702_s13 + $0x48] sm:$0xff] %v2468_v19  ;;  %v2020_v37 = vmul.f32 %v3024_v11, %v4609_v32  ;;  %v2019_v43 = vmul.f32 %v3024_v11, %v4607_v1  ;;  %v5018_v32 = vld [vmem:[#allocation17_spill] sm:$0xff] }
 0x4be   : >> { %1325 = vmatmul.mubr.bf16.gmra.mrb[16].mxu1 %v1153_v7  ;;  %v2485_v21 = vpack.c.bf16 %v2018_v45, %v2017_v30 }
 0x4bf   : >> { %v3026_v36 = vpop.eup %3025  ;;  %v2042_v46 = vpack.c.bf16 %v2020_v37, %v2018_v45  ;;  %v2041_v18 = vpack.c.bf16 %v2019_v43, %v2017_v30  ;;  %v2486_v10 = vpack.c.bf16 %v2020_v37, %v2019_v43 }
 0x4c0   : >> { %v3028_v61 = vpop.eup %3027  ;;  %v1975_v50 = vpop.xlane.xlu0 %1974  ;;  %2137 = vst [vmem:[%s4702_s13 + $0xc0] sm:$0xff] %v2485_v21  ;;  %v1134_v3 = vmul.f32 %v3026_v36, %v4615_v31  ;;  %v1133_v15 = vmul.f32 %v3026_v36, %v5017_v62  ;;  %v5020_v31 = vld [vmem:[#allocation19_spill] sm:$0xff]  ;;  %v5026_v21 = vld [vmem:[#allocation21_spill] sm:$0xff] }
 0x4c1   : >> { %3035 = vrcp.f32 %v1975_v50  ;;  %2209 = vmatprep.mubr.bf16.mxu0 %v2042_v46  ;;  %2138 = vst [vmem:[%s4702_s13 + $0xc8] sm:$0xff] %v2486_v10  ;;  %v1136_v1 = vmul.f32 %v3028_v61, %v5018_v32  ;;  %v1135_v40 = vmul.f32 %v3028_v61, %v5019_v58  ;;  %v5027_v46 = vld [vmem:[#allocation13_spill] sm:$0xff] }
 0x4c2   : >> { %2210 = vmatmul.mubr.bf16.gmra.mrb[24].mxu0 %v2041_v18  ;;  %v2469_v22 = vpack.c.bf16 %v1134_v3, %v1133_v15 }
 0x4c3   : >> { %v3030_v33 = vpop.eup %3029  ;;  %v1156_v17 = vpack.c.bf16 %v1136_v1, %v1134_v3  ;;  %v1155_v26 = vpack.c.bf16 %v1135_v40, %v1133_v15  ;;  %v2470_v16 = vpack.c.bf16 %v1136_v1, %v1135_v40  ;;  %v5028_v1 = vld [vmem:[#allocation22_spill] sm:$0xff] }
 0x4c4   : >> { %v3032_v27 = vpop.eup %3031  ;;  %1254 = vst [vmem:[%s4702_s13 + $0x50] sm:$0xff] %v2469_v22  ;;  %v2022_v34 = vmul.f32 %v3030_v33, %v5020_v31  ;;  %v2021_v54 = vmul.f32 %v3030_v33, %v5021_v5 }
 0x4c5   : >> { %1332 = vmatprep.mubr.bf16.mxu1 %v1156_v17  ;;  %1255 = vst [vmem:[%s4702_s13 + $0x58] sm:$0xff] %v2470_v16  ;;  %v2024_v13 = vmul.f32 %v3032_v27, %v5022_v48  ;;  %v2023_v53 = vmul.f32 %v3032_v27, %v5023_v57 }
 0x4c6   : >> { %1333 = vmatmul.mubr.bf16.gmra.mrb[20].mxu1 %v1155_v26  ;;  %v2487_v24 = vpack.c.bf16 %v2022_v34, %v2021_v54  ;;  %v5030_v26 = vld [vmem:[#allocation23_spill] sm:$0xff] }
 0x4c7   : >> { %v3034_v42 = vpop.eup %3033  ;;  %v2044_v4 = vpack.c.bf16 %v2024_v13, %v2022_v34  ;;  %v2043_v49 = vpack.c.bf16 %v2023_v53, %v2021_v54  ;;  %v2488_v29 = vpack.c.bf16 %v2024_v13, %v2023_v53 }
 0x4c8   : >> { %2139 = vst [vmem:[%s4702_s13 + $0xd0] sm:$0xff] %v2487_v24  ;;  %v1138_v39 = vmul.f32 %v3034_v42, %v5024_v52  ;;  %v1137_v41 = vmul.f32 %v3034_v42, %v5025_v25 }
 0x4c9   : >> { %2217 = vmatprep.mubr.bf16.mxu0 %v2044_v4  ;;  %2140 = vst [vmem:[%s4702_s13 + $0xd8] sm:$0xff] %v2488_v29 }
 0x4ca   : >> { %2218 = vmatmul.mubr.bf16.gmra.mrb[28].mxu0 %v2043_v49  ;;  %v2471_v60 = vpack.c.bf16 %v1138_v39, %v1137_v41 }
 0x4cb   : >> { %v3036_v44 = vpop.eup %3035  ;;  %v1090_v63 = vpop.xlane.xlu1 %1089 }
 0x4cc   : >> { %1256 = vst [vmem:[%s4702_s13 + $0x60] sm:$0xff] %v2471_v60  ;;  %v2026_v28 = vmul.f32 %v3036_v44, %v4647_v56  ;;  %v2025_v38 = vmul.f32 %v3036_v44, %v4641_v47  ;;  %3037 = vrcp.f32 %v1090_v63 }
 0x4ce   : >> { %v2489_v6 = vpack.c.bf16 %v2026_v28, %v2025_v38 }
 0x4cf   : >> { %v1978_v8 = vpop.xlane.xlu1 %1977 }
 0x4d0   : >> { %2141 = vst [vmem:[%s4702_s13 + $0xe0] sm:$0xff] %v2489_v6  ;;  %3039 = vrcp.f32 %v1978_v8 }
 0x4d1   : >> { %v1093_v59 = vpop.xlane.xlu0 %1092 }
 0x4d2   : >> { %3041 = vrcp.f32 %v1093_v59 }
 0x4d6   : >> { %v3038_v35 = vpop.eup %3037 }
 0x4d7   : >> { %v1140_v9 = vmul.f32 %v3038_v35, %v4657_v0  ;;  %v1139_v7 = vmul.f32 %v3038_v35, %v4655_v23 }
 0x4d9   : >> { %v1158_v19 = vpack.c.bf16 %v1140_v9, %v1138_v39  ;;  %v1157_v11 = vpack.c.bf16 %v1139_v7, %v1137_v41  ;;  %v2472_v55 = vpack.c.bf16 %v1140_v9, %v1139_v7 }
 0x4da   : >> { %v3040_v56 = vpop.eup %3039  ;;  %v1981_v45 = vpop.xlane.xlu0 %1980 }
 0x4db   : >> { %3043 = vrcp.f32 %v1981_v45  ;;  %1340 = vmatprep.mubr.bf16.mxu1 %v1158_v19  ;;  %1257 = vst [vmem:[%s4702_s13 + $0x68] sm:$0xff] %v2472_v55  ;;  %v2028_v47 = vmul.f32 %v3040_v56, %v4665_v51  ;;  %v2027_v30 = vmul.f32 %v3040_v56, %v4663_v14 }
 0x4dc   : >> { %v3042_v37 = vpop.eup %3041  ;;  %1341 = vmatmul.mubr.bf16.gmra.mrb[24].mxu1 %v1157_v11 }
 0x4dd   : >> { %v2046_v0 = vpack.c.bf16 %v2028_v47, %v2026_v28  ;;  %v2045_v43 = vpack.c.bf16 %v2027_v30, %v2025_v38  ;;  %v2490_v23 = vpack.c.bf16 %v2028_v47, %v2027_v30  ;;  %v1142_v36 = vmul.f32 %v3042_v37, %v5026_v21 }
 0x4de   : >> { %v1141_v18 = vmul.f32 %v3042_v37, %v5027_v46 }
 0x4df   : >> { %2225 = vmatprep.mubr.bf16.mxu0 %v2046_v0  ;;  %2142 = vst [vmem:[%s4702_s13 + $0xe8] sm:$0xff] %v2490_v23 }
 0x4e0   : >> { %2226 = vmatmul.mubr.bf16.gmra.mrb[32].mxu0 %v2045_v43  ;;  %v2473_v10 = vpack.c.bf16 %v1142_v36, %v1141_v18 }
 0x4e2   : >> { %1258 = vst [vmem:[%s4702_s13 + $0x70] sm:$0xff] %v2473_v10 }
 0x4e5   : >> { %v3044_v61 = vpop.eup %3043 }
 0x4e6   : >> { %v2030_v51 = vmul.f32 %v3044_v61, %v4677_v12  ;;  %v2029_v14 = vmul.f32 %v3044_v61, %v4675_v20  ;;  %v5029_v12 = vld [vmem:[#allocation24_spill] sm:$0xff] }
 0x4e8   : >> { %v2491_v50 = vpack.c.bf16 %v2030_v51, %v2029_v14 }
 0x4ea   : >> { %2143 = vst [vmem:[%s4702_s13 + $0xf0] sm:$0xff] %v2491_v50 }
 0x4ed   : >> { %v1096_v3 = vpop.xlane.xlu1 %1095 }
 0x4ee   : >> { %3045 = vrcp.f32 %v1096_v3 }
 0x4f1   : >> { %v1984_v62 = vpop.xlane.xlu1 %1983 }
 0x4f2   : >> { %3047 = vrcp.f32 %v1984_v62 }
 0x4f8   : >> { %v3046_v15 = vpop.eup %3045 }
 0x4f9   : >> { %v1144_v32 = vmul.f32 %v3046_v15, %v4687_v2  ;;  %v1143_v58 = vmul.f32 %v3046_v15, %v5028_v1 }
 0x4fb   : >> { %v1160_v40 = vpack.c.bf16 %v1144_v32, %v1142_v36  ;;  %v1159_v22 = vpack.c.bf16 %v1143_v58, %v1141_v18  ;;  %v2474_v33 = vpack.c.bf16 %v1144_v32, %v1143_v58 }
 0x4fc   : >> { %v3048_v17 = vpop.eup %3047 }
 0x4fd   : >> { %1348 = vmatprep.mubr.bf16.mxu1 %v1160_v40  ;;  %1259 = vst [vmem:[%s4702_s13 + $0x78] sm:$0xff] %v2474_v33  ;;  %v2032_v20 = vmul.f32 %v3048_v17, %v5029_v12  ;;  %v2031_v16 = vmul.f32 %v3048_v17, %v5030_v26 }
 0x4fe   : >> { %1349 = vmatmul.mubr.bf16.gmra.mrb[28].mxu1 %v1159_v22 }
 0x4ff   : >> { %v2048_v27 = vpack.c.bf16 %v2032_v20, %v2030_v51  ;;  %v2047_v31 = vpack.c.bf16 %v2031_v16, %v2029_v14  ;;  %v2492_v34 = vpack.c.bf16 %v2032_v20, %v2031_v16 }
 0x501   : >> { %2233 = vmatprep.mubr.bf16.mxu0 %v2048_v27  ;;  %2144 = vst [vmem:[%s4702_s13 + $0xf8] sm:$0xff] %v2492_v34 }
 0x502   : >> { %2234 = vmatmul.mubr.bf16.gmra.mrb[36].mxu0 %v2047_v31 }
 0x56f   : >> { %v2511_v2 = vpop.f32.mrb[0].mxu1 }
 0x570   : >> { %v2512_v5 = vpop.f32.mrb[1].mxu1 }
 0x571   : >> { %v2513_v54 = vadd.f32 %v2512_v5, %v2511_v2  ;;  %v2514_v48 = vpop.f32.mrb[2].mxu1 }
 0x572   : >> { %v2515_v13 = vpop.f32.mrb[3].mxu1 }
 0x573   : >> { %v2516_v57 = vadd.f32 %v2515_v13, %v2514_v48  ;;  %1357 = vxpose.xlu0.b32.start [1/16] (narrow) %v2513_v54, 16 }
 0x574   : >> { %v2575_v53 = vpop.f32.mrb[8].mxu0 }
 0x575   : >> { %v2576_v24 = vpop.f32.mrb[9].mxu0 }
 0x576   : >> { %v2577_v42 = vadd.f32 %v2576_v24, %v2575_v53  ;;  %v2578_v4 = vpop.f32.mrb[10].mxu0 }
 0x577   : >> { %v2579_v49 = vpop.f32.mrb[11].mxu0  ;;  %1358 = vxpose.xlu0.b32.cont [2/16] (narrow) %v2516_v57, 16 }
 0x578   : >> { %v2580_v29 = vadd.f32 %v2579_v49, %v2578_v4  ;;  %2242 = vxpose.xlu1.b32.start [1/16] (narrow) %v2577_v42, 16  ;;  %v2517_v52 = vpop.f32.mrb[4].mxu1 }
 0x579   : >> { %v2518_v39 = vpop.f32.mrb[5].mxu1 }
 0x57a   : >> { %v2519_v25 = vadd.f32 %v2518_v39, %v2517_v52  ;;  %v2520_v41 = vpop.f32.mrb[6].mxu1 }
 0x57b   : >> { %v2521_v60 = vpop.f32.mrb[7].mxu1 }
 0x57c   : >> { %v2522_v44 = vadd.f32 %v2521_v60, %v2520_v41  ;;  %v2581_v63 = vpop.f32.mrb[12].mxu0  ;;  %2243 = vxpose.xlu1.b32.cont [2/16] (narrow) %v2580_v29, 16  ;;  %1359 = vxpose.xlu0.b32.cont [3/16] (narrow) %v2519_v25, 16 }
 0x57d   : >> { %v2582_v28 = vpop.f32.mrb[13].mxu0 }
 0x57e   : >> { %v2583_v38 = vadd.f32 %v2582_v28, %v2581_v63  ;;  %v2584_v6 = vpop.f32.mrb[14].mxu0 }
 0x57f   : >> { %v2585_v8 = vpop.f32.mrb[15].mxu0 }
 0x580   : >> { %v2586_v59 = vadd.f32 %v2585_v8, %v2584_v6  ;;  %2244 = vxpose.xlu1.b32.cont [3/16] (narrow) %v2583_v38, 16  ;;  %v2523_v35 = vpop.f32.mrb[8].mxu1  ;;  %1360 = vxpose.xlu0.b32.cont [4/16] (narrow) %v2522_v44, 16 }
 0x581   : >> { %v2524_v9 = vpop.f32.mrb[9].mxu1 }
 0x582   : >> { %v2525_v7 = vadd.f32 %v2524_v9, %v2523_v35  ;;  %v2526_v19 = vpop.f32.mrb[10].mxu1 }
 0x583   : >> { %v2527_v11 = vpop.f32.mrb[11].mxu1 }
 0x584   : >> { %v2528_v55 = vadd.f32 %v2527_v11, %v2526_v19  ;;  %2245 = vxpose.xlu1.b32.cont [4/16] (narrow) %v2586_v59, 16  ;;  %1361 = vxpose.xlu0.b32.cont [5/16] (narrow) %v2525_v7, 16 }
 0x585   : >> { %v2587_v56 = vpop.f32.mrb[16].mxu0 }
 0x586   : >> { %v2588_v45 = vpop.f32.mrb[17].mxu0 }
 0x587   : >> { %v2589_v47 = vadd.f32 %v2588_v45, %v2587_v56  ;;  %v2590_v30 = vpop.f32.mrb[18].mxu0 }
 0x588   : >> { %v2591_v37 = vpop.f32.mrb[19].mxu0  ;;  %1362 = vxpose.xlu0.b32.cont [6/16] (narrow) %v2528_v55, 16 }
 0x589   : >> { %v2592_v0 = vadd.f32 %v2591_v37, %v2590_v30  ;;  %2246 = vxpose.xlu1.b32.cont [5/16] (narrow) %v2589_v47, 16  ;;  %v2529_v43 = vpop.f32.mrb[12].mxu1 }
 0x58a   : >> { %v2530_v23 = vpop.f32.mrb[13].mxu1 }
 0x58b   : >> { %v2531_v21 = vadd.f32 %v2530_v23, %v2529_v43  ;;  %v2532_v36 = vpop.f32.mrb[14].mxu1 }
 0x58c   : >> { %v2533_v46 = vpop.f32.mrb[15].mxu1 }
 0x58d   : >> { %v2534_v18 = vadd.f32 %v2533_v46, %v2532_v36  ;;  %v2593_v10 = vpop.f32.mrb[20].mxu0  ;;  %2247 = vxpose.xlu1.b32.cont [6/16] (narrow) %v2592_v0, 16  ;;  %1363 = vxpose.xlu0.b32.cont [7/16] (narrow) %v2531_v21, 16 }
 0x58e   : >> { %v2594_v61 = vpop.f32.mrb[21].mxu0 }
 0x58f   : >> { %v2595_v51 = vadd.f32 %v2594_v61, %v2593_v10  ;;  %v2596_v14 = vpop.f32.mrb[22].mxu0 }
 0x590   : >> { %v2597_v50 = vpop.f32.mrb[23].mxu0 }
 0x591   : >> { %v2598_v3 = vadd.f32 %v2597_v50, %v2596_v14  ;;  %2248 = vxpose.xlu1.b32.cont [7/16] (narrow) %v2595_v51, 16  ;;  %v2535_v62 = vpop.f32.mrb[16].mxu1  ;;  %1364 = vxpose.xlu0.b32.cont [8/16] (narrow) %v2534_v18, 16 }
 0x592   : >> { %v2536_v15 = vpop.f32.mrb[17].mxu1 }
 0x593   : >> { %v2537_v32 = vadd.f32 %v2536_v15, %v2535_v62  ;;  %v2538_v1 = vpop.f32.mrb[18].mxu1 }
 0x594   : >> { %v2539_v58 = vpop.f32.mrb[19].mxu1 }
 0x595   : >> { %v2540_v40 = vadd.f32 %v2539_v58, %v2538_v1  ;;  %v2599_v22 = vpop.f32.mrb[24].mxu0  ;;  %2249 = vxpose.xlu1.b32.cont [8/16] (narrow) %v2598_v3, 16  ;;  %1365 = vxpose.xlu0.b32.cont [9/16] (narrow) %v2537_v32, 16 }
 0x596   : >> { %v2600_v33 = vpop.f32.mrb[25].mxu0 }
 0x597   : >> { %v2601_v17 = vadd.f32 %v2600_v33, %v2599_v22  ;;  %v2602_v12 = vpop.f32.mrb[26].mxu0 }
 0x598   : >> { %v2603_v20 = vpop.f32.mrb[27].mxu0 }
 0x599   : >> { %v2604_v26 = vadd.f32 %v2603_v20, %v2602_v12  ;;  %2250 = vxpose.xlu1.b32.cont [9/16] (narrow) %v2601_v17, 16  ;;  %v2541_v16 = vpop.f32.mrb[20].mxu1  ;;  %1366 = vxpose.xlu0.b32.cont [10/16] (narrow) %v2540_v40, 16 }
 0x59a   : >> { %v2542_v27 = vpop.f32.mrb[21].mxu1 }
 0x59b   : >> { %v2543_v31 = vadd.f32 %v2542_v27, %v2541_v16  ;;  %v2544_v34 = vpop.f32.mrb[22].mxu1 }
 0x59c   : >> { %v2545_v2 = vpop.f32.mrb[23].mxu1 }
 0x59d   : >> { %v2546_v5 = vadd.f32 %v2545_v2, %v2544_v34  ;;  %v2605_v54 = vpop.f32.mrb[28].mxu0  ;;  %2251 = vxpose.xlu1.b32.cont [10/16] (narrow) %v2604_v26, 16  ;;  %1367 = vxpose.xlu0.b32.cont [11/16] (narrow) %v2543_v31, 16 }
 0x59e   : >> { %v2606_v48 = vpop.f32.mrb[29].mxu0 }
 0x59f   : >> { %v2607_v13 = vadd.f32 %v2606_v48, %v2605_v54  ;;  %v2608_v57 = vpop.f32.mrb[30].mxu0 }
 0x5a0   : >> { %v2609_v53 = vpop.f32.mrb[31].mxu0 }
 0x5a1   : >> { %v2610_v24 = vadd.f32 %v2609_v53, %v2608_v57  ;;  %2252 = vxpose.xlu1.b32.cont [11/16] (narrow) %v2607_v13, 16  ;;  %1368 = vxpose.xlu0.b32.cont [12/16] (narrow) %v2546_v5, 16 }
 0x5a5   : >> { %2253 = vxpose.xlu1.b32.cont [12/16] (narrow) %v2610_v24, 16 }
 0x5af   : >> { %v2547_v42 = vpop.f32.mrb[24].mxu1 }
 0x5b0   : >> { %v2548_v4 = vpop.f32.mrb[25].mxu1 }
 0x5b1   : >> { %v2549_v49 = vadd.f32 %v2548_v4, %v2547_v42  ;;  %v2550_v29 = vpop.f32.mrb[26].mxu1 }
 0x5b2   : >> { %v2551_v52 = vpop.f32.mrb[27].mxu1 }
 0x5b3   : >> { %v2552_v39 = vadd.f32 %v2551_v52, %v2550_v29  ;;  %v2611_v25 = vpop.f32.mrb[32].mxu0  ;;  %1369 = vxpose.xlu0.b32.cont [13/16] (narrow) %v2549_v49, 16 }
 0x5b4   : >> { %v2612_v41 = vpop.f32.mrb[33].mxu0 }
 0x5b5   : >> { %v2613_v60 = vadd.f32 %v2612_v41, %v2611_v25  ;;  %v2614_v44 = vpop.f32.mrb[34].mxu0 }
 0x5b6   : >> { %v2615_v63 = vpop.f32.mrb[35].mxu0 }
 0x5b7   : >> { %v2616_v28 = vadd.f32 %v2615_v63, %v2614_v44  ;;  %2254 = vxpose.xlu1.b32.cont [13/16] (narrow) %v2613_v60, 16  ;;  %1370 = vxpose.xlu0.b32.cont [14/16] (narrow) %v2552_v39, 16 }
 0x5bb   : >> { %2255 = vxpose.xlu1.b32.cont [14/16] (narrow) %v2616_v28, 16 }
 0x5d1   : >> { %v2553_v38 = vpop.f32.mrb[28].mxu1 }
 0x5d2   : >> { %v2554_v6 = vpop.f32.mrb[29].mxu1 }
 0x5d3   : >> { %v2555_v8 = vadd.f32 %v2554_v6, %v2553_v38  ;;  %v2556_v59 = vpop.f32.mrb[30].mxu1 }
 0x5d4   : >> { %v2557_v35 = vpop.f32.mrb[31].mxu1 }
 0x5d5   : >> { %v2558_v9 = vadd.f32 %v2557_v35, %v2556_v59  ;;  %v2617_v7 = vpop.f32.mrb[36].mxu0  ;;  %1371 = vxpose.xlu0.b32.cont [15/16] (narrow) %v2555_v8, 16 }
 0x5d6   : >> { %v2618_v19 = vpop.f32.mrb[37].mxu0 }
 0x5d7   : >> { %v2619_v11 = vadd.f32 %v2618_v19, %v2617_v7  ;;  %v2620_v55 = vpop.f32.mrb[38].mxu0 }
 0x5d8   : >> { %v2621_v56 = vpop.f32.mrb[39].mxu0 }
 0x5d9   : >> { %v2622_v45 = vadd.f32 %v2621_v56, %v2620_v55  ;;  %2256 = vxpose.xlu1.b32.cont [15/16] (narrow) %v2619_v11, 16  ;;  %1372 = vxpose.xlu0.b32.end [16/16] (narrow) %v2558_v9, 16 }
 0x5dd   : >> { %2257 = vxpose.xlu1.b32.end [16/16] (narrow) %v2622_v45, 16 }
 0x61d   : >> { %v1373_v47 = vpop.trf.xlu0 }
 0x61e   : >> { %1391 = vst [vmem:[%s1390_s14] sm:$0xff] %v1373_v47 }
 0x620   : > { %246 = sbr.rel (!%p244_p11) target bundleno = 156 (0x9c), region = 89 }
 0x621   : >> { %v2258_v30 = vpop.trf.xlu1  ;;  %v1374_v37 = vpop.trf.xlu0 }
 0x622   : >> { %2274 = vst [vmem:[%s1390_s14 + $0x8] sm:$0xff] %v2258_v30  ;;  %1392 = vst [vmem:[%s1390_s14 + $0x10] sm:$0xff] %v1374_v37 }
 0x625   : >> { %v2259_v0 = vpop.trf.xlu1 }
 0x626   : >> { %2275 = vst [vmem:[%s1390_s14 + $0x18] sm:$0xff] %v2259_v0 }
 0x627   : > { %3062 = shalt.err (!%p3059_p4)
}
 0x628   : > { %s3063_s8 = scalar_lea.hbm %s4808_s27, 16384  ;;  %s3067_s5 = scalar_lea.hbm %s4861_s4, 32768 }
 0x629   : > { %p3064_p7 = scmp.ne.s32.totalorder %s4808_s27, %s3063_s8  ;;  %p3068_p10 = scmp.lt.u32.totalorder %s4808_s27, %s4861_s4 }
 0x62a   : > { %p3069_p11 = scmp.lt.u32.totalorder %s3067_s5, %s3063_s8  ;;  %p3071_p13 = scmp.lt.u32.totalorder %s3063_s8, %s4808_s27 }
 0x62b   : > { %p3065_p8 = pnand %p3064_p7, %p3191_p5 }
 0x62c   : > { %p3070_p12 = por %p3069_p11, %p3068_p10 }
 0x62d   : > { %p3066_p9 = pneg %p3065_p8 }
 0x62e   : > { %p3072_p0 = por %p3071_p13, %p3070_p12 }
 0x630   : > { %p3073_p1 = pnand %p3072_p0, %p3066_p9 }
 0x632   : > { %3076 = shalt.err (!%p3073_p1)
}
 0x633   : > { %s3126_s13 = smov 128   ;;  %s3127_s14 = smov 8  }
 0x634   : > { %2623 = dma.vmem_to_hbm [thread:$0]  (%p3191_p5), %s4812_s29, 16384, %s4808_s27, %s4816_s30, %s3126_s13, %s3126_s13, %s3127_s14  }
 0x635 PF: > { %p2629_p2 = scmp.ge.s32.totalorder %s3115_s18, 2  ;;  %s2325_s20 = sand.u32 1, %s3103_s15  }
 0x636   : > { %s2326_s22 = scalar_lea.sflag [#allocation3], %s2325_s20 }
 0x637   : > { %p2626_p3 = pnand %p2629_p2, %p3195_p6 }
 0x639   : > { %3098 = dma.done.wait (!%p2626_p3), %s2326_s22, 16384  }
 0x63a   : > { %3100 = vsyncadd (!%p2626_p3), %s2326_s22, 4294950912  ;;  %p15_p4 = scmp.ge.s32.totalorder %s3178_s21, 4   ;;  %s5031_s15 = smov %s3107_s16 }
 0x63b   : > { %s5032_s16 = smov %s3111_s17  ;;  %s5033_s17 = smov %s3189_s24 }
 0x63c   : > { %s5034_s18 = smov %s3178_s21  ;;  %17 = sbr.rel (!%p15_p4) target bundleno = 3 (0x3), region = 100 }
 0x643   :  { %2331 = vsyncpa [#allocation3], 1 }
 0x644   :  { %2333 = vsyncpa [#allocation3 + $0x1], 1 }

</bundles_post_ra>
